<compile_context>
chip_gen: v7x
topology: tpu7x:2x2x1
jax: 0.10.0
libtpu: 0.0.40
codegen_flags: <defaults>
</compile_context>

<pallas_src>
import functools
import math

import jax
import jax.numpy as jnp
from jax import lax
from jax.experimental import pallas as pl
from jax.experimental.pallas import tpu as pltpu

_NEG = -1e30      # large finite negative: avoids NaN for fully-masked query rows
_LN_EPS = 1e-5


# ----------------------------------------------------------------------------
# In-kernel helpers
# ----------------------------------------------------------------------------
def _layer_norm(y, w, b):
    """LayerNorm over the last dim (f32 statistics). y: [R, D], w/b: [1, D]."""
    mean = jnp.mean(y, axis=-1, keepdims=True)
    var = jnp.mean(jnp.square(y - mean), axis=-1, keepdims=True)
    return (y - mean) * lax.rsqrt(var + _LN_EPS) * w + b


def _to_heads(x, Bb, T, H, p, cdt):
    """[Bb, T, D] f32 -> [Bb*H, T, p] in matmul dtype (single layout-aware relayout)."""
    x4 = pltpu.einshape("bthd->bhtd", x.reshape(Bb, T, H, p))
    return x4.reshape(Bb * H, T, p).astype(cdt)


def _attention(q, k, v, kpad, wo, *, num_heads, causal, cdt, kv_block):
    """Batched multi-head attention with online (flash-style) softmax over key blocks.

    q: [Bb, Tq, D] f32, already scaled by p**-0.5.  k, v: [Bb, Tk, D] f32.
    kpad: [Bb, Tk] int32 (nonzero == padding).  wo: [D, D] in matmul dtype `cdt`.
    Returns [Bb*Tq, D] f32 (output projection applied on the flattened row slab).
    """
    Bb, Tq, D = q.shape
    Tk = k.shape[1]
    H = num_heads
    p = D // H
    N = Bb * H

    qh = _to_heads(q, Bb, Tq, H, p, cdt)          # [N, Tq, p]
    kh = _to_heads(k, Bb, Tk, H, p, cdt)          # [N, Tk, p]
    vh = _to_heads(v, Bb, Tk, H, p, cdt)          # [N, Tk, p]

    qpos = lax.broadcasted_iota(jnp.int32, (Tq, 1), 0) if causal else None

    m = jnp.full((Bb, H, Tq, 1), -jnp.inf, jnp.float32)
    l = jnp.zeros((Bb, H, Tq, 1), jnp.float32)
    acc = jnp.zeros((Bb, H, Tq, p), jnp.float32)

    # Online softmax over key blocks: bounds temporaries to [Bb, H, Tq, kv_block].
    for k0 in range(0, Tk, kv_block):
        kc = min(kv_block, Tk - k0)
        kblk = kh[:, k0:k0 + kc]
        vblk = vh[:, k0:k0 + kc]

        s = jnp.einsum("nqd,nkd->nqk", qh, kblk,
                       preferred_element_type=jnp.float32)       # [N, Tq, kc]
        s = s.reshape(Bb, H, Tq, kc)

        # Key-pad + causal masking in a single select (no additive bias tensor).
        maskb = (kpad[:, None, None, k0:k0 + kc] != 0)           # [Bb,1,1,kc]
        if causal:
            kposb = k0 + lax.broadcasted_iota(jnp.int32, (1, kc), 1)
            maskb = jnp.logical_or(maskb, (kposb > qpos)[None, None])
        # _NEG is finite on purpose: fully-masked rows stay NaN-free (they produce a
        # uniform average, acceptable because downstream masks padded query rows).
        s = jnp.where(maskb, _NEG, s)

        m_new = jnp.maximum(m, jnp.max(s, axis=-1, keepdims=True))
        alpha = jnp.exp(m - m_new)
        pblk = jnp.exp(s - m_new)
        l = alpha * l + jnp.sum(pblk, axis=-1, keepdims=True)
        pv = jnp.einsum("nqk,nkd->nqd",
                        pblk.reshape(N, Tq, kc).astype(cdt), vblk,
                        preferred_element_type=jnp.float32)      # [N, Tq, p]
        acc = alpha * acc + pv.reshape(Bb, H, Tq, p)
        m = m_new

    ctx = acc * pl.reciprocal(l, approx=True)                    # EUP reciprocal
    ctx = pltpu.einshape("bhqd->bqhd", ctx).reshape(Bb * Tq, D)  # [Bb*Tq, D]
    return jnp.dot(ctx.astype(cdt), wo, preferred_element_type=jnp.float32)


def _ffn(x, w1_ref, b1_ref, w2_ref, b2_ref, *, cdt, ffn_block):
    """linear-relu-linear, tiled over the hidden dim so [rows, Hf] is never resident."""
    R, D = x.shape
    Hf = w1_ref.shape[1]
    xc = x.astype(cdt)
    acc = jnp.zeros((R, D), jnp.float32)
    for h0 in range(0, Hf, ffn_block):
        h1 = min(h0 + ffn_block, Hf)
        hblk = jnp.dot(xc, w1_ref[:, h0:h1],
                       preferred_element_type=jnp.float32) + b1_ref[:, h0:h1]
        hblk = jnp.maximum(hblk, 0.0)
        acc = acc + jnp.dot(hblk.astype(cdt), w2_ref[h0:h1, :],
                            preferred_element_type=jnp.float32)
    return acc + b2_ref[...]


# ----------------------------------------------------------------------------
# Fused decoder-layer kernel (one grid step == Bb batch elements)
# ----------------------------------------------------------------------------
def _decoder_layer_kernel(
    state_ref, src_ref, self_mask_ref, src_mask_ref,
    # self-attention sublayer
    wqkv_s_ref, wo_s_ref, lnw_s_ref, lnb_s_ref,
    # source (cross) attention sublayer
    wq_c_ref, wkv_c_ref, wo_c_ref, lnw_c_ref, lnb_c_ref,
    # feed-forward sublayer
    w1_ref, b1_ref, w2_ref, b2_ref, lnw_f_ref, lnb_f_ref,
    out_ref,
    *, num_heads, causal, kv_block, ffn_block):
    x = state_ref[...].astype(jnp.float32)            # [Bb, T, D]
    Bb, T, D = x.shape
    S = src_ref.shape[1]
    p = D // num_heads
    scale = float(p) ** -0.5
    cdt = wqkv_s_ref.dtype                            # MXU / matmul dtype

    xf = x.reshape(Bb * T, D)                         # flattened row slab for projections
    self_pad = self_mask_ref[...].reshape(Bb, T)      # int32, nonzero == padding
    src_pad = src_mask_ref[...].reshape(Bb, S)

    # ---- 1) causal self-attention sublayer -------------------------------
    qkv = jnp.dot(xf.astype(cdt), wqkv_s_ref[...],
                  preferred_element_type=jnp.float32)              # [Bb*T, 3D]
    q = (qkv[:, :D] * scale).reshape(Bb, T, D)                     # fold softmax scale into q
    k = qkv[:, D:2 * D].reshape(Bb, T, D)
    v = qkv[:, 2 * D:].reshape(Bb, T, D)
    attn = _attention(q, k, v, self_pad, wo_s_ref[...], num_heads=num_heads,
                      causal=causal, cdt=cdt, kv_block=kv_block)   # [Bb*T, D]
    xf = _layer_norm(xf + attn, lnw_s_ref[...], lnb_s_ref[...])

    # ---- 2) source (cross) attention sublayer ----------------------------
    q2 = (jnp.dot(xf.astype(cdt), wq_c_ref[...],
                  preferred_element_type=jnp.float32) * scale).reshape(Bb, T, D)
    srcf = src_ref[...].reshape(Bb * S, D)                          # already matmul dtype
    kv = jnp.dot(srcf, wkv_c_ref[...],
                 preferred_element_type=jnp.float32)                # [Bb*S, 2D]
    k2 = kv[:, :D].reshape(Bb, S, D)
    v2 = kv[:, D:].reshape(Bb, S, D)
    attn2 = _attention(q2, k2, v2, src_pad, wo_c_ref[...], num_heads=num_heads,
                       causal=False, cdt=cdt, kv_block=kv_block)    # [Bb*T, D]
    xf = _layer_norm(xf + attn2, lnw_c_ref[...], lnb_c_ref[...])

    # ---- 3) feed-forward sublayer (linear-relu-linear, Hf-tiled) ----------
    f = _ffn(xf, w1_ref, b1_ref, w2_ref, b2_ref, cdt=cdt, ffn_block=ffn_block)
    out = _layer_norm(xf + f, lnw_f_ref[...], lnb_f_ref[...])
    out_ref[...] = out.reshape(Bb, T, D).astype(out_ref.dtype)


# ----------------------------------------------------------------------------
# Wrapper
# ----------------------------------------------------------------------------
def _pick_batch_block(B, T, *, target_rows=256, max_rows=1024):
    """Largest divisor of B such that Bb*T approaches target_rows while keeping
    >= 2 grid steps (v7x has 2 TensorCores) and bounded VMEM."""
    best = 1
    for d in range(1, B + 1):
        if B % d:
            continue
        if d > 1 and d * T > max_rows:
            break
        if B >= 2 and B // d < 2:
            break
        best = d
        if d * T >= target_rows:
            break
    return best


def _vmem_limit_bytes():
    default = 64 * 1024 * 1024
    try:
        cap = int(getattr(pltpu.get_tpu_info(), "vmem_capacity_bytes", 0))
    except Exception:
        return default
    if cap <= 0:
        return default
    # ~25% headroom for Mosaic scratch / pipeline buffers, never above 100 MiB.
    return int(min(cap * 3 // 4, 100 * 1024 * 1024))


def transformer_decoder_layer(inputs, sources, params, *, num_heads, causal=True,
                              kv_block=512, ffn_block=2048):
    """Forward pass of TransformerDecoderLayer (cache=None path, eval/no-dropout)."""
    state = inputs["state"]
    mask = inputs["mask"]
    source = sources["state"]
    # TODO(synk): incremental-decoding cache path (span slicing / num_queries /
    #             concat into cache[uuid]) and span > 1 block masks not implemented.

    B, T, D = state.shape
    S = source.shape[1]
    sa, ca, fp = params["self_attention"], params["source_attention"], params["ffn"]
    Hf = fp["w1"].shape[1]
    cdt = sa["wqkv"].dtype                               # weights pre-cast at init
    out_dtype = state.dtype

    Bb = _pick_batch_block(B, T)
    nb = B // Bb
    kv_block = max(8, min(kv_block, max(T, S)))
    ffn_block = max(128, min(ffn_block, Hf))

    self_mask = mask.astype(jnp.int32)[:, None, :]       # [B, 1, T]
    src_mask = sources["mask"].astype(jnp.int32)[:, None, :]   # [B, 1, S]

    # bf16 activations over HBM (kernel upcasts to f32 for residual / LN / softmax).
    state_c = state.astype(cdt)
    source_c = source.astype(cdt)

    bat = lambda b: (b, 0, 0)
    rep = lambda b: (0, 0)
    # Weights never change across grid steps -> single-buffer them (halves weight VMEM).
    wspec = lambda shape: pl.BlockSpec(shape, rep, pipeline_mode=pl.Buffered(1))

    in_specs = [
        pl.BlockSpec((Bb, T, D), bat),              # state
        pl.BlockSpec((Bb, S, D), bat),              # source
        pl.BlockSpec((Bb, 1, T), bat),              # self key mask (int32)
        pl.BlockSpec((Bb, 1, S), bat),              # source key mask (int32)
        wspec((D, 3 * D)),                          # self wqkv
        wspec((D, D)),                              # self wo
        wspec((1, D)), wspec((1, D)),               # self ln w/b
        wspec((D, D)),                              # cross wq
        wspec((D, 2 * D)),                          # cross wkv
        wspec((D, D)),                              # cross wo
        wspec((1, D)), wspec((1, D)),               # cross ln w/b
        wspec((D, Hf)), wspec((1, Hf)),             # ffn w1 / b1
        wspec((Hf, D)), wspec((1, D)),              # ffn w2 / b2
        wspec((1, D)), wspec((1, D)),               # ffn ln w/b
    ]

    # Advisory cost estimate for the XLA scheduler.
    flops = 2 * B * (T * D * 3 * D + T * D * D + 2 * T * T * D            # self attn
                     + T * D * D + S * D * 2 * D + T * D * D + 2 * T * S * D  # cross attn
                     + 2 * T * D * Hf)                                     # ffn
    transcendentals = B * num_heads * (T * T + T * S)
    weight_elems = (3 * D * D + D * D) + (D * D + 2 * D * D + D * D) + (2 * D * Hf)
    bytes_accessed = (2 * B * T * D + B * S * D + weight_elems) * jnp.dtype(cdt).itemsize \
                     + B * (T + S) * 4

    kernel = functools.partial(_decoder_layer_kernel, num_heads=num_heads,
                               causal=causal, kv_block=kv_block, ffn_block=ffn_block)
    out = pl.pallas_call(
        kernel,
        out_shape=jax.ShapeDtypeStruct((B, T, D), out_dtype),
        grid_spec=pl.GridSpec(grid=(nb,), in_specs=in_specs,
                              out_specs=pl.BlockSpec((Bb, T, D), bat)),
        compiler_params=pltpu.CompilerParams(
            dimension_semantics=("parallel",),          # batch blocks independent
            vmem_limit_bytes=_vmem_limit_bytes()),
        cost_estimate=pl.CostEstimate(flops=int(flops),
                                      transcendentals=int(transcendentals),
                                      bytes_accessed=int(bytes_accessed)),
    )(state_c, source_c, self_mask, src_mask,
      sa["wqkv"], sa["wo"], sa["ln_w"], sa["ln_b"],
      ca["wq"], ca["wkv"], ca["wo"], ca["ln_w"], ca["ln_b"],
      fp["w1"], fp["b1"], fp["w2"], fp["b2"], fp["ln_w"], fp["ln_b"])

    return {"state": out, "mask": mask, "cache": inputs.get("cache")}


# ----------------------------------------------------------------------------
# Deterministic parameter init (xavier uniform, matching the module's scheme).
# Matmul weights are pre-cast to the MXU dtype once, here (not per call).
# ----------------------------------------------------------------------------
def _xavier_uniform(key, shape, gain=1.0):
    fan_in, fan_out = shape  # weights stored [in, out]
    bound = gain * math.sqrt(6.0 / (fan_in + fan_out))
    return jax.random.uniform(key, shape, jnp.float32, -bound, bound)


def init_params(key, dim, hidden_dim, matmul_dtype=jnp.bfloat16):
    keys = jax.random.split(key, 10)
    cdt = jnp.dtype(matmul_dtype)

    def attn_params(kq, kk, kv, ko, fused_qkv):
        wq = _xavier_uniform(kq, (dim, dim))
        wk = _xavier_uniform(kk, (dim, dim))
        wv = _xavier_uniform(kv, (dim, dim))
        wo = _xavier_uniform(ko, (dim, dim)).astype(cdt)
        ln = {"ln_w": jnp.ones((1, dim), jnp.float32),
              "ln_b": jnp.zeros((1, dim), jnp.float32)}
        if fused_qkv:
            return {"wqkv": jnp.concatenate([wq, wk, wv], axis=1).astype(cdt),
                    "wo": wo, **ln}
        return {"wq": wq.astype(cdt),
                "wkv": jnp.concatenate([wk, wv], axis=1).astype(cdt),
                "wo": wo, **ln}

    relu_gain = math.sqrt(2.0)
    return {
        "self_attention": attn_params(*keys[0:4], fused_qkv=True),
        "source_attention": attn_params(*keys[4:8], fused_qkv=False),
        "ffn": {
            "w1": _xavier_uniform(keys[8], (dim, hidden_dim), relu_gain).astype(cdt),
            "b1": jnp.zeros((1, hidden_dim), jnp.float32),
            "w2": _xavier_uniform(keys[9], (hidden_dim, dim)).astype(cdt),
            "b2": jnp.zeros((1, dim), jnp.float32),
            "ln_w": jnp.ones((1, dim), jnp.float32),
            "ln_b": jnp.zeros((1, dim), jnp.float32),
        },
    }


# ----------------------------------------------------------------------------
# Example run
# ----------------------------------------------------------------------------
if __name__ == "__main__":
    # Head dim p = D / H = 128 (lane-dense), small batch / sequence lengths.
    B, T, S, D, HID, NUM_HEADS = 4, 8, 16, 256, 512, 2

    root = jax.random.PRNGKey(0)
    k_params, k_state, k_src = jax.random.split(root, 3)

    params = init_params(k_params, D, HID)
    state = jax.random.normal(k_state, (B, T, D), jnp.float32).astype(jnp.bfloat16)
    source = jax.random.normal(k_src, (B, S, D), jnp.float32).astype(jnp.bfloat16)

    state_mask = jnp.zeros((B, T), jnp.bool_)                     # no decoder padding
    src_lens = jnp.array([S, S - 4, S, S - 6], jnp.int32)[:B]     # some source padding
    source_mask = jnp.arange(S, dtype=jnp.int32)[None, :] >= src_lens[:, None]

    inputs = {"state": state, "mask": state_mask, "cache": None}
    sources = {"state": source, "mask": source_mask}

    out = transformer_decoder_layer(inputs, sources, params,
                                    num_heads=NUM_HEADS, causal=True)
    jax.block_until_ready(out["state"])
    assert out["state"].shape == (B, T, D)
    assert bool(jnp.all(jnp.isfinite(out["state"].astype(jnp.float32))))
    print("KERNEL_OK")
</pallas_src>

<mosaic_0001>
module attributes {stable_mosaic.version = 11 : i64} {
  func.func @_decoder_layer_kernel(%arg0: i32, %arg1: memref<2x8x256xbf16, #tpu.memory_space<vmem>>, %arg2: memref<2x16x256xbf16, #tpu.memory_space<vmem>>, %arg3: memref<2x1x8xi32, #tpu.memory_space<vmem>>, %arg4: memref<2x1x16xi32, #tpu.memory_space<vmem>>, %arg5: memref<256x768xbf16, #tpu.memory_space<vmem>>, %arg6: memref<256x256xbf16, #tpu.memory_space<vmem>>, %arg7: memref<1x256xf32, #tpu.memory_space<vmem>>, %arg8: memref<1x256xf32, #tpu.memory_space<vmem>>, %arg9: memref<256x256xbf16, #tpu.memory_space<vmem>>, %arg10: memref<256x512xbf16, #tpu.memory_space<vmem>>, %arg11: memref<256x256xbf16, #tpu.memory_space<vmem>>, %arg12: memref<1x256xf32, #tpu.memory_space<vmem>>, %arg13: memref<1x256xf32, #tpu.memory_space<vmem>>, %arg14: memref<256x512xbf16, #tpu.memory_space<vmem>>, %arg15: memref<1x512xf32, #tpu.memory_space<vmem>>, %arg16: memref<512x256xbf16, #tpu.memory_space<vmem>>, %arg17: memref<1x256xf32, #tpu.memory_space<vmem>>, %arg18: memref<1x256xf32, #tpu.memory_space<vmem>>, %arg19: memref<1x256xf32, #tpu.memory_space<vmem>>, %arg20: memref<2x8x256xbf16, #tpu.memory_space<vmem>>) attributes {dimension_semantics = [#tpu.dimension_semantics<parallel>], iteration_bounds = array<i64: 2>, scalar_prefetch = 0 : i64, scratch_operands = 0 : i64, tpu.core_type = #tpu.core_type<tc>, window_params = [{transform_indices = @transform_0, window_bounds = array<i64: 2, 8, 256>}, {transform_indices = @transform_1, window_bounds = array<i64: 2, 16, 256>}, {transform_indices = @transform_2, window_bounds = array<i64: 2, 1, 8>}, {transform_indices = @transform_3, window_bounds = array<i64: 2, 1, 16>}, {pipeline_mode = #tpu.pipeline_mode<synchronous>, transform_indices = @transform_4, window_bounds = array<i64: 256, 768>}, {pipeline_mode = #tpu.pipeline_mode<synchronous>, transform_indices = @transform_5, window_bounds = array<i64: 256, 256>}, {pipeline_mode = #tpu.pipeline_mode<synchronous>, transform_indices = @transform_6, window_bounds = array<i64: 1, 256>}, {pipeline_mode = #tpu.pipeline_mode<synchronous>, transform_indices = @transform_7, window_bounds = array<i64: 1, 256>}, {pipeline_mode = #tpu.pipeline_mode<synchronous>, transform_indices = @transform_8, window_bounds = array<i64: 256, 256>}, {pipeline_mode = #tpu.pipeline_mode<synchronous>, transform_indices = @transform_9, window_bounds = array<i64: 256, 512>}, {pipeline_mode = #tpu.pipeline_mode<synchronous>, transform_indices = @transform_10, window_bounds = array<i64: 256, 256>}, {pipeline_mode = #tpu.pipeline_mode<synchronous>, transform_indices = @transform_11, window_bounds = array<i64: 1, 256>}, {pipeline_mode = #tpu.pipeline_mode<synchronous>, transform_indices = @transform_12, window_bounds = array<i64: 1, 256>}, {pipeline_mode = #tpu.pipeline_mode<synchronous>, transform_indices = @transform_13, window_bounds = array<i64: 256, 512>}, {pipeline_mode = #tpu.pipeline_mode<synchronous>, transform_indices = @transform_14, window_bounds = array<i64: 1, 512>}, {pipeline_mode = #tpu.pipeline_mode<synchronous>, transform_indices = @transform_15, window_bounds = array<i64: 512, 256>}, {pipeline_mode = #tpu.pipeline_mode<synchronous>, transform_indices = @transform_16, window_bounds = array<i64: 1, 256>}, {pipeline_mode = #tpu.pipeline_mode<synchronous>, transform_indices = @transform_17, window_bounds = array<i64: 1, 256>}, {pipeline_mode = #tpu.pipeline_mode<synchronous>, transform_indices = @transform_18, window_bounds = array<i64: 1, 256>}, {transform_indices = @transform_19, window_bounds = array<i64: 2, 8, 256>}]} {
    %c0 = arith.constant 0 : index
    %c0_0 = arith.constant 0 : index
    %c0_1 = arith.constant 0 : index
    %0 = vector.load %arg1[%c0, %c0_0, %c0_1] : memref<2x8x256xbf16, #tpu.memory_space<vmem>>, vector<2x8x256xbf16>
    %1 = arith.extf %0 : vector<2x8x256xbf16> to vector<2x8x256xf32>
    %2 = vector.shape_cast %1 : vector<2x8x256xf32> to vector<16x256xf32>
    %c0_2 = arith.constant 0 : index
    %c0_3 = arith.constant 0 : index
    %c0_4 = arith.constant 0 : index
    %3 = vector.load %arg3[%c0_2, %c0_3, %c0_4] : memref<2x1x8xi32, #tpu.memory_space<vmem>>, vector<2x1x8xi32>
    %4 = vector.shape_cast %3 : vector<2x1x8xi32> to vector<2x8xi32>
    %c0_5 = arith.constant 0 : index
    %c0_6 = arith.constant 0 : index
    %c0_7 = arith.constant 0 : index
    %5 = vector.load %arg4[%c0_5, %c0_6, %c0_7] : memref<2x1x16xi32, #tpu.memory_space<vmem>>, vector<2x1x16xi32>
    %6 = vector.shape_cast %5 : vector<2x1x16xi32> to vector<2x16xi32>
    %7 = arith.truncf %2 : vector<16x256xf32> to vector<16x256xbf16>
    %c0_8 = arith.constant 0 : index
    %c0_9 = arith.constant 0 : index
    %8 = vector.load %arg5[%c0_8, %c0_9] : memref<256x768xbf16, #tpu.memory_space<vmem>>, vector<256x768xbf16>
    %cst = arith.constant dense<0.000000e+00> : vector<16x768xf32>
    %9 = tpu.matmul %7, %8, %cst {dimension_numbers = #tpu.dot_dimension_numbers<[1], [0], [0], [1], [0, 0, 1, 1], [], []>} : vector<16x256xbf16>, vector<256x768xbf16>, vector<16x768xf32> -> vector<16x768xf32>
    %10 = vector.extract_strided_slice %9 {offsets = [0, 0], sizes = [16, 256], strides = [1, 1]} : vector<16x768xf32> to vector<16x256xf32>
    %cst_10 = arith.constant 0.0883883461 : f32
    %11 = vector.broadcast %cst_10 : f32 to vector<16x256xf32>
    %12 = arith.mulf %10, %11 : vector<16x256xf32>
    %13 = vector.shape_cast %12 : vector<16x256xf32> to vector<2x8x256xf32>
    %14 = vector.extract_strided_slice %9 {offsets = [0, 256], sizes = [16, 256], strides = [1, 1]} : vector<16x768xf32> to vector<16x256xf32>
    %15 = vector.shape_cast %14 : vector<16x256xf32> to vector<2x8x256xf32>
    %16 = vector.extract_strided_slice %9 {offsets = [0, 512], sizes = [16, 256], strides = [1, 1]} : vector<16x768xf32> to vector<16x256xf32>
    %17 = vector.shape_cast %16 : vector<16x256xf32> to vector<2x8x256xf32>
    %c0_11 = arith.constant 0 : index
    %c0_12 = arith.constant 0 : index
    %18 = vector.load %arg6[%c0_11, %c0_12] : memref<256x256xbf16, #tpu.memory_space<vmem>>, vector<256x256xbf16>
    %19 = vector.shape_cast %13 : vector<2x8x256xf32> to vector<2x8x2x128xf32>
    %20 = tpu.transpose %19, [0, 2, 1, 3] : vector<2x8x2x128xf32> -> vector<2x2x8x128xf32>
    %21 = vector.shape_cast %20 : vector<2x2x8x128xf32> to vector<4x8x128xf32>
    %22 = arith.truncf %21 : vector<4x8x128xf32> to vector<4x8x128xbf16>
    %23 = vector.shape_cast %15 : vector<2x8x256xf32> to vector<2x8x2x128xf32>
    %24 = tpu.transpose %23, [0, 2, 1, 3] : vector<2x8x2x128xf32> -> vector<2x2x8x128xf32>
    %25 = vector.shape_cast %24 : vector<2x2x8x128xf32> to vector<4x8x128xf32>
    %26 = arith.truncf %25 : vector<4x8x128xf32> to vector<4x8x128xbf16>
    %27 = vector.shape_cast %17 : vector<2x8x256xf32> to vector<2x8x2x128xf32>
    %28 = tpu.transpose %27, [0, 2, 1, 3] : vector<2x8x2x128xf32> -> vector<2x2x8x128xf32>
    %29 = vector.shape_cast %28 : vector<2x2x8x128xf32> to vector<4x8x128xf32>
    %30 = arith.truncf %29 : vector<4x8x128xf32> to vector<4x8x128xbf16>
    %31 = tpu.iota {dimensions = array<i32: 0>} : vector<8x1xi32>
    %cst_13 = arith.constant 0xFF800000 : f32
    %32 = vector.broadcast %cst_13 : f32 to vector<2x2x8x1xf32>
    %cst_14 = arith.constant 0.000000e+00 : f32
    %33 = vector.broadcast %cst_14 : f32 to vector<2x2x8x1xf32>
    %cst_15 = arith.constant 0.000000e+00 : f32
    %34 = vector.broadcast %cst_15 : f32 to vector<2x2x8x128xf32>
    "tpu.trace_start"() <{level = 10 : i32, message = "nqd,nkd->nqk"}> : () -> ()
    %cst_16 = arith.constant dense<0.000000e+00> : vector<4x8x8xf32>
    %35 = tpu.matmul %22, %26, %cst_16 {dimension_numbers = #tpu.dot_dimension_numbers<[2], [2], [1], [1], [0, 0, 0, 1, 1, 1], [0], [0]>} : vector<4x8x128xbf16>, vector<4x8x128xbf16>, vector<4x8x8xf32> -> vector<4x8x8xf32>
    "tpu.trace_stop"() : () -> ()
    %36 = vector.shape_cast %35 : vector<4x8x8xf32> to vector<2x2x8x8xf32>
    %37 = vector.shape_cast %4 : vector<2x8xi32> to vector<2x1x1x8xi32>
    %c0_i32 = arith.constant 0 : i32
    %38 = vector.broadcast %c0_i32 : i32 to vector<2x1x1x8xi32>
    %39 = arith.cmpi ne, %37, %38 : vector<2x1x1x8xi32>
    %40 = tpu.iota {dimensions = array<i32: 1>} : vector<1x8xi32>
    %c0_i32_17 = arith.constant 0 : i32
    %41 = vector.broadcast %c0_i32_17 : i32 to vector<1x8xi32>
    %42 = arith.addi %41, %40 : vector<1x8xi32>
    %43 = vector.broadcast %42 : vector<1x8xi32> to vector<8x8xi32>
    %44 = vector.broadcast %31 : vector<8x1xi32> to vector<8x8xi32>
    %45 = arith.cmpi sgt, %43, %44 : vector<8x8xi32>
    %46 = vector.shape_cast %45 : vector<8x8xi1> to vector<1x1x8x8xi1>
    %47 = vector.broadcast %39 : vector<2x1x1x8xi1> to vector<2x1x8x8xi1>
    %48 = vector.broadcast %46 : vector<1x1x8x8xi1> to vector<2x1x8x8xi1>
    %49 = arith.ori %47, %48 : vector<2x1x8x8xi1>
    %cst_18 = arith.constant -1.000000e+30 : f32
    %50 = vector.shape_cast %49 : vector<2x1x8x8xi1> to vector<2x1x8x8xi1>
    %51 = vector.broadcast %50 : vector<2x1x8x8xi1> to vector<2x2x8x8xi1>
    %52 = vector.broadcast %cst_18 : f32 to vector<2x2x8x8xf32>
    %53 = arith.select %51, %52, %36 : vector<2x2x8x8xi1>, vector<2x2x8x8xf32>
    %cst_19 = arith.constant dense<0xFF800000> : vector<2x2x8xf32>
    %54 = vector.multi_reduction <maximumf>, %53, %cst_19 [3] : vector<2x2x8x8xf32> to vector<2x2x8xf32>
    %55 = vector.shape_cast %54 : vector<2x2x8xf32> to vector<2x2x8x1xf32>
    %56 = arith.maximumf %32, %55 : vector<2x2x8x1xf32>
    %57 = arith.subf %32, %56 : vector<2x2x8x1xf32>
    %58 = math.exp %57 : vector<2x2x8x1xf32>
    %59 = vector.broadcast %56 : vector<2x2x8x1xf32> to vector<2x2x8x8xf32>
    %60 = arith.subf %53, %59 : vector<2x2x8x8xf32>
    %61 = math.exp %60 : vector<2x2x8x8xf32>
    %62 = arith.mulf %58, %33 : vector<2x2x8x1xf32>
    %cst_20 = arith.constant dense<0.000000e+00> : vector<2x2x8xf32>
    %63 = vector.multi_reduction <add>, %61, %cst_20 [3] : vector<2x2x8x8xf32> to vector<2x2x8xf32>
    %64 = vector.shape_cast %63 : vector<2x2x8xf32> to vector<2x2x8x1xf32>
    %65 = arith.addf %62, %64 : vector<2x2x8x1xf32>
    %66 = vector.shape_cast %61 : vector<2x2x8x8xf32> to vector<4x8x8xf32>
    %67 = arith.truncf %66 : vector<4x8x8xf32> to vector<4x8x8xbf16>
    "tpu.trace_start"() <{level = 10 : i32, message = "nqk,nkd->nqd"}> : () -> ()
    %cst_21 = arith.constant dense<0.000000e+00> : vector<4x8x128xf32>
    %68 = tpu.matmul %67, %30, %cst_21 {dimension_numbers = #tpu.dot_dimension_numbers<[2], [1], [1], [2], [0, 0, 0, 1, 1, 2], [0], [0]>} : vector<4x8x8xbf16>, vector<4x8x128xbf16>, vector<4x8x128xf32> -> vector<4x8x128xf32>
    "tpu.trace_stop"() : () -> ()
    %69 = vector.broadcast %58 : vector<2x2x8x1xf32> to vector<2x2x8x128xf32>
    %70 = arith.mulf %69, %34 : vector<2x2x8x128xf32>
    %71 = vector.shape_cast %68 : vector<4x8x128xf32> to vector<2x2x8x128xf32>
    %72 = arith.addf %70, %71 : vector<2x2x8x128xf32>
    %73 = tpu.reciprocal %65 {approx = true} : vector<2x2x8x1xf32> -> vector<2x2x8x1xf32>
    %74 = vector.broadcast %73 : vector<2x2x8x1xf32> to vector<2x2x8x128xf32>
    %75 = arith.mulf %72, %74 : vector<2x2x8x128xf32>
    %76 = tpu.transpose %75, [0, 2, 1, 3] : vector<2x2x8x128xf32> -> vector<2x8x2x128xf32>
    %77 = vector.shape_cast %76 : vector<2x8x2x128xf32> to vector<16x256xf32>
    %78 = arith.truncf %77 : vector<16x256xf32> to vector<16x256xbf16>
    %cst_22 = arith.constant dense<0.000000e+00> : vector<16x256xf32>
    %79 = tpu.matmul %78, %18, %cst_22 {dimension_numbers = #tpu.dot_dimension_numbers<[1], [0], [0], [1], [0, 0, 1, 1], [], []>} : vector<16x256xbf16>, vector<256x256xbf16>, vector<16x256xf32> -> vector<16x256xf32>
    %80 = arith.addf %2, %79 : vector<16x256xf32>
    %c0_23 = arith.constant 0 : index
    %c0_24 = arith.constant 0 : index
    %81 = vector.load %arg7[%c0_23, %c0_24] : memref<1x256xf32, #tpu.memory_space<vmem>>, vector<1x256xf32>
    %c0_25 = arith.constant 0 : index
    %c0_26 = arith.constant 0 : index
    %82 = vector.load %arg8[%c0_25, %c0_26] : memref<1x256xf32, #tpu.memory_space<vmem>>, vector<1x256xf32>
    %cst_27 = arith.constant dense<0.000000e+00> : vector<16xf32>
    %83 = vector.multi_reduction <add>, %80, %cst_27 [1] : vector<16x256xf32> to vector<16xf32>
    %84 = vector.shape_cast %83 : vector<16xf32> to vector<16x1xf32>
    %cst_28 = arith.constant 2.560000e+02 : f32
    %85 = vector.broadcast %cst_28 : f32 to vector<16x1xf32>
    %86 = arith.divf %84, %85 : vector<16x1xf32>
    %87 = vector.broadcast %86 : vector<16x1xf32> to vector<16x256xf32>
    %88 = arith.subf %80, %87 : vector<16x256xf32>
    %89 = arith.mulf %88, %88 : vector<16x256xf32>
    %cst_29 = arith.constant dense<0.000000e+00> : vector<16xf32>
    %90 = vector.multi_reduction <add>, %89, %cst_29 [1] : vector<16x256xf32> to vector<16xf32>
    %91 = vector.shape_cast %90 : vector<16xf32> to vector<16x1xf32>
    %cst_30 = arith.constant 2.560000e+02 : f32
    %92 = vector.broadcast %cst_30 : f32 to vector<16x1xf32>
    %93 = arith.divf %91, %92 : vector<16x1xf32>
    %94 = vector.broadcast %86 : vector<16x1xf32> to vector<16x256xf32>
    %95 = arith.subf %80, %94 : vector<16x256xf32>
    %cst_31 = arith.constant 9.99999974E-6 : f32
    %96 = vector.broadcast %cst_31 : f32 to vector<16x1xf32>
    %97 = arith.addf %93, %96 : vector<16x1xf32>
    %98 = math.rsqrt %97 : vector<16x1xf32>
    %99 = vector.broadcast %98 : vector<16x1xf32> to vector<16x256xf32>
    %100 = arith.mulf %95, %99 : vector<16x256xf32>
    %101 = vector.broadcast %81 : vector<1x256xf32> to vector<16x256xf32>
    %102 = arith.mulf %100, %101 : vector<16x256xf32>
    %103 = vector.broadcast %82 : vector<1x256xf32> to vector<16x256xf32>
    %104 = arith.addf %102, %103 : vector<16x256xf32>
    %105 = arith.truncf %104 : vector<16x256xf32> to vector<16x256xbf16>
    %c0_32 = arith.constant 0 : index
    %c0_33 = arith.constant 0 : index
    %106 = vector.load %arg9[%c0_32, %c0_33] : memref<256x256xbf16, #tpu.memory_space<vmem>>, vector<256x256xbf16>
    %cst_34 = arith.constant dense<0.000000e+00> : vector<16x256xf32>
    %107 = tpu.matmul %105, %106, %cst_34 {dimension_numbers = #tpu.dot_dimension_numbers<[1], [0], [0], [1], [0, 0, 1, 1], [], []>} : vector<16x256xbf16>, vector<256x256xbf16>, vector<16x256xf32> -> vector<16x256xf32>
    %cst_35 = arith.constant 0.0883883461 : f32
    %108 = vector.broadcast %cst_35 : f32 to vector<16x256xf32>
    %109 = arith.mulf %107, %108 : vector<16x256xf32>
    %110 = vector.shape_cast %109 : vector<16x256xf32> to vector<2x8x256xf32>
    %c0_36 = arith.constant 0 : index
    %c0_37 = arith.constant 0 : index
    %c0_38 = arith.constant 0 : index
    %111 = vector.load %arg2[%c0_36, %c0_37, %c0_38] : memref<2x16x256xbf16, #tpu.memory_space<vmem>>, vector<2x16x256xbf16>
    %112 = vector.shape_cast %111 : vector<2x16x256xbf16> to vector<32x256xbf16>
    %c0_39 = arith.constant 0 : index
    %c0_40 = arith.constant 0 : index
    %113 = vector.load %arg10[%c0_39, %c0_40] : memref<256x512xbf16, #tpu.memory_space<vmem>>, vector<256x512xbf16>
    %cst_41 = arith.constant dense<0.000000e+00> : vector<32x512xf32>
    %114 = tpu.matmul %112, %113, %cst_41 {dimension_numbers = #tpu.dot_dimension_numbers<[1], [0], [0], [1], [0, 0, 1, 1], [], []>} : vector<32x256xbf16>, vector<256x512xbf16>, vector<32x512xf32> -> vector<32x512xf32>
    %115 = vector.extract_strided_slice %114 {offsets = [0, 0], sizes = [32, 256], strides = [1, 1]} : vector<32x512xf32> to vector<32x256xf32>
    %116 = vector.shape_cast %115 : vector<32x256xf32> to vector<2x16x256xf32>
    %117 = vector.extract_strided_slice %114 {offsets = [0, 256], sizes = [32, 256], strides = [1, 1]} : vector<32x512xf32> to vector<32x256xf32>
    %118 = vector.shape_cast %117 : vector<32x256xf32> to vector<2x16x256xf32>
    %c0_42 = arith.constant 0 : index
    %c0_43 = arith.constant 0 : index
    %119 = vector.load %arg11[%c0_42, %c0_43] : memref<256x256xbf16, #tpu.memory_space<vmem>>, vector<256x256xbf16>
    %120 = vector.shape_cast %110 : vector<2x8x256xf32> to vector<2x8x2x128xf32>
    %121 = tpu.transpose %120, [0, 2, 1, 3] : vector<2x8x2x128xf32> -> vector<2x2x8x128xf32>
    %122 = vector.shape_cast %121 : vector<2x2x8x128xf32> to vector<4x8x128xf32>
    %123 = arith.truncf %122 : vector<4x8x128xf32> to vector<4x8x128xbf16>
    %124 = vector.shape_cast %116 : vector<2x16x256xf32> to vector<2x16x2x128xf32>
    %125 = tpu.transpose %124, [0, 2, 1, 3] : vector<2x16x2x128xf32> -> vector<2x2x16x128xf32>
    %126 = vector.shape_cast %125 : vector<2x2x16x128xf32> to vector<4x16x128xf32>
    %127 = arith.truncf %126 : vector<4x16x128xf32> to vector<4x16x128xbf16>
    %128 = vector.shape_cast %118 : vector<2x16x256xf32> to vector<2x16x2x128xf32>
    %129 = tpu.transpose %128, [0, 2, 1, 3] : vector<2x16x2x128xf32> -> vector<2x2x16x128xf32>
    %130 = vector.shape_cast %129 : vector<2x2x16x128xf32> to vector<4x16x128xf32>
    %131 = arith.truncf %130 : vector<4x16x128xf32> to vector<4x16x128xbf16>
    %cst_44 = arith.constant 0xFF800000 : f32
    %132 = vector.broadcast %cst_44 : f32 to vector<2x2x8x1xf32>
    %cst_45 = arith.constant 0.000000e+00 : f32
    %133 = vector.broadcast %cst_45 : f32 to vector<2x2x8x1xf32>
    %cst_46 = arith.constant 0.000000e+00 : f32
    %134 = vector.broadcast %cst_46 : f32 to vector<2x2x8x128xf32>
    "tpu.trace_start"() <{level = 10 : i32, message = "nqd,nkd->nqk"}> : () -> ()
    %cst_47 = arith.constant dense<0.000000e+00> : vector<4x8x16xf32>
    %135 = tpu.matmul %123, %127, %cst_47 {dimension_numbers = #tpu.dot_dimension_numbers<[2], [2], [1], [1], [0, 0, 0, 1, 1, 1], [0], [0]>} : vector<4x8x128xbf16>, vector<4x16x128xbf16>, vector<4x8x16xf32> -> vector<4x8x16xf32>
    "tpu.trace_stop"() : () -> ()
    %136 = vector.shape_cast %135 : vector<4x8x16xf32> to vector<2x2x8x16xf32>
    %137 = vector.shape_cast %6 : vector<2x16xi32> to vector<2x1x1x16xi32>
    %c0_i32_48 = arith.constant 0 : i32
    %138 = vector.broadcast %c0_i32_48 : i32 to vector<2x1x1x16xi32>
    %139 = arith.cmpi ne, %137, %138 : vector<2x1x1x16xi32>
    %cst_49 = arith.constant -1.000000e+30 : f32
    %140 = vector.shape_cast %139 : vector<2x1x1x16xi1> to vector<2x1x1x16xi1>
    %141 = vector.broadcast %140 : vector<2x1x1x16xi1> to vector<2x2x8x16xi1>
    %142 = vector.broadcast %cst_49 : f32 to vector<2x2x8x16xf32>
    %143 = arith.select %141, %142, %136 : vector<2x2x8x16xi1>, vector<2x2x8x16xf32>
    %cst_50 = arith.constant dense<0xFF800000> : vector<2x2x8xf32>
    %144 = vector.multi_reduction <maximumf>, %143, %cst_50 [3] : vector<2x2x8x16xf32> to vector<2x2x8xf32>
    %145 = vector.shape_cast %144 : vector<2x2x8xf32> to vector<2x2x8x1xf32>
    %146 = arith.maximumf %132, %145 : vector<2x2x8x1xf32>
    %147 = arith.subf %132, %146 : vector<2x2x8x1xf32>
    %148 = math.exp %147 : vector<2x2x8x1xf32>
    %149 = vector.broadcast %146 : vector<2x2x8x1xf32> to vector<2x2x8x16xf32>
    %150 = arith.subf %143, %149 : vector<2x2x8x16xf32>
    %151 = math.exp %150 : vector<2x2x8x16xf32>
    %152 = arith.mulf %148, %133 : vector<2x2x8x1xf32>
    %cst_51 = arith.constant dense<0.000000e+00> : vector<2x2x8xf32>
    %153 = vector.multi_reduction <add>, %151, %cst_51 [3] : vector<2x2x8x16xf32> to vector<2x2x8xf32>
    %154 = vector.shape_cast %153 : vector<2x2x8xf32> to vector<2x2x8x1xf32>
    %155 = arith.addf %152, %154 : vector<2x2x8x1xf32>
    %156 = vector.shape_cast %151 : vector<2x2x8x16xf32> to vector<4x8x16xf32>
    %157 = arith.truncf %156 : vector<4x8x16xf32> to vector<4x8x16xbf16>
    "tpu.trace_start"() <{level = 10 : i32, message = "nqk,nkd->nqd"}> : () -> ()
    %cst_52 = arith.constant dense<0.000000e+00> : vector<4x8x128xf32>
    %158 = tpu.matmul %157, %131, %cst_52 {dimension_numbers = #tpu.dot_dimension_numbers<[2], [1], [1], [2], [0, 0, 0, 1, 1, 2], [0], [0]>} : vector<4x8x16xbf16>, vector<4x16x128xbf16>, vector<4x8x128xf32> -> vector<4x8x128xf32>
    "tpu.trace_stop"() : () -> ()
    %159 = vector.broadcast %148 : vector<2x2x8x1xf32> to vector<2x2x8x128xf32>
    %160 = arith.mulf %159, %134 : vector<2x2x8x128xf32>
    %161 = vector.shape_cast %158 : vector<4x8x128xf32> to vector<2x2x8x128xf32>
    %162 = arith.addf %160, %161 : vector<2x2x8x128xf32>
    %163 = tpu.reciprocal %155 {approx = true} : vector<2x2x8x1xf32> -> vector<2x2x8x1xf32>
    %164 = vector.broadcast %163 : vector<2x2x8x1xf32> to vector<2x2x8x128xf32>
    %165 = arith.mulf %162, %164 : vector<2x2x8x128xf32>
    %166 = tpu.transpose %165, [0, 2, 1, 3] : vector<2x2x8x128xf32> -> vector<2x8x2x128xf32>
    %167 = vector.shape_cast %166 : vector<2x8x2x128xf32> to vector<16x256xf32>
    %168 = arith.truncf %167 : vector<16x256xf32> to vector<16x256xbf16>
    %cst_53 = arith.constant dense<0.000000e+00> : vector<16x256xf32>
    %169 = tpu.matmul %168, %119, %cst_53 {dimension_numbers = #tpu.dot_dimension_numbers<[1], [0], [0], [1], [0, 0, 1, 1], [], []>} : vector<16x256xbf16>, vector<256x256xbf16>, vector<16x256xf32> -> vector<16x256xf32>
    %170 = arith.addf %104, %169 : vector<16x256xf32>
    %c0_54 = arith.constant 0 : index
    %c0_55 = arith.constant 0 : index
    %171 = vector.load %arg12[%c0_54, %c0_55] : memref<1x256xf32, #tpu.memory_space<vmem>>, vector<1x256xf32>
    %c0_56 = arith.constant 0 : index
    %c0_57 = arith.constant 0 : index
    %172 = vector.load %arg13[%c0_56, %c0_57] : memref<1x256xf32, #tpu.memory_space<vmem>>, vector<1x256xf32>
    %cst_58 = arith.constant dense<0.000000e+00> : vector<16xf32>
    %173 = vector.multi_reduction <add>, %170, %cst_58 [1] : vector<16x256xf32> to vector<16xf32>
    %174 = vector.shape_cast %173 : vector<16xf32> to vector<16x1xf32>
    %cst_59 = arith.constant 2.560000e+02 : f32
    %175 = vector.broadcast %cst_59 : f32 to vector<16x1xf32>
    %176 = arith.divf %174, %175 : vector<16x1xf32>
    %177 = vector.broadcast %176 : vector<16x1xf32> to vector<16x256xf32>
    %178 = arith.subf %170, %177 : vector<16x256xf32>
    %179 = arith.mulf %178, %178 : vector<16x256xf32>
    %cst_60 = arith.constant dense<0.000000e+00> : vector<16xf32>
    %180 = vector.multi_reduction <add>, %179, %cst_60 [1] : vector<16x256xf32> to vector<16xf32>
    %181 = vector.shape_cast %180 : vector<16xf32> to vector<16x1xf32>
    %cst_61 = arith.constant 2.560000e+02 : f32
    %182 = vector.broadcast %cst_61 : f32 to vector<16x1xf32>
    %183 = arith.divf %181, %182 : vector<16x1xf32>
    %184 = vector.broadcast %176 : vector<16x1xf32> to vector<16x256xf32>
    %185 = arith.subf %170, %184 : vector<16x256xf32>
    %cst_62 = arith.constant 9.99999974E-6 : f32
    %186 = vector.broadcast %cst_62 : f32 to vector<16x1xf32>
    %187 = arith.addf %183, %186 : vector<16x1xf32>
    %188 = math.rsqrt %187 : vector<16x1xf32>
    %189 = vector.broadcast %188 : vector<16x1xf32> to vector<16x256xf32>
    %190 = arith.mulf %185, %189 : vector<16x256xf32>
    %191 = vector.broadcast %171 : vector<1x256xf32> to vector<16x256xf32>
    %192 = arith.mulf %190, %191 : vector<16x256xf32>
    %193 = vector.broadcast %172 : vector<1x256xf32> to vector<16x256xf32>
    %194 = arith.addf %192, %193 : vector<16x256xf32>
    %195 = arith.truncf %194 : vector<16x256xf32> to vector<16x256xbf16>
    %cst_63 = arith.constant 0.000000e+00 : f32
    %196 = vector.broadcast %cst_63 : f32 to vector<16x256xf32>
    %c0_64 = arith.constant 0 : index
    %c0_65 = arith.constant 0 : index
    %197 = vector.load %arg14[%c0_64, %c0_65] : memref<256x512xbf16, #tpu.memory_space<vmem>>, vector<256x512xbf16>
    %cst_66 = arith.constant dense<0.000000e+00> : vector<16x512xf32>
    %198 = tpu.matmul %195, %197, %cst_66 {dimension_numbers = #tpu.dot_dimension_numbers<[1], [0], [0], [1], [0, 0, 1, 1], [], []>} : vector<16x256xbf16>, vector<256x512xbf16>, vector<16x512xf32> -> vector<16x512xf32>
    %c0_67 = arith.constant 0 : index
    %c0_68 = arith.constant 0 : index
    %199 = vector.load %arg15[%c0_67, %c0_68] : memref<1x512xf32, #tpu.memory_space<vmem>>, vector<1x512xf32>
    %200 = vector.broadcast %199 : vector<1x512xf32> to vector<16x512xf32>
    %201 = arith.addf %198, %200 : vector<16x512xf32>
    %cst_69 = arith.constant 0.000000e+00 : f32
    %202 = vector.broadcast %cst_69 : f32 to vector<16x512xf32>
    %203 = arith.maximumf %201, %202 : vector<16x512xf32>
    %204 = arith.truncf %203 : vector<16x512xf32> to vector<16x512xbf16>
    %c0_70 = arith.constant 0 : index
    %c0_71 = arith.constant 0 : index
    %205 = vector.load %arg16[%c0_70, %c0_71] : memref<512x256xbf16, #tpu.memory_space<vmem>>, vector<512x256xbf16>
    %cst_72 = arith.constant dense<0.000000e+00> : vector<16x256xf32>
    %206 = tpu.matmul %204, %205, %cst_72 {dimension_numbers = #tpu.dot_dimension_numbers<[1], [0], [0], [1], [0, 0, 1, 1], [], []>} : vector<16x512xbf16>, vector<512x256xbf16>, vector<16x256xf32> -> vector<16x256xf32>
    %207 = arith.addf %196, %206 : vector<16x256xf32>
    %c0_73 = arith.constant 0 : index
    %c0_74 = arith.constant 0 : index
    %208 = vector.load %arg17[%c0_73, %c0_74] : memref<1x256xf32, #tpu.memory_space<vmem>>, vector<1x256xf32>
    %209 = vector.broadcast %208 : vector<1x256xf32> to vector<16x256xf32>
    %210 = arith.addf %207, %209 : vector<16x256xf32>
    %211 = arith.addf %194, %210 : vector<16x256xf32>
    %c0_75 = arith.constant 0 : index
    %c0_76 = arith.constant 0 : index
    %212 = vector.load %arg18[%c0_75, %c0_76] : memref<1x256xf32, #tpu.memory_space<vmem>>, vector<1x256xf32>
    %c0_77 = arith.constant 0 : index
    %c0_78 = arith.constant 0 : index
    %213 = vector.load %arg19[%c0_77, %c0_78] : memref<1x256xf32, #tpu.memory_space<vmem>>, vector<1x256xf32>
    %cst_79 = arith.constant dense<0.000000e+00> : vector<16xf32>
    %214 = vector.multi_reduction <add>, %211, %cst_79 [1] : vector<16x256xf32> to vector<16xf32>
    %215 = vector.shape_cast %214 : vector<16xf32> to vector<16x1xf32>
    %cst_80 = arith.constant 2.560000e+02 : f32
    %216 = vector.broadcast %cst_80 : f32 to vector<16x1xf32>
    %217 = arith.divf %215, %216 : vector<16x1xf32>
    %218 = vector.broadcast %217 : vector<16x1xf32> to vector<16x256xf32>
    %219 = arith.subf %211, %218 : vector<16x256xf32>
    %220 = arith.mulf %219, %219 : vector<16x256xf32>
    %cst_81 = arith.constant dense<0.000000e+00> : vector<16xf32>
    %221 = vector.multi_reduction <add>, %220, %cst_81 [1] : vector<16x256xf32> to vector<16xf32>
    %222 = vector.shape_cast %221 : vector<16xf32> to vector<16x1xf32>
    %cst_82 = arith.constant 2.560000e+02 : f32
    %223 = vector.broadcast %cst_82 : f32 to vector<16x1xf32>
    %224 = arith.divf %222, %223 : vector<16x1xf32>
    %225 = vector.broadcast %217 : vector<16x1xf32> to vector<16x256xf32>
    %226 = arith.subf %211, %225 : vector<16x256xf32>
    %cst_83 = arith.constant 9.99999974E-6 : f32
    %227 = vector.broadcast %cst_83 : f32 to vector<16x1xf32>
    %228 = arith.addf %224, %227 : vector<16x1xf32>
    %229 = math.rsqrt %228 : vector<16x1xf32>
    %230 = vector.broadcast %229 : vector<16x1xf32> to vector<16x256xf32>
    %231 = arith.mulf %226, %230 : vector<16x256xf32>
    %232 = vector.broadcast %212 : vector<1x256xf32> to vector<16x256xf32>
    %233 = arith.mulf %231, %232 : vector<16x256xf32>
    %234 = vector.broadcast %213 : vector<1x256xf32> to vector<16x256xf32>
    %235 = arith.addf %233, %234 : vector<16x256xf32>
    %236 = vector.shape_cast %235 : vector<16x256xf32> to vector<2x8x256xf32>
    %237 = arith.truncf %236 : vector<2x8x256xf32> to vector<2x8x256xbf16>
    %c0_84 = arith.constant 0 : index
    %c0_85 = arith.constant 0 : index
    %c0_86 = arith.constant 0 : index
    %238 = vector.load %arg20[%c0_84, %c0_85, %c0_86] : memref<2x8x256xbf16, #tpu.memory_space<vmem>>, vector<2x8x256xbf16>
    tpu.vector_store %arg20[%c0_84, %c0_85, %c0_86], %237 {strides = array<i32>} : memref<2x8x256xbf16, #tpu.memory_space<vmem>>, vector<2x8x256xbf16>,
    return
  }
  func.func @transform_0(%arg0: i32) -> (i32, i32, i32) {
    %c0_i32 = arith.constant 0 : i32
    %c0_i32_0 = arith.constant 0 : i32
    %c0_i32_1 = arith.constant 0 : i32
    return %arg0, %c0_i32, %c0_i32_0 : i32, i32, i32
  }
  func.func @transform_1(%arg0: i32) -> (i32, i32, i32) {
    %c0_i32 = arith.constant 0 : i32
    %c0_i32_0 = arith.constant 0 : i32
    %c0_i32_1 = arith.constant 0 : i32
    return %arg0, %c0_i32, %c0_i32_0 : i32, i32, i32
  }
  func.func @transform_2(%arg0: i32) -> (i32, i32, i32) {
    %c0_i32 = arith.constant 0 : i32
    %c0_i32_0 = arith.constant 0 : i32
    %c0_i32_1 = arith.constant 0 : i32
    return %arg0, %c0_i32, %c0_i32_0 : i32, i32, i32
  }
  func.func @transform_3(%arg0: i32) -> (i32, i32, i32) {
    %c0_i32 = arith.constant 0 : i32
    %c0_i32_0 = arith.constant 0 : i32
    %c0_i32_1 = arith.constant 0 : i32
    return %arg0, %c0_i32, %c0_i32_0 : i32, i32, i32
  }
  func.func @transform_4(%arg0: i32) -> (i32, i32) {
    %c0_i32 = arith.constant 0 : i32
    %c0_i32_0 = arith.constant 0 : i32
    %c0_i32_1 = arith.constant 0 : i32
    return %c0_i32, %c0_i32_0 : i32, i32
  }
  func.func @transform_5(%arg0: i32) -> (i32, i32) {
    %c0_i32 = arith.constant 0 : i32
    %c0_i32_0 = arith.constant 0 : i32
    %c0_i32_1 = arith.constant 0 : i32
    return %c0_i32, %c0_i32_0 : i32, i32
  }
  func.func @transform_6(%arg0: i32) -> (i32, i32) {
    %c0_i32 = arith.constant 0 : i32
    %c0_i32_0 = arith.constant 0 : i32
    %c0_i32_1 = arith.constant 0 : i32
    return %c0_i32, %c0_i32_0 : i32, i32
  }
  func.func @transform_7(%arg0: i32) -> (i32, i32) {
    %c0_i32 = arith.constant 0 : i32
    %c0_i32_0 = arith.constant 0 : i32
    %c0_i32_1 = arith.constant 0 : i32
    return %c0_i32, %c0_i32_0 : i32, i32
  }
  func.func @transform_8(%arg0: i32) -> (i32, i32) {
    %c0_i32 = arith.constant 0 : i32
    %c0_i32_0 = arith.constant 0 : i32
    %c0_i32_1 = arith.constant 0 : i32
    return %c0_i32, %c0_i32_0 : i32, i32
  }
  func.func @transform_9(%arg0: i32) -> (i32, i32) {
    %c0_i32 = arith.constant 0 : i32
    %c0_i32_0 = arith.constant 0 : i32
    %c0_i32_1 = arith.constant 0 : i32
    return %c0_i32, %c0_i32_0 : i32, i32
  }
  func.func @transform_10(%arg0: i32) -> (i32, i32) {
    %c0_i32 = arith.constant 0 : i32
    %c0_i32_0 = arith.constant 0 : i32
    %c0_i32_1 = arith.constant 0 : i32
    return %c0_i32, %c0_i32_0 : i32, i32
  }
  func.func @transform_11(%arg0: i32) -> (i32, i32) {
    %c0_i32 = arith.constant 0 : i32
    %c0_i32_0 = arith.constant 0 : i32
    %c0_i32_1 = arith.constant 0 : i32
    return %c0_i32, %c0_i32_0 : i32, i32
  }
  func.func @transform_12(%arg0: i32) -> (i32, i32) {
    %c0_i32 = arith.constant 0 : i32
    %c0_i32_0 = arith.constant 0 : i32
    %c0_i32_1 = arith.constant 0 : i32
    return %c0_i32, %c0_i32_0 : i32, i32
  }
  func.func @transform_13(%arg0: i32) -> (i32, i32) {
    %c0_i32 = arith.constant 0 : i32
    %c0_i32_0 = arith.constant 0 : i32
    %c0_i32_1 = arith.constant 0 : i32
    return %c0_i32, %c0_i32_0 : i32, i32
  }
  func.func @transform_14(%arg0: i32) -> (i32, i32) {
    %c0_i32 = arith.constant 0 : i32
    %c0_i32_0 = arith.constant 0 : i32
    %c0_i32_1 = arith.constant 0 : i32
    return %c0_i32, %c0_i32_0 : i32, i32
  }
  func.func @transform_15(%arg0: i32) -> (i32, i32) {
    %c0_i32 = arith.constant 0 : i32
    %c0_i32_0 = arith.constant 0 : i32
    %c0_i32_1 = arith.constant 0 : i32
    return %c0_i32, %c0_i32_0 : i32, i32
  }
  func.func @transform_16(%arg0: i32) -> (i32, i32) {
    %c0_i32 = arith.constant 0 : i32
    %c0_i32_0 = arith.constant 0 : i32
    %c0_i32_1 = arith.constant 0 : i32
    return %c0_i32, %c0_i32_0 : i32, i32
  }
  func.func @transform_17(%arg0: i32) -> (i32, i32) {
    %c0_i32 = arith.constant 0 : i32
    %c0_i32_0 = arith.constant 0 : i32
    %c0_i32_1 = arith.constant 0 : i32
    return %c0_i32, %c0_i32_0 : i32, i32
  }
  func.func @transform_18(%arg0: i32) -> (i32, i32) {
    %c0_i32 = arith.constant 0 : i32
    %c0_i32_0 = arith.constant 0 : i32
    %c0_i32_1 = arith.constant 0 : i32
    return %c0_i32, %c0_i32_0 : i32, i32
  }
  func.func @transform_19(%arg0: i32) -> (i32, i32, i32) {
    %c0_i32 = arith.constant 0 : i32
    %c0_i32_0 = arith.constant 0 : i32
    %c0_i32_1 = arith.constant 0 : i32
    return %arg0, %c0_i32, %c0_i32_0 : i32, i32, i32
  }
}

</mosaic_0001>

<bundles_post_ra>
// kernel: tpu_custom_call.1
= control target key start
LH: loop header
LB: loop body
LE: loop exit
PB: predicated region body
PF: predicated region fallthrough
CT: control target
= control target key end

     0   :  { %s11238_s0 = inlined_call_operand.hbm [shape: bf16[4,8,256], index: 0, kind: input, shape index: {}]   ;;  %s11239_s1 = inlined_call_operand.hbm [shape: bf16[4,16,256], index: 1, kind: input, shape index: {}]   ;;  %s11240_s2 = inlined_call_operand.hbm [shape: s32[4,1,8], index: 2, kind: input, shape index: {}]   ;;  %s11241_s3 = inlined_call_operand.hbm [shape: s32[4,1,16], index: 3, kind: input, shape index: {}]   ;;  %s11242_s4 = inlined_call_operand.hbm [shape: bf16[256,768], index: 4, kind: input, shape index: {}]   ;;  %s11243_s5 = inlined_call_operand.hbm [shape: bf16[256,256], index: 5, kind: input, shape index: {}]   ;;  %s11244_s6 = inlined_call_operand.hbm [shape: f32[1,256], index: 6, kind: input, shape index: {}]   ;;  %s11245_s7 = inlined_call_operand.hbm [shape: f32[1,256], index: 7, kind: input, shape index: {}]   ;;  %s11246_s8 = inlined_call_operand.hbm [shape: bf16[256,256], index: 8, kind: input, shape index: {}]   ;;  %s11247_s9 = inlined_call_operand.hbm [shape: bf16[256,512], index: 9, kind: input, shape index: {}]   ;;  %s11248_s10 = inlined_call_operand.hbm [shape: bf16[256,256], index: 10, kind: input, shape index: {}]   ;;  %s11249_s11 = inlined_call_operand.hbm [shape: f32[1,256], index: 11, kind: input, shape index: {}]   ;;  %s11250_s12 = inlined_call_operand.hbm [shape: f32[1,256], index: 12, kind: input, shape index: {}]   ;;  %s11251_s13 = inlined_call_operand.hbm [shape: bf16[256,512], index: 13, kind: input, shape index: {}]   ;;  %s11252_s14 = inlined_call_operand.hbm [shape: f32[1,512], index: 14, kind: input, shape index: {}]   ;;  %s11253_s15 = inlined_call_operand.hbm [shape: bf16[512,256], index: 15, kind: input, shape index: {}]   ;;  %s11254_s16 = inlined_call_operand.hbm [shape: f32[1,256], index: 16, kind: input, shape index: {}]   ;;  %s11255_s17 = inlined_call_operand.hbm [shape: f32[1,256], index: 17, kind: input, shape index: {}]   ;;  %s11256_s18 = inlined_call_operand.hbm [shape: f32[1,256], index: 18, kind: input, shape index: {}]   ;;  %s11257_s19 = inlined_call_operand.hbm [shape: bf16[4,8,256], index: 19, kind: output, shape index: {}]  }
   0x1   :  { %11293 = sst [smem:[#allocation48_spill]] %s11238_s0 }
   0x2   :  { %11294 = sst [smem:[#allocation49_spill]] %s11239_s1 }
   0x3   :  { %11295 = sst [smem:[#allocation50_spill]] %s11240_s2 }
   0x4   :  { %11296 = sst [smem:[#allocation51_spill]] %s11241_s3 }
   0x5   :  { %11297 = sst [smem:[#allocation52_spill]] %s11242_s4 }
   0x6   :  { %11298 = sst [smem:[#allocation53_spill]] %s11243_s5 }
   0x7   :  { %11299 = sst [smem:[#allocation54_spill]] %s11244_s6 }
   0x8   :  { %11300 = sst [smem:[#allocation55_spill]] %s11245_s7 }
   0x9   :  { %11301 = sst [smem:[#allocation56_spill]] %s11246_s8 }
   0xa   :  { %11302 = sst [smem:[#allocation57_spill]] %s11247_s9 }
   0xb   :  { %11303 = sst [smem:[#allocation58_spill]] %s11248_s10 }
   0xc   :  { %11304 = sst [smem:[#allocation59_spill]] %s11249_s11 }
   0xd   :  { %11305 = sst [smem:[#allocation60_spill]] %s11250_s12 }
   0xe   :  { %11306 = sst [smem:[#allocation61_spill]] %s11251_s13 }
   0xf   :  { %11307 = sst [smem:[#allocation62_spill]] %s11252_s14 }
  0x10   :  { %11308 = sst [smem:[#allocation63_spill]] %s11253_s15 }
  0x11   :  { %11309 = sst [smem:[#allocation64_spill]] %s11254_s16 }
  0x12   :  { %11310 = sst [smem:[#allocation65_spill]] %s11255_s17 }
  0x13   :  { %11311 = sst [smem:[#allocation66_spill]] %s11256_s18 }
  0x14   :  { %11312 = sst [smem:[#allocation67_spill]] %s11257_s19 }
  0x15   :  { %24 = vsyncpa [#allocation3], 0 }
  0x16   :  { %26 = vsyncpa [#allocation3 + $0x1], 0 }
  0x17   :  { %27 = vsyncpa [#allocation6], 0 }
  0x18   :  { %29 = vsyncpa [#allocation6 + $0x1], 0 }
  0x19   :  { %30 = vsyncpa [#allocation9], 0 }
  0x1a   :  { %32 = vsyncpa [#allocation9 + $0x1], 0 }
  0x1b   :  { %33 = vsyncpa [#allocation12], 0 }
  0x1c   :  { %34 = vsyncpa [#allocation15], 0 }
  0x1d   :  { %35 = vsyncpa [#allocation18], 0 }
  0x1e   :  { %36 = vsyncpa [#allocation21], 0 }
  0x1f   :  { %37 = vsyncpa [#allocation24], 0 }
  0x20   :  { %38 = vsyncpa [#allocation27], 0 }
  0x21   :  { %39 = vsyncpa [#allocation30], 0 }
  0x22   :  { %40 = vsyncpa [#allocation4], 0 }
  0x23   :  { %42 = vsyncpa [#allocation4 + $0x1], 0  ;;  %s9919_s0 = smov 0   ;;  %s9921_s30 = smov 0  }
  0x24   :  { %s9923_s20 = smov 0   ;;  %s9925_s21 = smov 0  }
  0x25 LB: > { %11313 = sst [smem:[#allocation45_spill]] %s9779_s20  ;;  %s9785_s1 = smov [#allocation10]   ;;  %s9783_s21 = sphi %s9925_s21, %s11380_s21   ;;  %s9779_s20 = sphi %s9923_s20, %s11377_s20   ;;  %s9775_s30 = sphi %s9921_s30, %s11379_s30   ;;  %s9771_s0 = sphi %s9919_s0, %s11378_s0  }
  0x26   : > { %s510_s22 = sshll.u32 %s9785_s1, 4  ;;  %s9940_s2 = sadd.s32 4294967295, %s9783_s21   ;;  %s9945_s22 = int_to_ptr.vmem [resolvable:$true] %s510_s22 }
  0x27   : > { %p7621_p0 = scmp.ge.s32.totalorder %s9783_s21, 1  ;;  %p11269_p1 = scmp.eq.s32.totalorder %s9940_s2, 0 }
  0x28   : > { %p498_p2 = scmp.lt.s32.totalorder %s9783_s21, 3  ;;  %s9786_s24 = smov [#allocation11]  }
  0x29   : > { %s523_s25 = sshll.u32 %s9786_s24, 4  ;;  %s9787_s26 = smov [#allocation14]   ;;  %s9960_s25 = int_to_ptr.vmem [resolvable:$true] %s523_s25 }
  0x2a   : > { %p9947_p3 = pnand %p7621_p0, %p498_p2  ;;  %s9962_s27 = sshll.u32 %s9787_s26, 4  ;;  %s549_s27 = int_to_ptr.vmem [resolvable:$true] %s9962_s27 }
  0x2b   : > { %s11317_s4 = sld [smem:[#allocation52_spill]] }
  0x2c   : > { %s11314_s23 = scalar_select %p9947_p3, 1, 0 }
  0x2d   : > { %p8335_p5 = pneg %p9947_p3 }
  0x2e   : > { %11315 = sst [smem:[#allocation46_spill]] %s11314_s23 }
  0x2f   : > { %p9956_p6 = pnand %p8335_p5, %p11269_p1 }
  0x31   : > { %s11316_s3 = scalar_select %p9956_p6, 1, 0 }
  0x32   : > { %s9137_s1 = scalar_lea.hbm %s11317_s4, 12288  ;;  %p9972_p8 = pneg %p9956_p6 }
  0x33   : > { %p9138_p7 = scmp.ne.s32.totalorder %s11317_s4, %s9137_s1  ;;  %p9144_p11 = scmp.lt.u32.totalorder %s9137_s1, %s11317_s4 }
  0x34   : > { %s11318_s24 = scalar_select %p9972_p8, 1, 0 }
  0x35   : > { %p9140_p9 = pnand %p9972_p8, %p9138_p7 }
  0x37   : > { %p9141_p10 = pneg %p9140_p9 }
  0x39   : > { %p9146_p12 = pnand %p9144_p11, %p9141_p10 }
  0x3b   : > { %9149 = shalt.err (!%p9146_p12)
}
  0x3c   : > { %s9150_s19 = scalar_lea.vmem %s9945_s22, 12288  ;;  %p9158_p5 = scmp.lt.s32.totalorder %s9945_s22, %s9945_s22 }
  0x3d   : > { %p9151_p13 = scmp.ne.s32.totalorder %s9945_s22, %s9150_s19  ;;  %p9159_p4 = scmp.lt.s32.totalorder %s9150_s19, %s9150_s19 }
  0x3f   : > { %p9153_p0 = pnand %p9151_p13, %p9972_p8  ;;  %p9160_p7 = por %p9159_p4, %p9158_p5 }
  0x41   : > { %p9154_p2 = pneg %p9153_p0 }
  0x43   : > { %p9161_p9 = pnand %p9160_p7, %p9154_p2 }
  0x45   : > { %9164 = shalt.err (!%p9161_p9)
}
  0x46   : > { %s9788_s23 = smov 384   ;;  %s9789_s18 = smov 24  }
  0x47   : > { %8338 = dma.hbm_to_vmem [thread:$0]  (!%p9956_p6), %s11317_s4, 12288, %s9945_s22, [#allocation9], %s9788_s23, %s9788_s23, %s9789_s18  }
  0x48   : > { %s11319_s5 = sld [smem:[#allocation53_spill]] }
  0x4e   : > { %s9165_s16 = scalar_lea.hbm %s11319_s5, 4096 }
  0x4f   : > { %p9166_p4 = scmp.ne.s32.totalorder %s11319_s5, %s9165_s16  ;;  %p9172_p12 = scmp.lt.u32.totalorder %s9165_s16, %s11319_s5 }
  0x51   : > { %p9168_p10 = pnand %p9166_p4, %p9972_p8 }
  0x53   : > { %p9169_p11 = pneg %p9168_p10 }
  0x55   : > { %p9174_p13 = pnand %p9172_p12, %p9169_p11 }
  0x57   : > { %9177 = shalt.err (!%p9174_p13)
}
  0x58   : > { %s9178_s22 = scalar_lea.vmem %s9960_s25, 4096  ;;  %p9186_p7 = scmp.lt.s32.totalorder %s9960_s25, %s9960_s25 }
  0x59   : > { %p9179_p0 = scmp.ne.s32.totalorder %s9960_s25, %s9178_s22  ;;  %p9187_p9 = scmp.lt.s32.totalorder %s9178_s22, %s9178_s22 }
  0x5b   : > { %p9181_p2 = pnand %p9179_p0, %p9972_p8  ;;  %p9188_p4 = por %p9187_p9, %p9186_p7 }
  0x5d   : > { %p9182_p5 = pneg %p9181_p2 }
  0x5f   : > { %p9189_p10 = pnand %p9188_p4, %p9182_p5 }
  0x61   : > { %9192 = shalt.err (!%p9189_p10)
}
  0x62   : > { %s11271_s12 = smov 128   ;;  %s11273_s10 = smov 8  }
  0x63   : > { %8341 = dma.hbm_to_vmem [thread:$0]  (!%p9956_p6), %s11319_s5, 4096, %s9960_s25, [#allocation12], %s11271_s12, %s11271_s12, %s11273_s10  }
  0x64   : > { %s11320_s7 = sld [smem:[#allocation55_spill]] }
  0x6a   : > { %s9193_s28 = scalar_lea.hbm %s11320_s7, 32 }
  0x6b   : > { %p9194_p11 = scmp.ne.s32.totalorder %s11320_s7, %s9193_s28  ;;  %p9200_p0 = scmp.lt.u32.totalorder %s9193_s28, %s11320_s7 }
  0x6d   : > { %p9196_p12 = pnand %p9194_p11, %p9972_p8 }
  0x6f   : > { %p9197_p13 = pneg %p9196_p12 }
  0x71   : > { %p9202_p2 = pnand %p9200_p0, %p9197_p13 }
  0x73   : > { %9205 = shalt.err (!%p9202_p2)
}
  0x74   : > { %s9206_s22 = scalar_lea.vmem %s549_s27, 32  ;;  %p9214_p4 = scmp.lt.s32.totalorder %s549_s27, %s549_s27 }
  0x75   : > { %p9207_p5 = scmp.ne.s32.totalorder %s549_s27, %s9206_s22  ;;  %p9215_p10 = scmp.lt.s32.totalorder %s9206_s22, %s9206_s22 }
  0x77   : > { %p9209_p7 = pnand %p9207_p5, %p9972_p8  ;;  %p9216_p1 = por %p9215_p10, %p9214_p4 }
  0x79   : > { %p9210_p9 = pneg %p9209_p7 }
  0x7b   : > { %p9217_p3 = pnand %p9216_p1, %p9210_p9 }
  0x7d   : > { %9220 = shalt.err (!%p9217_p3)
}
  0x7e   : > { %8347 = dma.hbm_to_vmem [thread:$0]  (!%p9956_p6), %s11320_s7, 32, %s549_s27, [#allocation15]  }
  0x7f   : > { %s9792_s16 = smov [#allocation17]   ;;  %s11321_s9 = sld [smem:[#allocation57_spill]] }
  0x80   : > { %s571_s23 = sshll.u32 %s9792_s16, 4  ;;  %s572_s23 = int_to_ptr.vmem [resolvable:$true] %s571_s23 }
  0x85   : > { %s9221_s29 = scalar_lea.hbm %s11321_s9, 8192 }
  0x86   : > { %p9222_p11 = scmp.ne.s32.totalorder %s11321_s9, %s9221_s29  ;;  %p9228_p12 = scmp.lt.u32.totalorder %s9221_s29, %s11321_s9 }
  0x88   : > { %p9224_p1 = pnand %p9222_p11, %p9972_p8 }
  0x8a   : > { %p9225_p3 = pneg %p9224_p1 }
  0x8c   : > { %p9230_p13 = pnand %p9228_p12, %p9225_p3 }
  0x8e   : > { %9233 = shalt.err (!%p9230_p13)
}
  0x8f   : > { %s9234_s27 = scalar_lea.vmem %s572_s23, 8192  ;;  %p9242_p7 = scmp.lt.s32.totalorder %s572_s23, %s572_s23 }
  0x90   : > { %p9235_p0 = scmp.ne.s32.totalorder %s572_s23, %s9234_s27  ;;  %p9243_p9 = scmp.lt.s32.totalorder %s9234_s27, %s9234_s27 }
  0x92   : > { %p9237_p2 = pnand %p9235_p0, %p9972_p8  ;;  %p9244_p4 = por %p9243_p9, %p9242_p7 }
  0x94   : > { %p9238_p5 = pneg %p9237_p2 }
  0x96   : > { %p9245_p10 = pnand %p9244_p4, %p9238_p5 }
  0x98   : > { %9248 = shalt.err (!%p9245_p10)
}
  0x99   : > { %s9793_s25 = smov 256   ;;  %s11275_s14 = smov 16  }
  0x9a   : > { %8353 = dma.hbm_to_vmem [thread:$0]  (!%p9956_p6), %s11321_s9, 8192, %s572_s23, [#allocation18], %s9793_s25, %s9793_s25, %s11275_s14  }
  0x9b   : > { %s9795_s28 = smov [#allocation20]   ;;  %s9796_s1 = smov [#allocation23]  }
  0x9c   : > { %s598_s29 = sshll.u32 %s9795_s28, 4  ;;  %s619_s26 = sshll.u32 %s9796_s1, 4  ;;  %s599_s29 = int_to_ptr.vmem [resolvable:$true] %s598_s29  ;;  %s10059_s26 = int_to_ptr.vmem [resolvable:$true] %s619_s26 }
  0x9d   : > { %s11322_s11 = sld [smem:[#allocation59_spill]] }
  0xa3   : > { %s9249_s27 = scalar_lea.hbm %s11322_s11, 32 }
  0xa4   : > { %p9250_p11 = scmp.ne.s32.totalorder %s11322_s11, %s9249_s27  ;;  %p9256_p12 = scmp.lt.u32.totalorder %s9249_s27, %s11322_s11 }
  0xa6   : > { %p9252_p1 = pnand %p9250_p11, %p9972_p8 }
  0xa8   : > { %p9253_p3 = pneg %p9252_p1 }
  0xaa   : > { %p9258_p13 = pnand %p9256_p12, %p9253_p3 }
  0xac   : > { %9261 = shalt.err (!%p9258_p13)
}
  0xad   : > { %s9262_s18 = scalar_lea.vmem %s599_s29, 32  ;;  %p9270_p7 = scmp.lt.s32.totalorder %s599_s29, %s599_s29 }
  0xae   : > { %p9263_p0 = scmp.ne.s32.totalorder %s599_s29, %s9262_s18  ;;  %p9271_p9 = scmp.lt.s32.totalorder %s9262_s18, %s9262_s18 }
  0xb0   : > { %p9265_p2 = pnand %p9263_p0, %p9972_p8  ;;  %p9272_p4 = por %p9271_p9, %p9270_p7 }
  0xb2   : > { %p9266_p5 = pneg %p9265_p2 }
  0xb4   : > { %p9273_p10 = pnand %p9272_p4, %p9266_p5 }
  0xb6   : > { %9276 = shalt.err (!%p9273_p10)
}
  0xb7   : > { %8359 = dma.hbm_to_vmem [thread:$0]  (!%p9956_p6), %s11322_s11, 32, %s599_s29, [#allocation21]  }
  0xb8   : > { %s11323_s13 = sld [smem:[#allocation61_spill]] }
  0xbe   : > { %s9277_s19 = scalar_lea.hbm %s11323_s13, 8192 }
  0xbf   : > { %p9278_p11 = scmp.ne.s32.totalorder %s11323_s13, %s9277_s19  ;;  %p9284_p12 = scmp.lt.u32.totalorder %s9277_s19, %s11323_s13 }
  0xc1   : > { %p9280_p1 = pnand %p9278_p11, %p9972_p8 }
  0xc3   : > { %p9281_p3 = pneg %p9280_p1 }
  0xc5   : > { %p9286_p13 = pnand %p9284_p12, %p9281_p3 }
  0xc7   : > { %9289 = shalt.err (!%p9286_p13)
}
  0xc8   : > { %s9290_s29 = scalar_lea.vmem %s10059_s26, 8192  ;;  %p9298_p7 = scmp.lt.s32.totalorder %s10059_s26, %s10059_s26 }
  0xc9   : > { %p9291_p0 = scmp.ne.s32.totalorder %s10059_s26, %s9290_s29  ;;  %p9299_p9 = scmp.lt.s32.totalorder %s9290_s29, %s9290_s29 }
  0xcb   : > { %p9293_p2 = pnand %p9291_p0, %p9972_p8  ;;  %p9300_p4 = por %p9299_p9, %p9298_p7 }
  0xcd   : > { %p9294_p5 = pneg %p9293_p2 }
  0xcf   : > { %p9301_p10 = pnand %p9300_p4, %p9294_p5 }
  0xd1   : > { %9304 = shalt.err (!%p9301_p10)
}
  0xd2   : > { %8365 = dma.hbm_to_vmem [thread:$0]  (!%p9956_p6), %s11323_s13, 8192, %s10059_s26, [#allocation24], %s9793_s25, %s9793_s25, %s11275_s14  }
  0xd3   : > { %s9797_s10 = smov [#allocation26]   ;;  %s9798_s1 = smov [#allocation29]  }
  0xd4   : > { %s643_s28 = sshll.u32 %s9797_s10, 4  ;;  %s668_s19 = sshll.u32 %s9798_s1, 4  ;;  %s644_s28 = int_to_ptr.vmem [resolvable:$true] %s643_s28  ;;  %s10105_s19 = int_to_ptr.vmem [resolvable:$true] %s668_s19 }
  0xd5   : > { %s11324_s15 = sld [smem:[#allocation63_spill]] }
  0xdb   : > { %s9305_s16 = scalar_lea.hbm %s11324_s15, 8192 }
  0xdc   : > { %p9306_p11 = scmp.ne.s32.totalorder %s11324_s15, %s9305_s16  ;;  %p9312_p12 = scmp.lt.u32.totalorder %s9305_s16, %s11324_s15 }
  0xde   : > { %p9308_p1 = pnand %p9306_p11, %p9972_p8 }
  0xe0   : > { %p9309_p3 = pneg %p9308_p1 }
  0xe2   : > { %p9314_p13 = pnand %p9312_p12, %p9309_p3 }
  0xe4   : > { %9317 = shalt.err (!%p9314_p13)
}
  0xe5   : > { %s9318_s26 = scalar_lea.vmem %s644_s28, 8192  ;;  %p9326_p7 = scmp.lt.s32.totalorder %s644_s28, %s644_s28 }
  0xe6   : > { %p9319_p0 = scmp.ne.s32.totalorder %s644_s28, %s9318_s26  ;;  %p9327_p9 = scmp.lt.s32.totalorder %s9318_s26, %s9318_s26 }
  0xe8   : > { %p9321_p2 = pnand %p9319_p0, %p9972_p8  ;;  %p9328_p4 = por %p9327_p9, %p9326_p7 }
  0xea   : > { %p9322_p5 = pneg %p9321_p2 }
  0xec   : > { %p9329_p10 = pnand %p9328_p4, %p9322_p5 }
  0xee   : > { %9332 = shalt.err (!%p9329_p10)
}
  0xef   : > { %s11325_s12 = smov 8   ;;  %s11326_s10 = smov 128  }
  0xf0   : > { %8371 = dma.hbm_to_vmem [thread:$0]  (!%p9956_p6), %s11324_s15, 8192, %s644_s28, [#allocation27], %s11326_s10, %s11326_s10, %s11325_s12  }
  0xf1   : > { %s11327_s17 = sld [smem:[#allocation65_spill]] }
  0xf7   : > { %s9333_s23 = scalar_lea.hbm %s11327_s17, 32 }
  0xf8   : > { %p9334_p11 = scmp.ne.s32.totalorder %s11327_s17, %s9333_s23  ;;  %p9340_p12 = scmp.lt.u32.totalorder %s9333_s23, %s11327_s17 }
  0xfa   : > { %p9336_p1 = pnand %p9334_p11, %p9972_p8 }
  0xfc   : > { %p9337_p3 = pneg %p9336_p1 }
  0xfe   : > { %p9342_p13 = pnand %p9340_p12, %p9337_p3 }
 0x100   : > { %9345 = shalt.err (!%p9342_p13)
}
 0x101   : > { %s9346_s28 = scalar_lea.vmem %s10105_s19, 32  ;;  %p9354_p7 = scmp.lt.s32.totalorder %s10105_s19, %s10105_s19 }
 0x102   : > { %p9347_p0 = scmp.ne.s32.totalorder %s10105_s19, %s9346_s28  ;;  %p9355_p9 = scmp.lt.s32.totalorder %s9346_s28, %s9346_s28 }
 0x104   : > { %p9349_p2 = pnand %p9347_p0, %p9972_p8  ;;  %p9356_p4 = por %p9355_p9, %p9354_p7 }
 0x106   : > { %p9350_p5 = pneg %p9349_p2 }
 0x108   : > { %p9357_p10 = pnand %p9356_p4, %p9350_p5 }
 0x10a   : > { %9360 = shalt.err (!%p9357_p10)
}
 0x10b   : > { %8377 = dma.hbm_to_vmem [thread:$0]  (!%p9956_p6), %s11327_s17, 32, %s10105_s19, [#allocation30]  }
 0x10c   : > { %s7620_s27 = sadd.s32 4294967294, %s9783_s21   ;;  %s10153_s16 = sadd.s32 1, %s9783_s21  }
 0x10d   : > { %s52_s23 = ssub.s32 %s9783_s21, %s10153_s16  ;;  %s55_s29 = sadd.s32 1, %s9779_s20 }
 0x10e   : > { %p53_p11 = scmp.eq.s32.totalorder %s52_s23, 0  ;;  %p62_p1 = scmp.ne.s32.totalorder %s9779_s20, %s9775_s30 }
 0x10f   : > { %p63_p3 = scmp.eq.s32.totalorder %s9783_s21, 0  ;;  %p68_p12 = scmp.ne.s32.totalorder %s9775_s30, %s9771_s0 }
 0x110   : > { %s10164_s18 = scalar_select %p53_p11, %s9779_s20, %s55_s29  }
 0x111   : > { %p64_p13 = por %p63_p3, %p62_p1  ;;  %p11329_p0 = scmp.eq.s32.totalorder %s9940_s2, 0 }
 0x112   : > { %11328 = sst [smem:[#allocation47_spill]] %s10164_s18  ;;  %p485_p5 = scmp.eq.s32.totalorder %s9940_s2, 1 }
 0x113   : > { %p10168_p2 = por %p11329_p0, %p68_p12  ;;  %p491_p7 = scmp.eq.s32.totalorder %s7620_s27, 1 }
 0x114   : > { %p8413_p9 = scmp.lt.s32.totalorder %s9783_s21, 2  ;;  %s10175_s19 = sand.u32 1, %s9779_s20  }
 0x115   : > { %s11330_s25 = scalar_select %p10168_p2, 1, 0 }
 0x116   : > { %p10177_p4 = por %p485_p5, %p62_p1  ;;  %p10181_p10 = por %p491_p7, %p68_p12 }
 0x117   : > { %p10185_p11 = pnand %p8413_p9, %p64_p13  ;;  %s11278_s22 = sand.u32 1, %s9783_s21  }
 0x118   : > { %s11331_s26 = scalar_select %p10177_p4, 1, 0 }
 0x119   : > { %s11332_s28 = scalar_select %p10181_p10, 1, 0 }
 0x11a   : > { %s11333_s1 = scalar_select %p10185_p11, 1, 0 }
 0x11b   : > { %s7642_s23 = sshll.u32 %s10175_s19, 5  ;;  %s8122_s27 = sshll.u32 %s9783_s21, 9 }
 0x11c   : > { %s716_s29 = scalar_lea.vmem [#allocation5], %s7642_s23  ;;  %s11334_s7 = sld [smem:[#allocation49_spill]] }
 0x11d   : > { %s724_s14 = sshll.u32 %s716_s29, 4  ;;  %s10201_s11 = scalar_lea.sflag [#allocation6], %s11278_s22  ;;  %s10197_s14 = int_to_ptr.vmem [resolvable:$true] %s724_s14 }
 0x11e   : > { %p10207_p3 = pneg %p10185_p11 }
 0x120   : > { %s11335_s23 = scalar_select %p10207_p3, 1, 0 }
 0x122   : > { %s10195_s9 = scalar_lea.hbm %s11334_s7, %s8122_s27  ;;  %s9366_s27 = scalar_lea.hbm %s11334_s7, 1024 }
 0x123   : > { %s9361_s13 = scalar_lea.hbm %s10195_s9, 512  ;;  %p9367_p0 = scmp.lt.u32.totalorder %s10195_s9, %s11334_s7 }
 0x124   : > { %p9362_p1 = scmp.ne.s32.totalorder %s10195_s9, %s9361_s13  ;;  %p9368_p5 = scmp.lt.u32.totalorder %s9366_s27, %s9361_s13 }
 0x125   : > { %p9370_p9 = scmp.lt.u32.totalorder %s9361_s13, %s10195_s9 }
 0x126   : > { %p9364_p12 = pnand %p10207_p3, %p9362_p1  ;;  %p9369_p7 = por %p9368_p5, %p9367_p0 }
 0x128   : > { %p9365_p13 = pneg %p9364_p12  ;;  %p9371_p10 = por %p9370_p9, %p9369_p7 }
 0x12a   : > { %p9372_p4 = pnand %p9371_p10, %p9365_p13 }
 0x12c   : > { %9375 = shalt.err (!%p9372_p4)
}
 0x12d   : > { %s9376_s22 = scalar_lea.vmem %s10197_s14, 512  ;;  %s9799_s4 = smov [#allocation5]  }
 0x12e   : > { %p9377_p1 = scmp.ne.s32.totalorder %s10197_s14, %s9376_s22  ;;  %s9381_s5 = sshll.u32 %s9799_s4, 4  ;;  %s9382_s5 = int_to_ptr.vmem [resolvable:$false] %s9381_s5 }
 0x12f   : > { %s9383_s15 = scalar_lea.vmem %s9382_s5, 1024  ;;  %p9384_p6 = scmp.lt.s32.totalorder %s10197_s14, %s9382_s5 }
 0x130   : > { %p9379_p12 = pnand %p9377_p1, %p10207_p3  ;;  %p9385_p8 = scmp.lt.s32.totalorder %s9383_s15, %s9376_s22 }
 0x132   : > { %p9380_p2 = pneg %p9379_p12  ;;  %p9386_p0 = por %p9385_p8, %p9384_p6 }
 0x134   : > { %p9387_p5 = pnand %p9386_p0, %p9380_p2 }
 0x136   : > { %9390 = shalt.err (!%p9387_p5)
}
 0x137   : > { %8387 = dma.hbm_to_vmem [thread:$0]  (!%p10185_p11), %s10195_s9, 512, %s10197_s14, %s10201_s11, %s11326_s10, %s11326_s10, %s11325_s12  }
 0x138   : > { %s9800_s13 = smov [#allocation13]   ;;  %s9801_s29 = smov [#allocation16]  }
 0x139   : > { %s537_s27 = sshll.u32 %s9800_s13, 4  ;;  %s558_s4 = sshll.u32 %s9801_s29, 4  ;;  %s538_s27 = int_to_ptr.vmem [resolvable:$true] %s537_s27  ;;  %s559_s4 = int_to_ptr.vmem [resolvable:$true] %s558_s4 }
 0x13a   : > { %s11336_s6 = sld [smem:[#allocation54_spill]]  ;;  %p11337_p8 = scmp.ne.s32.totalorder %s11318_s24, 0 }
 0x140   : > { %s9391_s15 = scalar_lea.hbm %s11336_s6, 32 }
 0x141   : > { %p9392_p6 = scmp.ne.s32.totalorder %s11336_s6, %s9391_s15  ;;  %p9398_p10 = scmp.lt.u32.totalorder %s9391_s15, %s11336_s6 }
 0x143   : > { %p9394_p2 = pnand %p9392_p6, %p11337_p8 }
 0x145   : > { %p9395_p4 = pneg %p9394_p2 }
 0x147   : > { %p9400_p13 = pnand %p9398_p10, %p9395_p4 }
 0x149   : > { %9403 = shalt.err (!%p9400_p13)
}
 0x14a   : > { %s9404_s9 = scalar_lea.vmem %s538_s27, 32  ;;  %p9412_p12 = scmp.lt.s32.totalorder %s538_s27, %s538_s27 }
 0x14b   : > { %p9405_p7 = scmp.ne.s32.totalorder %s538_s27, %s9404_s9  ;;  %p9413_p0 = scmp.lt.s32.totalorder %s9404_s9, %s9404_s9 }
 0x14d   : > { %p9407_p9 = pnand %p9405_p7, %p11337_p8  ;;  %p9414_p5 = por %p9413_p0, %p9412_p12 }
 0x14f   : > { %p9408_p1 = pneg %p9407_p9 }
 0x151   : > { %p9415_p11 = pnand %p9414_p5, %p9408_p1 }
 0x153   : > { %9418 = shalt.err (!%p9415_p11)
}
 0x154   : > { %p11338_p6 = scmp.ne.s32.totalorder %s11316_s3, 0  ;;  %s11339_s8 = sld [smem:[#allocation56_spill]] }
 0x156   : > { %8344 = dma.hbm_to_vmem [thread:$0]  (!%p11338_p6), %s11336_s6, 32, %s538_s27, [#allocation12]  }
 0x15a   : > { %s9419_s18 = scalar_lea.hbm %s11339_s8, 4096 }
 0x15b   : > { %p9420_p2 = scmp.ne.s32.totalorder %s11339_s8, %s9419_s18  ;;  %p9426_p11 = scmp.lt.u32.totalorder %s9419_s18, %s11339_s8 }
 0x15d   : > { %p9422_p4 = pnand %p9420_p2, %p11337_p8 }
 0x15f   : > { %p9423_p10 = pneg %p9422_p4 }
 0x161   : > { %p9428_p13 = pnand %p9426_p11, %p9423_p10 }
 0x163   : > { %9431 = shalt.err (!%p9428_p13)
}
 0x164   : > { %s9432_s15 = scalar_lea.vmem %s559_s4, 4096  ;;  %p9440_p12 = scmp.lt.s32.totalorder %s559_s4, %s559_s4 }
 0x165   : > { %p9433_p7 = scmp.ne.s32.totalorder %s559_s4, %s9432_s15  ;;  %p9441_p0 = scmp.lt.s32.totalorder %s9432_s15, %s9432_s15 }
 0x167   : > { %p9435_p9 = pnand %p9433_p7, %p11337_p8  ;;  %p9442_p5 = por %p9441_p0, %p9440_p12 }
 0x169   : > { %p9436_p1 = pneg %p9435_p9 }
 0x16b   : > { %p9443_p3 = pnand %p9442_p5, %p9436_p1 }
 0x16d   : > { %9446 = shalt.err (!%p9443_p3)
}
 0x16e   : > { %8350 = dma.hbm_to_vmem [thread:$0]  (!%p11338_p6), %s11339_s8, 4096, %s559_s4, [#allocation15], %s11326_s10, %s11326_s10, %s11325_s12  }
 0x16f   : > { %s9802_s7 = smov [#allocation19]   ;;  %s9803_s20 = smov [#allocation22]  }
 0x170   : > { %s584_s17 = sshll.u32 %s9802_s7, 4  ;;  %s609_s14 = sshll.u32 %s9803_s20, 4  ;;  %s585_s17 = int_to_ptr.vmem [resolvable:$true] %s584_s17  ;;  %s610_s14 = int_to_ptr.vmem [resolvable:$true] %s609_s14 }
 0x171   : > { %s11340_s29 = sld [smem:[#allocation58_spill]] }
 0x177   : > { %s9447_s5 = scalar_lea.hbm %s11340_s29, 4096 }
 0x178   : > { %p9448_p3 = scmp.ne.s32.totalorder %s11340_s29, %s9447_s5  ;;  %p9454_p10 = scmp.lt.u32.totalorder %s9447_s5, %s11340_s29 }
 0x17a   : > { %p9450_p2 = pnand %p9448_p3, %p11337_p8 }
 0x17c   : > { %p9451_p4 = pneg %p9450_p2 }
 0x17e   : > { %p9456_p11 = pnand %p9454_p10, %p9451_p4 }
 0x180   : > { %9459 = shalt.err (!%p9456_p11)
}
 0x181   : > { %s9460_s4 = scalar_lea.vmem %s585_s17, 4096  ;;  %p9468_p1 = scmp.lt.s32.totalorder %s585_s17, %s585_s17 }
 0x182   : > { %p9461_p13 = scmp.ne.s32.totalorder %s585_s17, %s9460_s4  ;;  %p9469_p12 = scmp.lt.s32.totalorder %s9460_s4, %s9460_s4 }
 0x184   : > { %p9463_p7 = pnand %p9461_p13, %p11337_p8  ;;  %p9470_p0 = por %p9469_p12, %p9468_p1 }
 0x186   : > { %p9464_p9 = pneg %p9463_p7 }
 0x188   : > { %p9471_p5 = pnand %p9470_p0, %p9464_p9 }
 0x18a   : > { %9474 = shalt.err (!%p9471_p5)
}
 0x18b   : > { %8356 = dma.hbm_to_vmem [thread:$0]  (!%p11338_p6), %s11340_s29, 4096, %s585_s17, [#allocation18], %s11326_s10, %s11326_s10, %s11325_s12  }
 0x18c   : > { %s11341_s18 = sld [smem:[#allocation60_spill]] }
 0x192   : > { %s9475_s13 = scalar_lea.hbm %s11341_s18, 32 }
 0x193   : > { %p9476_p3 = scmp.ne.s32.totalorder %s11341_s18, %s9475_s13  ;;  %p9482_p10 = scmp.lt.u32.totalorder %s9475_s13, %s11341_s18 }
 0x195   : > { %p9478_p2 = pnand %p9476_p3, %p11337_p8 }
 0x197   : > { %p9479_p4 = pneg %p9478_p2 }
 0x199   : > { %p9484_p11 = pnand %p9482_p10, %p9479_p4 }
 0x19b   : > { %9487 = shalt.err (!%p9484_p11)
}
 0x19c   : > { %s9488_s4 = scalar_lea.vmem %s610_s14, 32  ;;  %p9496_p1 = scmp.lt.s32.totalorder %s610_s14, %s610_s14 }
 0x19d   : > { %p9489_p13 = scmp.ne.s32.totalorder %s610_s14, %s9488_s4  ;;  %p9497_p12 = scmp.lt.s32.totalorder %s9488_s4, %s9488_s4 }
 0x19f   : > { %p9491_p7 = pnand %p9489_p13, %p11337_p8  ;;  %p9498_p0 = por %p9497_p12, %p9496_p1 }
 0x1a1   : > { %p9492_p9 = pneg %p9491_p7 }
 0x1a3   : > { %p9499_p5 = pnand %p9498_p0, %p9492_p9 }
 0x1a5   : > { %9502 = shalt.err (!%p9499_p5)
}
 0x1a6   : > { %8362 = dma.hbm_to_vmem [thread:$0]  (!%p11338_p6), %s11341_s18, 32, %s610_s14, [#allocation21]  }
 0x1a7   : > { %s9804_s9 = smov [#allocation25]   ;;  %s9805_s20 = smov [#allocation28]  }
 0x1a8   : > { %s633_s7 = sshll.u32 %s9804_s9, 4  ;;  %s657_s13 = sshll.u32 %s9805_s20, 4  ;;  %s634_s7 = int_to_ptr.vmem [resolvable:$true] %s633_s7  ;;  %s658_s13 = int_to_ptr.vmem [resolvable:$true] %s657_s13 }
 0x1a9   : > { %s11342_s15 = sld [smem:[#allocation62_spill]] }
 0x1af   : > { %s9503_s27 = scalar_lea.hbm %s11342_s15, 64 }
 0x1b0   : > { %p9504_p3 = scmp.ne.s32.totalorder %s11342_s15, %s9503_s27  ;;  %p9510_p10 = scmp.lt.u32.totalorder %s9503_s27, %s11342_s15 }
 0x1b2   : > { %p9506_p2 = pnand %p9504_p3, %p11337_p8 }
 0x1b4   : > { %p9507_p4 = pneg %p9506_p2 }
 0x1b6   : > { %p9512_p11 = pnand %p9510_p10, %p9507_p4 }
 0x1b8   : > { %9515 = shalt.err (!%p9512_p11)
}
 0x1b9   : > { %s9516_s14 = scalar_lea.vmem %s634_s7, 64  ;;  %p9524_p1 = scmp.lt.s32.totalorder %s634_s7, %s634_s7 }
 0x1ba   : > { %p9517_p13 = scmp.ne.s32.totalorder %s634_s7, %s9516_s14  ;;  %p9525_p12 = scmp.lt.s32.totalorder %s9516_s14, %s9516_s14 }
 0x1bc   : > { %p9519_p7 = pnand %p9517_p13, %p11337_p8  ;;  %p9526_p0 = por %p9525_p12, %p9524_p1 }
 0x1be   : > { %p9520_p9 = pneg %p9519_p7 }
 0x1c0   : > { %p9527_p5 = pnand %p9526_p0, %p9520_p9 }
 0x1c2   : > { %9530 = shalt.err (!%p9527_p5)
}
 0x1c3   : > { %8368 = dma.hbm_to_vmem [thread:$0]  (!%p11338_p6), %s11342_s15, 64, %s634_s7, [#allocation24]  }
 0x1c4   : > { %s11343_s20 = sld [smem:[#allocation64_spill]] }
 0x1ca   : > { %s11344_s5 = smov %s11343_s20  ;;  %s9531_s22 = scalar_lea.hbm %s11343_s20, 32 }
 0x1cb   : > { %p9532_p3 = scmp.ne.s32.totalorder %s11344_s5, %s9531_s22  ;;  %p9538_p10 = scmp.lt.u32.totalorder %s9531_s22, %s11344_s5 }
 0x1cd   : > { %p9534_p2 = pnand %p9532_p3, %p11337_p8 }
 0x1cf   : > { %p9535_p4 = pneg %p9534_p2 }
 0x1d1   : > { %p9540_p11 = pnand %p9538_p10, %p9535_p4 }
 0x1d3   : > { %9543 = shalt.err (!%p9540_p11)
}
 0x1d4   : > { %s9544_s8 = scalar_lea.vmem %s658_s13, 32  ;;  %p9552_p1 = scmp.lt.s32.totalorder %s658_s13, %s658_s13 }
 0x1d5   : > { %p9545_p13 = scmp.ne.s32.totalorder %s658_s13, %s9544_s8  ;;  %p9553_p12 = scmp.lt.s32.totalorder %s9544_s8, %s9544_s8 }
 0x1d7   : > { %p9547_p7 = pnand %p9545_p13, %p11337_p8  ;;  %p9554_p0 = por %p9553_p12, %p9552_p1 }
 0x1d9   : > { %p9548_p9 = pneg %p9547_p7 }
 0x1db   : > { %p9555_p5 = pnand %p9554_p0, %p9548_p9 }
 0x1dd   : > { %9558 = shalt.err (!%p9555_p5)
}
 0x1de   : > { %8374 = dma.hbm_to_vmem [thread:$0]  (!%p11338_p6), %s11344_s5, 32, %s658_s13, [#allocation27]  }
 0x1df   : > { %s9806_s29 = smov [#allocation31]   ;;  %s7638_s20 = sshll.u32 %s10175_s19, 4 }
 0x1e0   : > { %s679_s9 = sshll.u32 %s9806_s29, 4  ;;  %s11345_s4 = sld [smem:[#allocation66_spill]]  ;;  %s680_s9 = int_to_ptr.vmem [resolvable:$true] %s679_s9 }
 0x1e6   : > { %s9559_s17 = scalar_lea.hbm %s11345_s4, 32 }
 0x1e7   : > { %p9560_p3 = scmp.ne.s32.totalorder %s11345_s4, %s9559_s17  ;;  %p9566_p10 = scmp.lt.u32.totalorder %s9559_s17, %s11345_s4 }
 0x1e9   : > { %p9562_p2 = pnand %p9560_p3, %p11337_p8 }
 0x1eb   : > { %p9563_p4 = pneg %p9562_p2 }
 0x1ed   : > { %p9568_p11 = pnand %p9566_p10, %p9563_p4 }
 0x1ef   : > { %9571 = shalt.err (!%p9568_p11)
}
 0x1f0   : > { %s9572_s13 = scalar_lea.vmem %s680_s9, 32  ;;  %p9580_p1 = scmp.lt.s32.totalorder %s680_s9, %s680_s9 }
 0x1f1   : > { %p9573_p13 = scmp.ne.s32.totalorder %s680_s9, %s9572_s13  ;;  %p9581_p12 = scmp.lt.s32.totalorder %s9572_s13, %s9572_s13 }
 0x1f3   : > { %p9575_p7 = pnand %p9573_p13, %p11337_p8  ;;  %p9582_p0 = por %p9581_p12, %p9580_p1 }
 0x1f5   : > { %p9576_p9 = pneg %p9575_p7 }
 0x1f7   : > { %p9583_p5 = pnand %p9582_p0, %p9576_p9 }
 0x1f9   : > { %9586 = shalt.err (!%p9583_p5)
}
 0x1fa   : > { %8380 = dma.hbm_to_vmem [thread:$0]  (!%p11338_p6), %s11345_s4, 32, %s680_s9, [#allocation30]  }
 0x1fb   : > { %s8120_s15 = sshll.u32 %s9783_s21, 8  ;;  %s11346_s27 = sld [smem:[#allocation48_spill]] }
 0x1fc   : > { %s694_s14 = scalar_lea.vmem [#allocation2], %s7638_s20  ;;  %s7646_s8 = sshll.u32 %s10175_s19, 1 }
 0x1fd   : > { %s702_s3 = sshll.u32 %s694_s14, 4  ;;  %s691_s7 = scalar_lea.sflag [#allocation3], %s10175_s19  ;;  %s10373_s3 = int_to_ptr.vmem [resolvable:$true] %s702_s3 }
 0x1fe   : > { %p11347_p3 = scmp.ne.s32.totalorder %s11335_s23, 0 }
 0x201   : > { %s10371_s17 = scalar_lea.hbm %s11346_s27, %s8120_s15  ;;  %s9592_s29 = scalar_lea.hbm %s11346_s27, 512 }
 0x202   : > { %s9587_s13 = scalar_lea.hbm %s10371_s17, 256  ;;  %p9593_p4 = scmp.lt.u32.totalorder %s10371_s17, %s11346_s27 }
 0x203   : > { %p9588_p8 = scmp.ne.s32.totalorder %s10371_s17, %s9587_s13  ;;  %p9594_p10 = scmp.lt.u32.totalorder %s9592_s29, %s9587_s13 }
 0x204   : > { %p9596_p13 = scmp.lt.u32.totalorder %s9587_s13, %s10371_s17 }
 0x205   : > { %p9590_p6 = pnand %p9588_p8, %p11347_p3  ;;  %p9595_p11 = por %p9594_p10, %p9593_p4 }
 0x207   : > { %p9591_p2 = pneg %p9590_p6  ;;  %p9597_p7 = por %p9596_p13, %p9595_p11 }
 0x209   : > { %p9598_p9 = pnand %p9597_p7, %p9591_p2 }
 0x20b   : > { %9601 = shalt.err (!%p9598_p9)
}
 0x20c   : > { %s9602_s20 = scalar_lea.vmem %s10373_s3, 256  ;;  %s9807_s24 = smov [#allocation2]  }
 0x20d   : > { %p9603_p1 = scmp.ne.s32.totalorder %s10373_s3, %s9602_s20  ;;  %s9607_s14 = sshll.u32 %s9807_s24, 4  ;;  %s9608_s14 = int_to_ptr.vmem [resolvable:$false] %s9607_s14 }
 0x20e   : > { %s9609_s9 = scalar_lea.vmem %s9608_s14, 512  ;;  %p9610_p5 = scmp.lt.s32.totalorder %s10373_s3, %s9608_s14 }
 0x20f   : > { %p9605_p12 = pnand %p9603_p1, %p11347_p3  ;;  %p9611_p8 = scmp.lt.s32.totalorder %s9609_s9, %s9602_s20 }
 0x211   : > { %p9606_p0 = pneg %p9605_p12  ;;  %p9612_p6 = por %p9611_p8, %p9610_p5 }
 0x213   : > { %p9613_p4 = pnand %p9612_p6, %p9606_p0 }
 0x215   : > { %9616 = shalt.err (!%p9613_p4)
}
 0x216   : > { %p11348_p2 = scmp.ne.s32.totalorder %s11333_s1, 0  ;;  %s8123_s13 = sshll.u32 %s9783_s21, 5 }
 0x217   : > { %s11349_s15 = sld [smem:[#allocation50_spill]]  ;;  %s738_s20 = scalar_lea.vmem [#allocation7], %s7646_s8 }
 0x218   : > { %8384 = dma.hbm_to_vmem [thread:$0]  (!%p11348_p2), %s10371_s17, 256, %s10373_s3, %s691_s7, %s11326_s10, %s11326_s10, %s11325_s12  }
 0x219   : > { %s745_s24 = sshll.u32 %s738_s20, 4  ;;  %s10413_s24 = int_to_ptr.vmem [resolvable:$true] %s745_s24 }
 0x21d   : > { %s10409_s22 = scalar_lea.hbm %s11349_s15, %s8123_s13  ;;  %s9622_s17 = scalar_lea.hbm %s11349_s15, 64 }
 0x21e   : > { %s9617_s14 = scalar_lea.hbm %s10409_s22, 32  ;;  %p9623_p7 = scmp.lt.u32.totalorder %s10409_s22, %s11349_s15 }
 0x21f   : > { %p9618_p10 = scmp.ne.s32.totalorder %s10409_s22, %s9617_s14  ;;  %p9624_p9 = scmp.lt.u32.totalorder %s9622_s17, %s9617_s14 }
 0x220   : > { %p9626_p12 = scmp.lt.u32.totalorder %s9617_s14, %s10409_s22 }
 0x221   : > { %p9620_p11 = pnand %p9618_p10, %p11347_p3  ;;  %p9625_p1 = por %p9624_p9, %p9623_p7 }
 0x223   : > { %p9621_p13 = pneg %p9620_p11  ;;  %p9627_p0 = por %p9626_p12, %p9625_p1 }
 0x225   : > { %p9628_p5 = pnand %p9627_p0, %p9621_p13 }
 0x227   : > { %9631 = shalt.err (!%p9628_p5)
}
 0x228   : > { %s9632_s9 = scalar_lea.vmem %s10413_s24, 32  ;;  %s9808_s6 = smov [#allocation7]  }
 0x229   : > { %p9633_p8 = scmp.ne.s32.totalorder %s10413_s24, %s9632_s9  ;;  %s9637_s29 = sshll.u32 %s9808_s6, 4  ;;  %s9638_s29 = int_to_ptr.vmem [resolvable:$false] %s9637_s29 }
 0x22a   : > { %s9639_s20 = scalar_lea.vmem %s9638_s29, 64  ;;  %p9640_p10 = scmp.lt.s32.totalorder %s10413_s24, %s9638_s29 }
 0x22b   : > { %p9635_p6 = pnand %p9633_p8, %p11347_p3  ;;  %p9641_p11 = scmp.lt.s32.totalorder %s9639_s20, %s9632_s9 }
 0x22d   : > { %p9636_p4 = pneg %p9635_p6  ;;  %p9642_p7 = por %p9641_p11, %p9640_p10 }
 0x22f   : > { %p9643_p9 = pnand %p9642_p7, %p9636_p4 }
 0x231   : > { %9646 = shalt.err (!%p9643_p9)
}
 0x232   : > { %s9809_s14 = smov 1   ;;  %s11350_s12 = smov 16  }
 0x233   : > { %8390 = dma.hbm_to_vmem [thread:$0]  (!%p11348_p2), %s10409_s22, 32, %s10413_s24, %s10201_s11, %s11350_s12, %s11350_s12, %s9809_s14  }
 0x234   : > { %s11351_s3 = sld [smem:[#allocation51_spill]]  ;;  %s759_s9 = scalar_lea.vmem [#allocation8], %s7646_s8 }
 0x235   : > { %s766_s6 = sshll.u32 %s759_s9, 4  ;;  %s11352_s29 = sand.u32 1, %s9783_s21   ;;  %s10449_s6 = int_to_ptr.vmem [resolvable:$true] %s766_s6 }
 0x236   : > { %s10453_s20 = scalar_lea.sflag [#allocation9], %s11352_s29 }
 0x23a   : > { %s10445_s7 = scalar_lea.hbm %s11351_s3, %s8123_s13  ;;  %s9652_s19 = scalar_lea.hbm %s11351_s3, 64 }
 0x23b   : > { %s9647_s4 = scalar_lea.hbm %s10445_s7, 32  ;;  %p9653_p0 = scmp.lt.u32.totalorder %s10445_s7, %s11351_s3 }
 0x23c   : > { %p9648_p13 = scmp.ne.s32.totalorder %s10445_s7, %s9647_s4  ;;  %p9654_p5 = scmp.lt.u32.totalorder %s9652_s19, %s9647_s4 }
 0x23d   : > { %p9656_p6 = scmp.lt.u32.totalorder %s9647_s4, %s10445_s7 }
 0x23e   : > { %p9650_p1 = pnand %p9648_p13, %p11347_p3  ;;  %p9655_p8 = por %p9654_p5, %p9653_p0 }
 0x240   : > { %p9651_p12 = pneg %p9650_p1  ;;  %p9657_p4 = por %p9656_p6, %p9655_p8 }
 0x242   : > { %p9658_p10 = pnand %p9657_p4, %p9651_p12 }
 0x244   : > { %9661 = shalt.err (!%p9658_p10)
}
 0x245   : > { %s9662_s8 = scalar_lea.vmem %s10449_s6, 32  ;;  %s9810_s10 = smov [#allocation8]  }
 0x246   : > { %p9663_p11 = scmp.ne.s32.totalorder %s10449_s6, %s9662_s8  ;;  %s9667_s17 = sshll.u32 %s9810_s10, 4  ;;  %s9668_s17 = int_to_ptr.vmem [resolvable:$false] %s9667_s17 }
 0x247   : > { %s9669_s9 = scalar_lea.vmem %s9668_s17, 64  ;;  %p9670_p13 = scmp.lt.s32.totalorder %s10449_s6, %s9668_s17 }
 0x248   : > { %p9665_p7 = pnand %p9663_p11, %p11347_p3  ;;  %p9671_p1 = scmp.lt.s32.totalorder %s9669_s9, %s9662_s8 }
 0x24a   : > { %p9666_p9 = pneg %p9665_p7  ;;  %p9672_p0 = por %p9671_p1, %p9670_p13 }
 0x24c   : > { %p9673_p5 = pnand %p9672_p0, %p9666_p9 }
 0x24e   : > { %9676 = shalt.err (!%p9673_p5)
}
 0x24f   : > { %8393 = dma.hbm_to_vmem [thread:$0]  (!%p11348_p2), %s10445_s7, 32, %s10449_s6, %s10453_s20, %s11350_s12, %s11350_s12, %s9809_s14  }
 0x250   : > { %s11353_s23 = sld [smem:[#allocation46_spill]] }
 0x256   : > { %p11354_p3 = scmp.ne.s32.totalorder %s11353_s23, 0 }
 0x257   : > { %s10483_s4 = sand.u32 (!%p11354_p3), 1, %s9775_s30   ;;  %p11355_p12 = scmp.ne.s32.totalorder (!%p11354_p3), %s11330_s25, 0 }
 0x258   : > { %778 = sbr.rel (%p11354_p3) target bundleno = 4344 (0x10f8), region = 96  ;;  %s7653_s29 = sshll.u32 (!%p11354_p3), %s10483_s4, 4 }
 0x259   : > { %s781_s11 = scalar_lea.sflag (!%p11354_p3), [#allocation3], %s10483_s4  ;;  %s10489_s1 = scalar_lea.vmem (!%p11354_p3), [#allocation2], %s7653_s29 }
 0x25f   : > { %9722 = dma.done.wait (%p11355_p12), %s781_s11, 256  }
 0x260   : > { %9724 = vsyncadd (%p11355_p12), %s781_s11, 4294967040  ;;  %s789_s14 = sand.u32 1, %s9940_s2   ;;  %s7654_s12 = sshll.u32 %s10483_s4, 5 }
 0x261   : > { %s790_s7 = scalar_lea.sflag [#allocation6], %s789_s14  ;;  %s10497_s6 = scalar_lea.vmem [#allocation5], %s7654_s12 }
 0x262   : > { %9726 = dma.done.wait (%p11355_p12), %s790_s7, 544  }
 0x263   : > { %9728 = vsyncadd (%p11355_p12), %s790_s7, 4294966752  ;;  %s7655_s20 = sshll.u32 %s10483_s4, 1  ;;  %s808_s19 = scalar_lea.sflag [#allocation9], %s789_s14 }
 0x264   : > { %s10504_s13 = scalar_lea.vmem [#allocation7], %s7655_s20  ;;  %s10506_s22 = scalar_lea.vmem [#allocation8], %s7655_s20 }
 0x265   : > { %9730 = dma.done.wait (%p11355_p12), %s808_s19, 32  }
 0x266   : > { %9732 = vsyncadd (%p11355_p12), %s808_s19, 4294967264  ;;  %p11356_p2 = scmp.eq.s32.totalorder %s9940_s2, 0 }
 0x268   : > { %9734 = dma.done.wait (%p11356_p2), [#allocation9], 12288   ;;  %p11357_p8 = pmov %p11356_p2 }
 0x269   : > { %p11358_p6 = pmov %p11356_p2 }
 0x26a   : > { %9736 = vsyncadd (%p11357_p8), [#allocation9], 4294955008 }
 0x26b   : > { %9738 = dma.done.wait (%p11358_p6), [#allocation12], 4128   ;;  %p11359_p4 = pmov %p11356_p2 }
 0x26c   : > { %p11360_p10 = pmov %p11356_p2 }
 0x26d   : > { %9740 = vsyncadd (%p11359_p4), [#allocation12], 4294963168 }
 0x26e   : > { %9742 = dma.done.wait (%p11360_p10), [#allocation15], 4128   ;;  %p11361_p11 = pmov %p11356_p2 }
 0x26f   : > { %p11362_p7 = pmov %p11356_p2 }
 0x270   : > { %9744 = vsyncadd (%p11361_p11), [#allocation15], 4294963168 }
 0x271   : > { %9746 = dma.done.wait (%p11362_p7), [#allocation18], 12288   ;;  %p11363_p9 = pmov %p11356_p2 }
 0x272   : > { %p11364_p13 = pmov %p11356_p2 }
 0x273   : > { %9748 = vsyncadd (%p11363_p9), [#allocation18], 4294955008 }
 0x274   : > { %9750 = dma.done.wait (%p11364_p13), [#allocation21], 64   ;;  %p11365_p1 = pmov %p11356_p2 }
 0x276   : > { %9752 = vsyncadd (%p11365_p1), [#allocation21], 4294967232  ;;  %p11366_p0 = pmov %p11365_p1 }
 0x278   : > { %9754 = dma.done.wait (%p11366_p0), [#allocation24], 8256   ;;  %p11367_p5 = pmov %p11366_p0 }
 0x279   : > { %p11368_p3 = pmov %p11366_p0 }
 0x27a   : > { %9756 = vsyncadd (%p11367_p5), [#allocation24], 4294959040 }
 0x27b   : > { %9758 = dma.done.wait (%p11368_p3), [#allocation27], 8224   ;;  %p11369_p12 = pmov %p11366_p0 }
 0x27c   : > { %p11370_p2 = pmov %p11366_p0 }
 0x27d   : > { %9760 = vsyncadd (%p11369_p12), [#allocation27], 4294959072 }
 0x27e   : > { %9762 = dma.done.wait (%p11370_p2), [#allocation30], 64   ;;  %p11371_p8 = pmov %p11366_p0 }
 0x27f   : > { %v8491_v0 = vld [vmem:[#allocation10 + $0xc] ss:$24 sps:$4 sm:$0xff]   ;;  %v8495_v2 = vld [vmem:[#allocation10 + $0x8] ss:$24 sps:$4 sm:$0xff]   ;;  %v8497_v4 = vld [vmem:[#allocation10 + $0x3c] ss:$24 sps:$4 sm:$0xff]  }
 0x280   : > { %9764 = vsyncadd (%p11371_p8), [#allocation30], 4294967232  ;;  %v8493_v1 = vld [vmem:[#allocation10 + $0x4] ss:$24 sps:$4 sm:$0xff]   ;;  %1578 = vmatprep.subr.bf16.mxu1 %v8491_v0  ;;  %v8496_v3 = vld [vmem:[#allocation10] ss:$24 sps:$4 sm:$0xff]  }
 0x281   : > { %1535 = vmatprep.subr.bf16.mxu0 %v8493_v1  ;;  %1579 = vmatpush1.bf16.msra.mxu1 %v8495_v2  ;;  %v8499_v5 = vld [vmem:[#allocation10 + $0x34] ss:$24 sps:$4 sm:$0xff]   ;;  %v8501_v6 = vld [vmem:[#allocation10 + $0x38] ss:$24 sps:$4 sm:$0xff]   ;;  %v8505_v9 = vld [vmem:[#allocation10 + $0x64] ss:$24 sps:$4 sm:$0xff]  }
 0x282   : > { %1536 = vmatpush1.bf16.msra.mxu0 %v8496_v3  ;;  %1580 = vmatprep.subr.bf16.mxu1 %v8497_v4  ;;  %v8502_v7 = vld [vmem:[#allocation10 + $0x30] ss:$24 sps:$4 sm:$0xff]   ;;  %v8503_v8 = vld [vmem:[#allocation10 + $0x6c] ss:$24 sps:$4 sm:$0xff]   ;;  %v8508_v11 = vld [vmem:[#allocation10 + $0x60] ss:$24 sps:$4 sm:$0xff]  }
 0x283   : > { %1537 = vmatprep.subr.bf16.mxu0 %v8499_v5  ;;  %v8507_v10 = vld [vmem:[#allocation10 + $0x68] ss:$24 sps:$4 sm:$0xff]   ;;  %v8509_v12 = vld [vmem:[#allocation10 + $0x9c] ss:$24 sps:$4 sm:$0xff]   ;;  %v8513_v14 = vld [vmem:[#allocation10 + $0x98] ss:$24 sps:$4 sm:$0xff]  }
 0x284   : > { %v8511_v13 = vld [vmem:[#allocation10 + $0x94] ss:$24 sps:$4 sm:$0xff]   ;;  %v8514_v15 = vld [vmem:[#allocation10 + $0x90] ss:$24 sps:$4 sm:$0xff]   ;;  %v8517_v17 = vld [vmem:[#allocation10 + $0xc4] ss:$24 sps:$4 sm:$0xff]  }
 0x285   : > { %1581 = vmatpush1.bf16.msra.mxu1 %v8501_v6  ;;  %v8515_v16 = vld [vmem:[#allocation10 + $0xcc] ss:$24 sps:$4 sm:$0xff]   ;;  %v8519_v18 = vld [vmem:[#allocation10 + $0xc8] ss:$24 sps:$4 sm:$0xff]   ;;  %v8521_v20 = vld [vmem:[#allocation10 + $0xfc] ss:$24 sps:$4 sm:$0xff]  }
 0x286   : > { %1538 = vmatpush1.bf16.msra.mxu0 %v8502_v7  ;;  %1582 = vmatprep.subr.bf16.mxu1 %v8503_v8  ;;  %v8520_v19 = vld [vmem:[#allocation10 + $0xc0] ss:$24 sps:$4 sm:$0xff]   ;;  %v8523_v21 = vld [vmem:[#allocation10 + $0xf4] ss:$24 sps:$4 sm:$0xff]   ;;  %v8526_v23 = vld [vmem:[#allocation10 + $0xf0] ss:$24 sps:$4 sm:$0xff]  }
 0x287   : > { %1539 = vmatprep.subr.bf16.mxu0 %v8505_v9  ;;  %v8525_v22 = vld [vmem:[#allocation10 + $0xf8] ss:$24 sps:$4 sm:$0xff]   ;;  %v8527_v24 = vld [vmem:[#allocation10 + $0x12c] ss:$24 sps:$4 sm:$0xff]   ;;  %v8531_v26 = vld [vmem:[#allocation10 + $0x128] ss:$24 sps:$4 sm:$0xff]  }
 0x288   : > { %v8529_v25 = vld [vmem:[#allocation10 + $0x124] ss:$24 sps:$4 sm:$0xff]   ;;  %v8532_v27 = vld [vmem:[#allocation10 + $0x120] ss:$24 sps:$4 sm:$0xff]   ;;  %v8535_v29 = vld [vmem:[#allocation10 + $0x154] ss:$24 sps:$4 sm:$0xff]  }
 0x289   : > { %1583 = vmatpush1.bf16.msra.mxu1 %v8507_v10  ;;  %v8533_v28 = vld [vmem:[#allocation10 + $0x15c] ss:$24 sps:$4 sm:$0xff]   ;;  %v8537_v30 = vld [vmem:[#allocation10 + $0x158] ss:$24 sps:$4 sm:$0xff]   ;;  %v8539_v32 = vld [vmem:[#allocation10 + $0x18c] ss:$24 sps:$4 sm:$0xff]  }
 0x28a   : > { %1540 = vmatpush1.bf16.msra.mxu0 %v8508_v11  ;;  %1584 = vmatprep.subr.bf16.mxu1 %v8509_v12  ;;  %v8538_v31 = vld [vmem:[#allocation10 + $0x150] ss:$24 sps:$4 sm:$0xff]   ;;  %v8541_v33 = vld [vmem:[#allocation10 + $0x184] ss:$24 sps:$4 sm:$0xff]   ;;  %v8544_v35 = vld [vmem:[#allocation10 + $0x180] ss:$24 sps:$4 sm:$0xff]  }
 0x28b   : > { %1541 = vmatprep.subr.bf16.mxu0 %v8511_v13  ;;  %v8543_v34 = vld [vmem:[#allocation10 + $0x188] ss:$24 sps:$4 sm:$0xff]   ;;  %v8545_v36 = vld [vmem:[#allocation10 + $0x1bc] ss:$24 sps:$4 sm:$0xff]   ;;  %v8549_v38 = vld [vmem:[#allocation10 + $0x1b8] ss:$24 sps:$4 sm:$0xff]  }
 0x28c   : > { %v8547_v37 = vld [vmem:[#allocation10 + $0x1b4] ss:$24 sps:$4 sm:$0xff]   ;;  %v8550_v39 = vld [vmem:[#allocation10 + $0x1b0] ss:$24 sps:$4 sm:$0xff]   ;;  %v8553_v41 = vld [vmem:[#allocation10 + $0x1e4] ss:$24 sps:$4 sm:$0xff]  }
 0x28d   : > { %1585 = vmatpush1.bf16.msra.mxu1 %v8513_v14  ;;  %v8551_v40 = vld [vmem:[#allocation10 + $0x1ec] ss:$24 sps:$4 sm:$0xff]   ;;  %v8555_v42 = vld [vmem:[#allocation10 + $0x1e8] ss:$24 sps:$4 sm:$0xff]   ;;  %v8557_v44 = vld [vmem:[#allocation10 + $0x21c] ss:$24 sps:$4 sm:$0xff]  }
 0x28e   : > { %1542 = vmatpush1.bf16.msra.mxu0 %v8514_v15  ;;  %1586 = vmatprep.subr.bf16.mxu1 %v8515_v16  ;;  %v8556_v43 = vld [vmem:[#allocation10 + $0x1e0] ss:$24 sps:$4 sm:$0xff]   ;;  %v8559_v45 = vld [vmem:[#allocation10 + $0x214] ss:$24 sps:$4 sm:$0xff]   ;;  %v8562_v49 = vld [vmem:[#allocation10 + $0x210] ss:$24 sps:$4 sm:$0xff]  }
 0x28f   : > { %1543 = vmatprep.subr.bf16.mxu0 %v8517_v17  ;;  %v947_v46 = vld [vmem:[%s10489_s1] sm:$0xff]  ;;  %v948_v47 = vld [vmem:[%s10489_s1 + $0x8] sm:$0xff]  ;;  %vm9812_vm0 = vmmov 0   ;;  %vm2663_vm1 = vcmask 1043456   ;;  %vm2599_vm6 = vcmask 64512   ;;  %vm5500_vm13 = vcmask 130048  }
 0x290   : > { %v8561_v48 = vld [vmem:[#allocation10 + $0x218] ss:$24 sps:$4 sm:$0xff]   ;;  %v7674_v50 = vcombine.high %v947_v46, %v948_v47  ;;  %v8563_v51 = vld [vmem:[#allocation10 + $0x24c] ss:$24 sps:$4 sm:$0xff]   ;;  %v8567_v53 = vld [vmem:[#allocation10 + $0x248] ss:$24 sps:$4 sm:$0xff]   ;;  %v10546_v5 = vcombine.low %v947_v46, %v948_v47 }
 0x291   : > { %1587 = vmatpush1.bf16.msra.mxu1 %v8519_v18  ;;  %v8565_v52 = vld [vmem:[#allocation10 + $0x244] ss:$24 sps:$4 sm:$0xff]   ;;  %v8568_v54 = vld [vmem:[#allocation10 + $0x240] ss:$24 sps:$4 sm:$0xff]   ;;  %v8571_v56 = vld [vmem:[#allocation10 + $0x274] ss:$24 sps:$4 sm:$0xff]  }
 0x292   : > { %1544 = vmatpush1.bf16.msra.mxu0 %v8520_v19  ;;  %1588 = vmatprep.subr.bf16.mxu1 %v8521_v20  ;;  %v8569_v55 = vld [vmem:[#allocation10 + $0x27c] ss:$24 sps:$4 sm:$0xff]   ;;  %v8573_v57 = vld [vmem:[#allocation10 + $0x278] ss:$24 sps:$4 sm:$0xff]   ;;  %v8575_v59 = vld [vmem:[#allocation10 + $0x2ac] ss:$24 sps:$4 sm:$0xff]  }
 0x293   : > { %1545 = vmatprep.subr.bf16.mxu0 %v8523_v21  ;;  %1610 = vmatprep.mubr.bf16.mxu1 %v7674_v50  ;;  %v8574_v58 = vld [vmem:[#allocation10 + $0x270] ss:$24 sps:$4 sm:$0xff]   ;;  %v8577_v60 = vld [vmem:[#allocation10 + $0x2a4] ss:$24 sps:$4 sm:$0xff]   ;;  %v8580_v62 = vld [vmem:[#allocation10 + $0x2a0] ss:$24 sps:$4 sm:$0xff]  }
 0x294   : > { %1567 = vmatprep.mubr.bf16.mxu0 %v7674_v50  ;;  %v8579_v61 = vld [vmem:[#allocation10 + $0x2a8] ss:$24 sps:$4 sm:$0xff]   ;;  %v8581_v63 = vld [vmem:[#allocation10 + $0x2dc] ss:$24 sps:$4 sm:$0xff]   ;;  %v8585_v1 = vld [vmem:[#allocation10 + $0x2d8] ss:$24 sps:$4 sm:$0xff]  }
 0x295   : > { %1589 = vmatpush1.bf16.msra.mxu1 %v8525_v22  ;;  %v8583_v0 = vld [vmem:[#allocation10 + $0x2d4] ss:$24 sps:$4 sm:$0xff]   ;;  %v8586_v2 = vld [vmem:[#allocation10 + $0x2d0] ss:$24 sps:$4 sm:$0xff]   ;;  %v8594_v6 = vld [vmem:[#allocation10 + $0x44] ss:$24 sps:$4 sm:$0xff]  }
 0x296   : > { %1546 = vmatpush1.bf16.msra.mxu0 %v8526_v23  ;;  %1590 = vmatprep.subr.bf16.mxu1 %v8527_v24  ;;  %v8591_v3 = vld [vmem:[#allocation10 + $0x14] ss:$24 sps:$4 sm:$0xff]   ;;  %v8589_v4 = vld [vmem:[#allocation10 + $0x10] ss:$24 sps:$4 sm:$0xff]   ;;  %v8592_v7 = vld [vmem:[#allocation10 + $0x40] ss:$24 sps:$4 sm:$0xff]  }
 0x297   : > { %1547 = vmatprep.subr.bf16.mxu0 %v8529_v25  ;;  %v8597_v8 = vld [vmem:[#allocation10 + $0x74] ss:$24 sps:$4 sm:$0xff]   ;;  %v8595_v9 = vld [vmem:[#allocation10 + $0x70] ss:$24 sps:$4 sm:$0xff]   ;;  %v8600_v10 = vld [vmem:[#allocation10 + $0xa4] ss:$24 sps:$4 sm:$0xff]  }
 0x298   : > { %v8598_v11 = vld [vmem:[#allocation10 + $0xa0] ss:$24 sps:$4 sm:$0xff]   ;;  %v8603_v12 = vld [vmem:[#allocation10 + $0xd4] ss:$24 sps:$4 sm:$0xff]   ;;  %v8601_v13 = vld [vmem:[#allocation10 + $0xd0] ss:$24 sps:$4 sm:$0xff]  }
 0x299   : > { %1591 = vmatpush1.bf16.msra.mxu1 %v8531_v26  ;;  %v8606_v14 = vld [vmem:[#allocation10 + $0x104] ss:$24 sps:$4 sm:$0xff]   ;;  %v8604_v15 = vld [vmem:[#allocation10 + $0x100] ss:$24 sps:$4 sm:$0xff]   ;;  %v8609_v16 = vld [vmem:[#allocation10 + $0x134] ss:$24 sps:$4 sm:$0xff]  }
 0x29a   : > { %1548 = vmatpush1.bf16.msra.mxu0 %v8532_v27  ;;  %1592 = vmatprep.subr.bf16.mxu1 %v8533_v28  ;;  %v8607_v17 = vld [vmem:[#allocation10 + $0x130] ss:$24 sps:$4 sm:$0xff]   ;;  %v8612_v18 = vld [vmem:[#allocation10 + $0x164] ss:$24 sps:$4 sm:$0xff]   ;;  %v8610_v19 = vld [vmem:[#allocation10 + $0x160] ss:$24 sps:$4 sm:$0xff]  }
 0x29b   : > { %1549 = vmatprep.subr.bf16.mxu0 %v8535_v29  ;;  %v8615_v20 = vld [vmem:[#allocation10 + $0x194] ss:$24 sps:$4 sm:$0xff]   ;;  %v8613_v21 = vld [vmem:[#allocation10 + $0x190] ss:$24 sps:$4 sm:$0xff]   ;;  %v8618_v22 = vld [vmem:[#allocation10 + $0x1c4] ss:$24 sps:$4 sm:$0xff]  }
 0x29c   : > { %v8616_v23 = vld [vmem:[#allocation10 + $0x1c0] ss:$24 sps:$4 sm:$0xff]   ;;  %v8621_v24 = vld [vmem:[#allocation10 + $0x1f4] ss:$24 sps:$4 sm:$0xff]   ;;  %v8619_v25 = vld [vmem:[#allocation10 + $0x1f0] ss:$24 sps:$4 sm:$0xff]  }
 0x29d   : > { %1593 = vmatpush1.bf16.msra.mxu1 %v8537_v30  ;;  %v8624_v26 = vld [vmem:[#allocation10 + $0x224] ss:$24 sps:$4 sm:$0xff]   ;;  %v8622_v27 = vld [vmem:[#allocation10 + $0x220] ss:$24 sps:$4 sm:$0xff]   ;;  %v8627_v28 = vld [vmem:[#allocation10 + $0x254] ss:$24 sps:$4 sm:$0xff]  }
 0x29e   : > { %1550 = vmatpush1.bf16.msra.mxu0 %v8538_v31  ;;  %1594 = vmatprep.subr.bf16.mxu1 %v8539_v32  ;;  %v8625_v29 = vld [vmem:[#allocation10 + $0x250] ss:$24 sps:$4 sm:$0xff]   ;;  %v9811_v30 = vmov 0.0   ;;  %v8630_v31 = vld [vmem:[#allocation10 + $0x284] ss:$24 sps:$4 sm:$0xff]   ;;  %s8128_s25 = sshll.u32 %s9940_s2, 8 }
 0x29f   : > { %1551 = vmatprep.subr.bf16.mxu0 %v8541_v33  ;;  %v8628_v32 = vld [vmem:[#allocation10 + $0x280] ss:$24 sps:$4 sm:$0xff]   ;;  %v8633_v33 = vld [vmem:[#allocation10 + $0x2b4] ss:$24 sps:$4 sm:$0xff]   ;;  %s940_s24 = scalar_lea.vmem [#allocation32], %s7653_s29  ;;  %s11372_s9 = sld [smem:[#allocation67_spill]] }
 0x2a0   : > { %s7339_s8 = sshll.u32 %s940_s24, 4  ;;  %s7325_s2 = scalar_lea.sflag [#allocation4], %s10483_s4  ;;  %s11194_s8 = int_to_ptr.vmem [resolvable:$true] %s7339_s8 }
 0x2a1   : > { %1595 = vmatpush1.bf16.msra.mxu1 %v8543_v34  ;;  %v8631_v34 = vld [vmem:[#allocation10 + $0x2b0] ss:$24 sps:$4 sm:$0xff]   ;;  %s9677_s11 = scalar_lea.vmem %s11194_s8, 256  ;;  %p11373_p4 = scmp.ne.s32.totalorder %s11331_s26, 0 }
 0x2a2   : > { %1552 = vmatpush1.bf16.msra.mxu0 %v8544_v35  ;;  %1596 = vmatprep.subr.bf16.mxu1 %v8545_v36  ;;  %v8636_v35 = vld [vmem:[#allocation10 + $0x2e4] ss:$24 sps:$4 sm:$0xff]   ;;  %v8634_v36 = vld [vmem:[#allocation10 + $0x2e0] ss:$24 sps:$4 sm:$0xff]   ;;  %p9678_p6 = scmp.ne.s32.totalorder %s11194_s8, %s9677_s11  ;;  %s9816_s29 = smov [#allocation32]  }
 0x2a3   : > { %1553 = vmatprep.subr.bf16.mxu0 %v8547_v37  ;;  %v9813_v37 = vmov 1983009808  }
 0x2a4   : > { %p9679_p10 = pnand %p9678_p6, %p11373_p4 }
 0x2a5   : > { %1597 = vmatpush1.bf16.msra.mxu1 %v8549_v38  ;;  %v1702_v38 = vunpack.c.l.s4 %v9813_v37  ;;  %s11192_s23 = scalar_lea.hbm %s11372_s9, %s8128_s25 }
 0x2a6   : > { %1554 = vmatpush1.bf16.msra.mxu0 %v8550_v39  ;;  %1598 = vmatprep.subr.bf16.mxu1 %v8551_v40  ;;  %v1704_v39 = vlaneseq  ;;  %p9680_p11 = pneg %p9679_p10 }
 0x2a7   : > { %1555 = vmatprep.subr.bf16.mxu0 %v8553_v41  ;;  %v1703_v40 = vunpack.c.0.s8 %v1702_v38 }
 0x2a8   : > { %v10558_v41 = vshrl.u32 %v1704_v39, 7 }
 0x2a9   : > { %1599 = vmatpush1.bf16.msra.mxu1 %v8555_v42  ;;  %v9814_v42 = vmov 1934713408  }
 0x2aa   : > { %1556 = vmatpush1.bf16.msra.mxu0 %v8556_v43  ;;  %1600 = vmatprep.subr.bf16.mxu1 %v8557_v44  ;;  %v1733_v43 = vunpack.c.l.s4 %v9814_v42  ;;  %v10561_v44 = vsub.s32 %v1703_v40, %v10558_v41 }
 0x2ab   : > { %1557 = vmatprep.subr.bf16.mxu0 %v8559_v45 }
 0x2ac   : > { %v1734_v45 = vunpack.c.0.s8 %v1733_v43 }
 0x2ad   : > { %1601 = vmatpush1.bf16.msra.mxu1 %v8561_v48 }
 0x2ae   : > { %1558 = vmatpush1.bf16.msra.mxu0 %v8562_v49  ;;  %1602 = vmatprep.subr.bf16.mxu1 %v8563_v51 }
 0x2af   : > { %1559 = vmatprep.subr.bf16.mxu0 %v8565_v52 }
 0x2b1   : > { %1603 = vmatpush1.bf16.msra.mxu1 %v8567_v53  ;;  %v10566_v53 = vsub.s32 %v1734_v45, %v10558_v41 }
 0x2b2   : > { %1560 = vmatpush1.bf16.msra.mxu0 %v8568_v54  ;;  %1604 = vmatprep.subr.bf16.mxu1 %v8569_v55 }
 0x2b3   : > { %1561 = vmatprep.subr.bf16.mxu0 %v8571_v56 }
 0x2b5   : > { %1605 = vmatpush1.bf16.msra.mxu1 %v8573_v57 }
 0x2b6   : > { %1562 = vmatpush1.bf16.msra.mxu0 %v8574_v58  ;;  %1606 = vmatprep.subr.bf16.mxu1 %v8575_v59 }
 0x2b7   : > { %1563 = vmatprep.subr.bf16.mxu0 %v8577_v60 }
 0x2b9   : > { %1607 = vmatpush1.bf16.msra.mxu1 %v8579_v61 }
 0x2ba   : > { %1564 = vmatpush1.bf16.msra.mxu0 %v8580_v62  ;;  %1608 = vmatprep.subr.bf16.mxu1 %v8581_v63 }
 0x2bb   : > { %1565 = vmatprep.subr.bf16.mxu0 %v8583_v0 }
 0x2bd   : > { %1609 = vmatpush1.bf16.msra.mxu1 %v8585_v1 }
 0x2be   : > { %1566 = vmatpush1.bf16.msra.mxu0 %v8586_v2  ;;  %8185 = vmatprep.subr.bf16.mxu1 %v9811_v30 }
 0x2bf   : > { %1621 = vmatprep.subr.bf16.mxu0 %v8591_v3 }
 0x2c0   : > { %1611 = vmatmul.mubr.bf16.vlgmr.msra.gmra.mrb[0].mxu1 %v10546_v5 }
 0x2c1   : > { %1568 = vmatmul.mubr.bf16.vlgmr.msra.gmra.mrb[0].mxu0 %v10546_v5  ;;  %8187 = vmatprep.mubr.msk.bf16.mxu1 %vm9812_vm0, %v9811_v30 }
 0x2c2   : > { %1622 = vmatpush1.bf16.msra.mxu0 %v8589_v4  ;;  %1653 = vmatprep.mubr.bf16.mxu0 %v7674_v50 }
 0x2c3   : > { %1623 = vmatprep.subr.bf16.mxu0 %v8594_v6 }
 0x2c6   : > { %1624 = vmatpush1.bf16.msra.mxu0 %v8592_v7 }
 0x2c7   : > { %1625 = vmatprep.subr.bf16.mxu0 %v8597_v8 }
 0x2ca   : > { %1626 = vmatpush1.bf16.msra.mxu0 %v8595_v9 }
 0x2cb   : > { %1627 = vmatprep.subr.bf16.mxu0 %v8600_v10 }
 0x2ce   : > { %1628 = vmatpush1.bf16.msra.mxu0 %v8598_v11 }
 0x2cf   : > { %1629 = vmatprep.subr.bf16.mxu0 %v8603_v12 }
 0x2d2   : > { %1630 = vmatpush1.bf16.msra.mxu0 %v8601_v13 }
 0x2d3   : > { %1631 = vmatprep.subr.bf16.mxu0 %v8606_v14 }
 0x2d6   : > { %1632 = vmatpush1.bf16.msra.mxu0 %v8604_v15 }
 0x2d7   : > { %1633 = vmatprep.subr.bf16.mxu0 %v8609_v16 }
 0x2da   : > { %1634 = vmatpush1.bf16.msra.mxu0 %v8607_v17 }
 0x2db   : > { %1635 = vmatprep.subr.bf16.mxu0 %v8612_v18 }
 0x2de   : > { %1636 = vmatpush1.bf16.msra.mxu0 %v8610_v19 }
 0x2df   : > { %1637 = vmatprep.subr.bf16.mxu0 %v8615_v20 }
 0x2e2   : > { %1638 = vmatpush1.bf16.msra.mxu0 %v8613_v21 }
 0x2e3   : > { %1639 = vmatprep.subr.bf16.mxu0 %v8618_v22 }
 0x2e6   : > { %1640 = vmatpush1.bf16.msra.mxu0 %v8616_v23 }
 0x2e7   : > { %1641 = vmatprep.subr.bf16.mxu0 %v8621_v24 }
 0x2ea   : > { %1642 = vmatpush1.bf16.msra.mxu0 %v8619_v25 }
 0x2eb   : > { %1643 = vmatprep.subr.bf16.mxu0 %v8624_v26 }
 0x2ee   : > { %1644 = vmatpush1.bf16.msra.mxu0 %v8622_v27 }
 0x2ef   : > { %1645 = vmatprep.subr.bf16.mxu0 %v8627_v28 }
 0x2f2   : > { %1646 = vmatpush1.bf16.msra.mxu0 %v8625_v29 }
 0x2f3   : > { %1647 = vmatprep.subr.bf16.mxu0 %v8630_v31 }
 0x2f6   : > { %1648 = vmatpush1.bf16.msra.mxu0 %v8628_v32 }
 0x2f7   : > { %1649 = vmatprep.subr.bf16.mxu0 %v8633_v33 }
 0x2fa   : > { %1650 = vmatpush1.bf16.msra.mxu0 %v8631_v34 }
 0x2fb   : > { %1651 = vmatprep.subr.bf16.mxu0 %v8636_v35 }
 0x2fe   : > { %1652 = vmatpush1.bf16.msra.mxu0 %v8634_v36 }
 0x2ff   : > { %8161 = vmatprep.subr.bf16.mxu0 %v9811_v30 }
 0x301   : > { %1654 = vmatmul.mubr.bf16.vlgmr.msra.gmra.mrb[4].mxu0 %v10546_v5 }
 0x302   : > { %8163 = vmatprep.mubr.msk.bf16.mxu0 %vm9812_vm0, %v9811_v30 }
 0x393   : > { %v1612_v46 = vpop.f32.mrb[0].mxu1 }
 0x394   : > { %v1569_v47 = vpop.f32.mrb[0].mxu0  ;;  %v1936_v48 = vcombine.high %v1612_v46, %v9811_v30  ;;  %v1943_v49 = vrot.slane %v1612_v46, %v10561_v44  ;;  %v1614_v51 = vpop.f32.mrb[1].mxu1 }
 0x395   : > { %v1664_v50 = vmul.f32 0.088388346, %v1569_v47  ;;  %v1571_v52 = vpop.f32.mrb[1].mxu0  ;;  %v1951_v54 = vcombine.high %v1614_v51, %v9811_v30  ;;  %v1958_v55 = vrot.slane %v1614_v51, %v10561_v44  ;;  %v1616_v57 = vpop.f32.mrb[2].mxu1 }
 0x396   : > { %v1665_v56 = vmul.f32 0.088388346, %v1571_v52  ;;  %v1573_v58 = vpop.f32.mrb[2].mxu0  ;;  %v1950_v59 = vrot.slane %v1936_v48, %v10561_v44  ;;  %v2002_v62 = vcombine.high %v1616_v57, %v9811_v30  ;;  %v1618_v63 = vpop.f32.mrb[3].mxu1  ;;  %v2009_v7 = vrot.slane %v1616_v57, %v10561_v44 }
 0x397   : > { %v1700_v60 = vcombine.high %v1664_v50, %v9811_v30  ;;  %v1707_v61 = vrot.slane %v1664_v50, %v10561_v44  ;;  %v1575_v0 = vpop.f32.mrb[3].mxu0  ;;  %v1965_v1 = vrot.slane %v1951_v54, %v10561_v44  ;;  %v1966_v2 = vcombine.low %v1943_v49, %v1958_v55 }
 0x398   : > { %v1967_v3 = vcombine.high %v1943_v49, %v1958_v55  ;;  %v1715_v4 = vcombine.high %v1665_v56, %v9811_v30  ;;  %v1722_v6 = vrot.slane %v1665_v56, %v10561_v44  ;;  %v2016_v8 = vrot.slane %v2002_v62, %v10561_v44 }
 0x399   : > { %v1714_v5 = vrot.slane %v1700_v60, %v10561_v44  ;;  %v1974_v9 = vrot.slane %v1966_v2, %v10566_v53  ;;  %v1982_v11 = vcombine.low %v1950_v59, %v1965_v1  ;;  %v1983_v12 = vcombine.high %v1950_v59, %v1965_v1 }
 0x39a   : > { %v1981_v10 = vrot.slane %v1967_v3, %v10566_v53  ;;  %v1729_v13 = vrot.slane %v1715_v4, %v10561_v44  ;;  %v1730_v14 = vcombine.low %v1707_v61, %v1722_v6  ;;  %v1731_v15 = vcombine.high %v1707_v61, %v1722_v6 }
 0x39b   : > { %v1666_v16 = vmul.f32 0.088388346, %v1573_v58  ;;  %v1990_v17 = vrot.slane %v1982_v11, %v10566_v53  ;;  %v1997_v18 = vrot.slane %v1983_v12, %v10566_v53  ;;  %v2017_v47 = vcombine.high %v1618_v63, %v9811_v30 }
 0x39c   : > { %v2068_v19 = vcombine.low %v1974_v9, %v1981_v10  ;;  %v7775_v20 = vcombine.high %v1974_v9, %v1981_v10  ;;  %v1738_v21 = vrot.slane %v1730_v14, %v10566_v53  ;;  %v1745_v22 = vrot.slane %v1731_v15, %v10566_v53 }
 0x39d   : > { %v1746_v23 = vcombine.low %v1714_v5, %v1729_v13  ;;  %v1747_v24 = vcombine.high %v1714_v5, %v1729_v13  ;;  %v2084_v27 = vcombine.low %v1990_v17, %v1997_v18  ;;  %v7776_v28 = vcombine.high %v1990_v17, %v1997_v18 }
 0x39e   : > { %v2075_v25 = vrot.slane %v2068_v19, %v10561_v44  ;;  %v2083_v26 = vrot.slane %v7775_v20, %v10561_v44  ;;  %v1832_v32 = vcombine.low %v1738_v21, %v1745_v22  ;;  %v7771_v33 = vcombine.high %v1738_v21, %v1745_v22 }
 0x39f   : > { %v1754_v29 = vrot.slane %v1746_v23, %v10566_v53  ;;  %v1761_v31 = vrot.slane %v1747_v24, %v10566_v53  ;;  %v2091_v34 = vrot.slane %v2084_v27, %v10561_v44  ;;  %v2099_v35 = vrot.slane %v7776_v28, %v10561_v44 }
 0x3a0   : > { %v2100_v36 = vcombine.low %v2075_v25, %v2083_v26  ;;  %v1766_v37 = vcombine.high %v1666_v16, %v9811_v30  ;;  %v1839_v38 = vrot.slane %v1832_v32, %v10561_v44  ;;  %v1847_v40 = vrot.slane %v7771_v33, %v10561_v44 }
 0x3a1   : > { %v1848_v42 = vcombine.low %v1754_v29, %v1761_v31  ;;  %v7772_v43 = vcombine.high %v1754_v29, %v1761_v31  ;;  %v1773_v45 = vrot.slane %v1666_v16, %v10561_v44  ;;  %v2024_v48 = vrot.slane %v1618_v63, %v10561_v44 }
 0x3a2   : > { %v1780_v46 = vrot.slane %v1766_v37, %v10561_v44  ;;  %v1667_v51 = vmul.f32 0.088388346, %v1575_v0  ;;  %v2107_v52 = vrot.slane %v2100_v36, %v10566_v53  ;;  %v2031_v54 = vrot.slane %v2017_v47, %v10561_v44 }
 0x3a3   : > { %v1855_v49 = vrot.slane %v1848_v42, %v10561_v44  ;;  %v1863_v50 = vrot.slane %v7772_v43, %v10561_v44  ;;  %v2032_v55 = vcombine.low %v2009_v7, %v2024_v48  ;;  %v2033_v56 = vcombine.high %v2009_v7, %v2024_v48 }
 0x3a4   : > { %v2108_v57 = vcombine.low %v2091_v34, %v2099_v35  ;;  %v1781_v58 = vcombine.high %v1667_v51, %v9811_v30  ;;  %v1788_v59 = vrot.slane %v1667_v51, %v10561_v44  ;;  %v1864_v60 = vcombine.low %v1839_v38, %v1847_v40 }
 0x3a5   : > { %v1872_v61 = vcombine.low %v1855_v49, %v1863_v50  ;;  %v2040_v62 = vrot.slane %v2032_v55, %v10566_v53  ;;  %v2047_v63 = vrot.slane %v2033_v56, %v10566_v53  ;;  %v2048_v1 = vcombine.low %v2016_v8, %v2031_v54 }
 0x3a6   : > { %v2049_v2 = vcombine.high %v2016_v8, %v2031_v54  ;;  %v1795_v0 = vrot.slane %v1781_v58, %v10561_v44  ;;  %v1796_v3 = vcombine.low %v1773_v45, %v1788_v59  ;;  %v1797_v4 = vcombine.high %v1773_v45, %v1788_v59 }
 0x3a7   : > { %v2115_v5 = vrot.slane %v2108_v57, %v10566_v53  ;;  %v2056_v6 = vrot.slane %v2048_v1, %v10566_v53  ;;  %v2118_v9 = vcombine.low %v2040_v62, %v2047_v63  ;;  %v7777_v10 = vcombine.high %v2040_v62, %v2047_v63 }
 0x3a8   : > { %v2063_v7 = vrot.slane %v2049_v2, %v10566_v53  ;;  %v1804_v11 = vrot.slane %v1796_v3, %v10566_v53  ;;  %v1811_v12 = vrot.slane %v1797_v4, %v10566_v53  ;;  %v1812_v13 = vcombine.low %v1780_v46, %v1795_v0 }
 0x3a9   : > { %v1813_v14 = vcombine.high %v1780_v46, %v1795_v0  ;;  %v2125_v8 = vrot.slane %v2118_v9, %v10561_v44  ;;  %v2133_v15 = vrot.slane %v7777_v10, %v10561_v44  ;;  %v2116_v25 = vcombine.low %v2107_v52, %v2115_v5 }
 0x3aa   : > { %v2134_v16 = vcombine.low %v2056_v6, %v2063_v7  ;;  %v7778_v17 = vcombine.high %v2056_v6, %v2063_v7  ;;  %v1820_v18 = vrot.slane %v1812_v13, %v10566_v53  ;;  %v1882_v20 = vcombine.low %v1804_v11, %v1811_v12 }
 0x3ab   : > { %v1827_v19 = vrot.slane %v1813_v14, %v10566_v53  ;;  %v7773_v21 = vcombine.high %v1804_v11, %v1811_v12  ;;  %v2150_v24 = vcombine.low %v2125_v8, %v2133_v15  ;;  %v2168_v31 = vpack.c.bf16 %v2116_v25, %v2116_v25 }
 0x3ac   : > { %v2141_v22 = vrot.slane %v2134_v16, %v10561_v44  ;;  %v2149_v23 = vrot.slane %v7778_v17, %v10561_v44  ;;  %v1889_v26 = vrot.slane %v1882_v20, %v10561_v44  ;;  %v1871_v32 = vrot.slane %v1864_v60, %v10566_v53 }
 0x3ad   : > { %v1897_v27 = vrot.slane %v7773_v21, %v10561_v44  ;;  %v1898_v28 = vcombine.low %v1820_v18, %v1827_v19  ;;  %v7774_v29 = vcombine.high %v1820_v18, %v1827_v19  ;;  %v1879_v33 = vrot.slane %v1872_v61, %v10566_v53  ;;  %8162 = vmatpush3.bf16.xpose.msra.mxu0 %v2168_v31 }
 0x3ae   : > { %v2117_v34 = vcombine.high %v2107_v52, %v2115_v5  ;;  %v2158_v37 = vcombine.low %v2141_v22, %v2149_v23  ;;  %8167 = vmatprep.subr.bf16.mxu0 %v9811_v30  ;;  %v2157_v43 = vrot.slane %v2150_v24, %v10566_v53 }
 0x3af   : > { %v1905_v35 = vrot.slane %v1898_v28, %v10561_v44  ;;  %v1913_v36 = vrot.slane %v7774_v29, %v10561_v44  ;;  %v1880_v38 = vcombine.low %v1871_v32, %v1879_v33  ;;  %v1881_v40 = vcombine.high %v1871_v32, %v1879_v33 }
 0x3b0   : > { %v1914_v42 = vcombine.low %v1889_v26, %v1897_v27  ;;  %v2165_v45 = vrot.slane %v2158_v37, %v10566_v53  ;;  %v2169_v55 = vpack.c.bf16 %v2117_v34, %v2117_v34 }
 0x3b1   : > { %v1922_v46 = vcombine.low %v1905_v35, %v1913_v36  ;;  %v1932_v51 = vpack.c.bf16 %v1880_v38, %v1880_v38  ;;  %v1933_v56 = vpack.c.bf16 %v1881_v40, %v1881_v40 }
 0x3b2   : > { %v1921_v47 = vrot.slane %v1914_v42, %v10566_v53  ;;  %v2166_v48 = vcombine.low %v2157_v43, %v2165_v45  ;;  %v2167_v50 = vcombine.high %v2157_v43, %v2165_v45 }
 0x3b3   : > { %v1929_v49 = vrot.slane %v1922_v46, %v10566_v53 }
 0x3b4   : > { %8164 = vmatmul.mubr.bf16.vlgmr.msra.gmra.mrb[8].mxu0 %v1932_v51  ;;  %v2170_v57 = vpack.c.bf16 %v2166_v48, %v2166_v48  ;;  %v2171_v59 = vpack.c.bf16 %v2167_v50, %v2167_v50 }
 0x3b5   : > { %v1930_v52 = vcombine.low %v1921_v47, %v1929_v49  ;;  %v1931_v54 = vcombine.high %v1921_v47, %v1929_v49  ;;  %8168 = vmatpush3.bf16.xpose.msra.mxu0 %v2169_v55  ;;  %8169 = vmatprep.mubr.msk.bf16.mxu0 %vm9812_vm0, %v9811_v30 }
 0x3b6   : > { %8173 = vmatprep.subr.bf16.mxu0 %v9811_v30 }
 0x3b7   : > { %v1934_v58 = vpack.c.bf16 %v1930_v52, %v1930_v52  ;;  %v1935_v60 = vpack.c.bf16 %v1931_v54, %v1931_v54 }
 0x3bc   : > { %8170 = vmatmul.mubr.bf16.vlgmr.msra.gmra.mrb[12].mxu0 %v1933_v56 }
 0x3bd   : > { %8174 = vmatpush3.bf16.xpose.msra.mxu0 %v2170_v57  ;;  %8175 = vmatprep.mubr.msk.bf16.mxu0 %vm9812_vm0, %v9811_v30 }
 0x3be   : > { %8179 = vmatprep.subr.bf16.mxu0 %v9811_v30 }
 0x3c4   : > { %8176 = vmatmul.mubr.bf16.vlgmr.msra.gmra.mrb[16].mxu0 %v1934_v58 }
 0x3c5   : > { %8180 = vmatpush3.bf16.xpose.msra.mxu0 %v2171_v59  ;;  %8181 = vmatprep.mubr.msk.bf16.mxu0 %vm9812_vm0, %v9811_v30 }
 0x3cc   : > { %8182 = vmatmul.mubr.bf16.vlgmr.msra.gmra.mrb[20].mxu0 %v1935_v60 }
 0x3d4   : > { %v1655_v61 = vpop.f32.mrb[4].mxu0 }
 0x3d5   : > { %v2172_v62 = vcombine.high %v1655_v61, %v9811_v30  ;;  %v2179_v63 = vrot.slane %v1655_v61, %v10561_v44  ;;  %v1657_v1 = vpop.f32.mrb[5].mxu0 }
 0x3d6   : > { %v2187_v2 = vcombine.high %v1657_v1, %v9811_v30  ;;  %v2194_v0 = vrot.slane %v1657_v1, %v10561_v44  ;;  %v1659_v3 = vpop.f32.mrb[6].mxu0 }
 0x3d7   : > { %v2186_v4 = vrot.slane %v2172_v62, %v10561_v44  ;;  %v2238_v5 = vcombine.high %v1659_v3, %v9811_v30  ;;  %v2245_v6 = vrot.slane %v1659_v3, %v10561_v44  ;;  %v1661_v7 = vpop.f32.mrb[7].mxu0 }
 0x3d8   : > { %v2201_v9 = vrot.slane %v2187_v2, %v10561_v44  ;;  %v2202_v10 = vcombine.low %v2179_v63, %v2194_v0  ;;  %v2203_v11 = vcombine.high %v2179_v63, %v2194_v0  ;;  %v2253_v12 = vcombine.high %v1661_v7, %v9811_v30 }
 0x3d9   : > { %v2252_v13 = vrot.slane %v2238_v5, %v10561_v44  ;;  %v2260_v14 = vrot.slane %v1661_v7, %v10561_v44  ;;  %v10680_v7 = vsub.s32 0, %v10558_v41 }
 0x3da   : > { %v2210_v8 = vrot.slane %v2202_v10, %v10566_v53  ;;  %v2217_v15 = vrot.slane %v2203_v11, %v10566_v53  ;;  %v2218_v16 = vcombine.low %v2186_v4, %v2201_v9  ;;  %v2219_v17 = vcombine.high %v2186_v4, %v2201_v9 }
 0x3db   : > { %v2267_v18 = vrot.slane %v2253_v12, %v10561_v44  ;;  %v2268_v19 = vcombine.low %v2245_v6, %v2260_v14  ;;  %v2269_v20 = vcombine.high %v2245_v6, %v2260_v14  ;;  %v953_v6 = vld [vmem:[%s10504_s13] sm:$0x1]  ;;  %v9815_v9 = vmov 0  }
 0x3dc   : > { %v2226_v21 = vrot.slane %v2218_v16, %v10566_v53  ;;  %v2233_v22 = vrot.slane %v2219_v17, %v10566_v53  ;;  %v2304_v23 = vcombine.low %v2210_v8, %v2217_v15  ;;  %v7779_v24 = vcombine.high %v2210_v8, %v2217_v15 }
 0x3dd   : > { %v2276_v25 = vrot.slane %v2268_v19, %v10566_v53  ;;  %v2283_v26 = vrot.slane %v2269_v20, %v10566_v53  ;;  %v2284_v27 = vcombine.low %v2252_v13, %v2267_v18  ;;  %v2285_v28 = vcombine.high %v2252_v13, %v2267_v18  ;;  %v954_v13 = vld [vmem:[%s10504_s13 + $0x1] sm:$0x1] }
 0x3de   : > { %v2320_v29 = vcombine.low %v2226_v21, %v2233_v22  ;;  %v7780_v31 = vcombine.high %v2226_v21, %v2233_v22  ;;  %v2311_v36 = vrot.slane %v2304_v23, %v10561_v44  ;;  %v2319_v37 = vrot.slane %v7779_v24, %v10561_v44 }
 0x3df   : > { %v2292_v32 = vrot.slane %v2284_v27, %v10566_v53  ;;  %v2299_v33 = vrot.slane %v2285_v28, %v10566_v53  ;;  %v2354_v34 = vcombine.low %v2276_v25, %v2283_v26  ;;  %v7781_v35 = vcombine.high %v2276_v25, %v2283_v26 }
 0x3e0   : > { %v2327_v38 = vrot.slane %v2320_v29, %v10561_v44  ;;  %v2335_v40 = vrot.slane %v7780_v31, %v10561_v44  ;;  %v2336_v49 = vcombine.low %v2311_v36, %v2319_v37  ;;  %vm2570_vm2 = vcmp.ne.s32.totalorder %v953_v6, 0  ;;  %v8642_v6 = vld [vmem:[#allocation11 + $0x14] ss:$8 sps:$4 sm:$0xff]  }
 0x3e1   : > { %v2361_v42 = vrot.slane %v2354_v34, %v10561_v44  ;;  %v2369_v43 = vrot.slane %v7781_v35, %v10561_v44  ;;  %v2370_v45 = vcombine.low %v2292_v32, %v2299_v33  ;;  %v7782_v46 = vcombine.high %v2292_v32, %v2299_v33 }
 0x3e2   : > { %v2344_v50 = vcombine.low %v2327_v38, %v2335_v40  ;;  %v2343_v54 = vrot.slane %v2336_v49, %v10566_v53  ;;  %v2575_v10 = vsel %vm2570_vm2, 1, %v9815_v9  ;;  %v2573_v11 = vand.u32 127, %v1704_v39 }
 0x3e3   : > { %v2377_v47 = vrot.slane %v2370_v45, %v10561_v44  ;;  %v2385_v48 = vrot.slane %v7782_v46, %v10561_v44  ;;  %v2386_v51 = vcombine.low %v2361_v42, %v2369_v43  ;;  %v2580_v12 = vrot.slane %v2575_v10, %v10680_v7  ;;  %v8640_v10 = vld [vmem:[#allocation11 + $0x10] ss:$8 sps:$4 sm:$0xff]  }
 0x3e4   : > { %v2351_v55 = vrot.slane %v2344_v50, %v10566_v53  ;;  %vm2574_vm3 = vcmp.gt.s32.totalorder %v2573_v11, %v10558_v41  ;;  %vm2571_vm7 = vcmp.ne.s32.totalorder %v954_v13, 0  ;;  %v8645_v11 = vld [vmem:[#allocation11 + $0x24] ss:$8 sps:$4 sm:$0xff]   ;;  %v8646_v13 = vld [vmem:[#allocation11 + $0x30] ss:$8 sps:$4 sm:$0xff]  }
 0x3e5   : > { %v2394_v52 = vcombine.low %v2377_v47, %v2385_v48  ;;  %v2393_v56 = vrot.slane %v2386_v51, %v10566_v53  ;;  %vm2585_vm4 = vcmp.eq.s32.totalorder %v2580_v12, 1  ;;  %v2576_v39 = vsel %vm2571_vm7, 1, %v9815_v9  ;;  %v8648_v12 = vld [vmem:[#allocation11 + $0x34] ss:$8 sps:$4 sm:$0xff]  }
 0x3e6   : > { %v2352_v58 = vcombine.low %v2343_v54, %v2351_v55  ;;  %v2353_v59 = vcombine.high %v2343_v54, %v2351_v55  ;;  %vm2589_vm5 = vmor %vm2585_vm4, %vm2574_vm3  ;;  %v2584_v19 = vrot.slane %v2576_v39, %v10680_v7  ;;  %v8660_v39 = vld [vmem:[#allocation11 + $0x74] ss:$8 sps:$4 sm:$0xff]  }
 0x3e7   : > { %v2401_v57 = vrot.slane %v2394_v52, %v10566_v53 }
 0x3e8   : > { %v2404_v62 = vpack.c.bf16 %v2352_v58, %v2352_v58  ;;  %v2405_v63 = vpack.c.bf16 %v2353_v59, %v2353_v59  ;;  %vm2586_vm8 = vcmp.eq.s32.totalorder %v2584_v19, 1  ;;  %v8658_v19 = vld [vmem:[#allocation11 + $0x70] ss:$8 sps:$4 sm:$0xff]  }
 0x3e9   : > { %v2402_v60 = vcombine.low %v2393_v56, %v2401_v57  ;;  %v2403_v61 = vcombine.high %v2393_v56, %v2401_v57  ;;  %vm2590_vm9 = vmor %vm2586_vm8, %vm2574_vm3 }
 0x3ea   : > { %v2665_v0 = vsel %vm2663_vm1, %v2404_v62, 0  ;;  %v10671_v3 = vsel %vm2663_vm1, %v2405_v63, 0 }
 0x3eb   : > { %v2406_v1 = vpack.c.bf16 %v2402_v60, %v2402_v60  ;;  %v2407_v2 = vpack.c.bf16 %v2403_v61, %v2403_v61  ;;  %8186 = vmatpush3.bf16.msra.mxu1 %v2665_v0 }
 0x3ec   : > { %8191 = vmatprep.subr.bf16.mxu1 %v9811_v30 }
 0x3ed   : > { %v10673_v4 = vsel %vm2663_vm1, %v2406_v1, 0  ;;  %v10675_v5 = vsel %vm2663_vm1, %v2407_v2, 0 }
 0x487   : > { %v2444_v14 = vpop.f32.mrb[8].mxu0 }
 0x488   : > { %v2595_v8 = vsel %vm2589_vm5, -1e+30, %v2444_v14  ;;  %v8165_v15 = vpop.f32.mrb[9].mxu0  ;;  %v8651_v14 = vld [vmem:[#allocation11 + $0x44] ss:$8 sps:$4 sm:$0xff]  }
 0x489   : > { %v2447_v16 = vpop.f32.mrb[10].mxu0  ;;  %v2600_v17 = vsel %vm2599_vm6, %v2595_v8, -inf  ;;  %v8652_v15 = vld [vmem:[#allocation11 + $0x50] ss:$8 sps:$4 sm:$0xff]  }
 0x48a   : > { %2601 = vmax.xlane.f32.xlu0 %v2600_v17  ;;  %v8166_v18 = vpop.f32.mrb[11].mxu0  ;;  %v8654_v16 = vld [vmem:[#allocation11 + $0x54] ss:$8 sps:$4 sm:$0xff]   ;;  %v8657_v17 = vld [vmem:[#allocation11 + $0x64] ss:$8 sps:$4 sm:$0xff]  }
 0x48b   : > { %v8655_v18 = vld [vmem:[#allocation11 + $0x60] ss:$8 sps:$4 sm:$0xff]  }
 0x48f   : > { %v2484_v20 = vpop.f32.mrb[12].mxu0 }
 0x490   : > { %v2596_v21 = vsel %vm2589_vm5, -1e+30, %v2484_v20  ;;  %v8171_v22 = vpop.f32.mrb[13].mxu0  ;;  %v8663_v20 = vld [vmem:[#allocation11 + $0x84] ss:$8 sps:$4 sm:$0xff]  }
 0x491   : > { %v2487_v23 = vpop.f32.mrb[14].mxu0  ;;  %v2603_v24 = vsel %vm2599_vm6, %v2596_v21, -inf  ;;  %v8664_v22 = vld [vmem:[#allocation11 + $0x90] ss:$8 sps:$4 sm:$0xff]  }
 0x492   : > { %2604 = vmax.xlane.f32.xlu0 %v2603_v24  ;;  %v8172_v25 = vpop.f32.mrb[15].mxu0  ;;  %v8666_v23 = vld [vmem:[#allocation11 + $0x94] ss:$8 sps:$4 sm:$0xff]   ;;  %v8669_v24 = vld [vmem:[#allocation11 + $0xa4] ss:$8 sps:$4 sm:$0xff]  }
 0x493   : > { %v8667_v25 = vld [vmem:[#allocation11 + $0xa0] ss:$8 sps:$4 sm:$0xff]  }
 0x497   : > { %v2524_v26 = vpop.f32.mrb[16].mxu0 }
 0x498   : > { %v2597_v27 = vsel %vm2590_vm9, -1e+30, %v2524_v26  ;;  %v8177_v28 = vpop.f32.mrb[17].mxu0  ;;  %v8672_v26 = vld [vmem:[#allocation11 + $0xb4] ss:$8 sps:$4 sm:$0xff]  }
 0x499   : > { %v2527_v29 = vpop.f32.mrb[18].mxu0  ;;  %v2606_v31 = vsel %vm2599_vm6, %v2597_v27, -inf  ;;  %v8675_v28 = vld [vmem:[#allocation11 + $0xc4] ss:$8 sps:$4 sm:$0xff]  }
 0x49a   : > { %2607 = vmax.xlane.f32.xlu1 %v2606_v31  ;;  %v8178_v32 = vpop.f32.mrb[19].mxu0  ;;  %v8673_v29 = vld [vmem:[#allocation11 + $0xc0] ss:$8 sps:$4 sm:$0xff]   ;;  %v8678_v31 = vld [vmem:[#allocation11 + $0xd4] ss:$8 sps:$4 sm:$0xff]  }
 0x49b   : > { %v8676_v32 = vld [vmem:[#allocation11 + $0xd0] ss:$8 sps:$4 sm:$0xff]  }
 0x49f   : > { %v2564_v33 = vpop.f32.mrb[20].mxu0 }
 0x4a0   : > { %v2598_v34 = vsel %vm2590_vm9, -1e+30, %v2564_v33  ;;  %v8183_v35 = vpop.f32.mrb[21].mxu0  ;;  %v8681_v33 = vld [vmem:[#allocation11 + $0xe4] ss:$8 sps:$4 sm:$0xff]  }
 0x4a1   : > { %v2567_v36 = vpop.f32.mrb[22].mxu0  ;;  %v2609_v37 = vsel %vm2599_vm6, %v2598_v34, -inf  ;;  %v8684_v35 = vld [vmem:[#allocation11 + $0xf4] ss:$8 sps:$4 sm:$0xff]  }
 0x4a2   : > { %2610 = vmax.xlane.f32.xlu1 %v2609_v37  ;;  %v8184_v38 = vpop.f32.mrb[23].mxu0  ;;  %v8682_v36 = vld [vmem:[#allocation11 + $0xf0] ss:$8 sps:$4 sm:$0xff]  }
 0x517   : > { %v10697_v40 = vpop.xlane.xlu0 %2601 }
 0x518   : > { %v2624_v42 = vsub.f32 %v2595_v8, %v10697_v40  ;;  %v8649_v8 = vld [vmem:[#allocation11 + $0x40] ss:$8 sps:$4 sm:$0xff]   ;;  %v2612_v37 = vsub.f32 -inf, %v10697_v40 }
 0x51a   : > { %v2628_v43 = vmul.f32 1.442695, %v2624_v42  ;;  %v2616_v38 = vmul.f32 1.442695, %v2612_v37 }
 0x51c   : > { %9075 = vpow2.f32 %v2628_v43 }
 0x51f   : > { %v10700_v45 = vpop.xlane.xlu0 %2604 }
 0x520   : > { %v2625_v46 = vsub.f32 %v2596_v21, %v10700_v45  ;;  %v8661_v21 = vld [vmem:[#allocation11 + $0x80] ss:$8 sps:$4 sm:$0xff]   ;;  %v2613_v42 = vsub.f32 -inf, %v10700_v45 }
 0x522   : > { %v2630_v47 = vmul.f32 1.442695, %v2625_v46  ;;  %v2618_v43 = vmul.f32 1.442695, %v2613_v42 }
 0x524   : > { %9077 = vpow2.f32 %v2630_v47 }
 0x526   : > { %v9076_v48 = vpop.eup %9075 }
 0x527   : > { %v10703_v49 = vpop.xlane.xlu1 %2607  ;;  %v2640_v51 = vsel %vm2599_vm6, %v9076_v48, 0.0  ;;  %v2656_v52 = vpack.c.bf16 %v9076_v48, %v9076_v48 }
 0x528   : > { %v2626_v50 = vsub.f32 %v2597_v27, %v10703_v49  ;;  %2641 = vadd.xlane.f32.xlu0 %v2640_v51  ;;  %v8670_v27 = vld [vmem:[#allocation11 + $0xb0] ss:$8 sps:$4 sm:$0xff]   ;;  %v2614_v46 = vsub.f32 -inf, %v10703_v49 }
 0x529   : > { %8188 = vmatmul.mubr.msk.bf16.vlgmr.msra.gmra.mrb[4].mxu1 %vm2599_vm6, %v2656_v52 }
 0x52a   : > { %v2632_v54 = vmul.f32 1.442695, %v2626_v50  ;;  %8192 = vmatpush3.bf16.msra.mxu1 %v10671_v3  ;;  %8193 = vmatprep.mubr.msk.bf16.mxu1 %vm9812_vm0, %v9811_v30  ;;  %v8637_v3 = vld [vmem:[#allocation11] ss:$8 sps:$4 sm:$0xff]   ;;  %v2620_v50 = vmul.f32 1.442695, %v2614_v46 }
 0x52b   : > { %8197 = vmatprep.subr.bf16.mxu1 %v9811_v30 }
 0x52c   : > { %9079 = vpow2.f32 %v2632_v54 }
 0x52e   : > { %v9078_v55 = vpop.eup %9077 }
 0x52f   : > { %v10712_v56 = vpop.xlane.xlu1 %2610  ;;  %v2643_v58 = vsel %vm2599_vm6, %v9078_v55, 0.0  ;;  %v2657_v59 = vpack.c.bf16 %v9078_v55, %v9078_v55 }
 0x530   : > { %v2627_v57 = vsub.f32 %v2598_v34, %v10712_v56  ;;  %2644 = vadd.xlane.f32.xlu1 %v2643_v58  ;;  %v8679_v34 = vld [vmem:[#allocation11 + $0xe0] ss:$8 sps:$4 sm:$0xff]   ;;  %v2615_v54 = vsub.f32 -inf, %v10712_v56 }
 0x531   : > { %8194 = vmatmul.mubr.msk.bf16.vlgmr.msra.gmra.mrb[8].mxu1 %vm2599_vm6, %v2657_v59 }
 0x532   : > { %v2634_v60 = vmul.f32 1.442695, %v2627_v57  ;;  %8198 = vmatpush3.bf16.msra.mxu1 %v10673_v4  ;;  %8199 = vmatprep.mubr.msk.bf16.mxu1 %vm9812_vm0, %v9811_v30  ;;  %v8639_v4 = vld [vmem:[#allocation11 + $0x4] ss:$8 sps:$4 sm:$0xff]   ;;  %v2622_v57 = vmul.f32 1.442695, %v2615_v54 }
 0x533   : > { %8203 = vmatprep.subr.bf16.mxu1 %v9811_v30  ;;  %3251 = vmatprep.subr.bf16.mxu0 %v8639_v4 }
 0x534   : > { %9081 = vpow2.f32 %v2634_v60  ;;  %3252 = vmatpush1.bf16.msra.mxu0 %v8637_v3 }
 0x535   : > { %3253 = vmatprep.subr.bf16.mxu0 %v8642_v6  ;;  %9083 = vpow2.f32 %v2616_v38 }
 0x536   : > { %v9080_v61 = vpop.eup %9079  ;;  %9085 = vpow2.f32 %v2618_v43 }
 0x537   : > { %v2646_v62 = vsel %vm2599_vm6, %v9080_v61, 0.0  ;;  %v2658_v63 = vpack.c.bf16 %v9080_v61, %v9080_v61  ;;  %9087 = vpow2.f32 %v2620_v50 }
 0x538   : > { %2647 = vadd.xlane.f32.xlu0 %v2646_v62  ;;  %3254 = vmatpush1.bf16.msra.mxu0 %v8640_v10 }
 0x539   : > { %8200 = vmatmul.mubr.msk.bf16.vlgmr.msra.gmra.mrb[12].mxu1 %vm2599_vm6, %v2658_v63  ;;  %3255 = vmatprep.subr.bf16.mxu0 %v8645_v11 }
 0x53a   : > { %8204 = vmatpush3.bf16.msra.mxu1 %v10675_v5  ;;  %8205 = vmatprep.mubr.msk.bf16.mxu1 %vm9812_vm0, %v9811_v30  ;;  %v8643_v5 = vld [vmem:[#allocation11 + $0x20] ss:$8 sps:$4 sm:$0xff]  }
 0x53c   : > { %3256 = vmatpush1.bf16.msra.mxu0 %v8643_v5 }
 0x53d   : > { %3257 = vmatprep.subr.bf16.mxu0 %v8648_v12 }
 0x53e   : > { %v9082_v1 = vpop.eup %9081 }
 0x53f   : > { %v2649_v2 = vsel %vm2599_vm6, %v9082_v1, 0.0  ;;  %v2659_v0 = vpack.c.bf16 %v9082_v1, %v9082_v1  ;;  %v9084_v47 = vpop.eup %9083 }
 0x540   : > { %2650 = vadd.xlane.f32.xlu1 %v2649_v2  ;;  %3258 = vmatpush1.bf16.msra.mxu0 %v8646_v13  ;;  %v2636_v51 = vmul.f32 0.0, %v9084_v47  ;;  %v9086_v55 = vpop.eup %9085 }
 0x541   : > { %8206 = vmatmul.mubr.msk.bf16.vlgmr.msra.gmra.mrb[16].mxu1 %vm2599_vm6, %v2659_v0  ;;  %3259 = vmatprep.subr.bf16.mxu0 %v8651_v14  ;;  %v2637_v58 = vmul.f32 0.0, %v9086_v55  ;;  %v9088_v45 = vpop.eup %9087 }
 0x542   : > { %v2638_v2 = vmul.f32 0.0, %v9088_v45 }
 0x544   : > { %3260 = vmatpush1.bf16.msra.mxu0 %v8649_v8 }
 0x545   : > { %3261 = vmatprep.subr.bf16.mxu0 %v8654_v16 }
 0x548   : > { %3262 = vmatpush1.bf16.msra.mxu0 %v8652_v15 }
 0x549   : > { %3263 = vmatprep.subr.bf16.mxu0 %v8657_v17 }
 0x54c   : > { %3264 = vmatpush1.bf16.msra.mxu0 %v8655_v18 }
 0x54d   : > { %3265 = vmatprep.subr.bf16.mxu0 %v8660_v39 }
 0x550   : > { %3266 = vmatpush1.bf16.msra.mxu0 %v8658_v19 }
 0x551   : > { %3267 = vmatprep.subr.bf16.mxu0 %v8663_v20 }
 0x554   : > { %3268 = vmatpush1.bf16.msra.mxu0 %v8661_v21 }
 0x555   : > { %3269 = vmatprep.subr.bf16.mxu0 %v8666_v23 }
 0x558   : > { %3270 = vmatpush1.bf16.msra.mxu0 %v8664_v22 }
 0x559   : > { %3271 = vmatprep.subr.bf16.mxu0 %v8669_v24 }
 0x55c   : > { %3272 = vmatpush1.bf16.msra.mxu0 %v8667_v25 }
 0x55d   : > { %3273 = vmatprep.subr.bf16.mxu0 %v8672_v26 }
 0x560   : > { %3274 = vmatpush1.bf16.msra.mxu0 %v8670_v27 }
 0x561   : > { %3275 = vmatprep.subr.bf16.mxu0 %v8675_v28 }
 0x564   : > { %3276 = vmatpush1.bf16.msra.mxu0 %v8673_v29 }
 0x565   : > { %3277 = vmatprep.subr.bf16.mxu0 %v8678_v31 }
 0x568   : > { %3278 = vmatpush1.bf16.msra.mxu0 %v8676_v32 }
 0x569   : > { %3279 = vmatprep.subr.bf16.mxu0 %v8681_v33 }
 0x56c   : > { %3280 = vmatpush1.bf16.msra.mxu0 %v8679_v34 }
 0x56d   : > { %3281 = vmatprep.subr.bf16.mxu0 %v8684_v35 }
 0x570   : > { %3282 = vmatpush1.bf16.msra.mxu0 %v8682_v36 }
 0x5b5   : > { %v2642_v48 = vpop.xlane.xlu0 %2641 }
 0x5b6   : > { %v2652_v52 = vadd.f32 %v2642_v48, %v2636_v51 }
 0x5b8   : > { %9089 = vrcp.f32 %v2652_v52 }
 0x5b9   : > { %9091 = vpow2.f32 %v2622_v57 }
 0x5bd   : > { %v2645_v40 = vpop.xlane.xlu1 %2644 }
 0x5be   : > { %v2653_v59 = vadd.f32 %v2645_v40, %v2637_v58 }
 0x5c0   : > { %9093 = vrcp.f32 %v2653_v59 }
 0x5c2   : > { %v9090_v62 = vpop.eup %9089 }
 0x5c3   : > { %v9092_v4 = vpop.eup %9091 }
 0x5c4   : > { %v2639_v13 = vmul.f32 0.0, %v9092_v4 }
 0x5c5   : > { %v2648_v63 = vpop.xlane.xlu0 %2647 }
 0x5c6   : > { %v2654_v56 = vadd.f32 %v2648_v63, %v2638_v2 }
 0x5c8   : > { %9095 = vrcp.f32 %v2654_v56 }
 0x5ca   : > { %v9094_v12 = vpop.eup %9093 }
 0x5cd   : > { %v2651_v10 = vpop.xlane.xlu1 %2650 }
 0x5ce   : > { %v2655_v17 = vadd.f32 %v2651_v10, %v2639_v13 }
 0x5d0   : > { %9097 = vrcp.f32 %v2655_v17 }
 0x5d2   : > { %v9096_v33 = vpop.eup %9095 }
 0x5fc   : > { %v2701_v60 = vpop.f32.mrb[4].mxu1 }
 0x5fd   : > { %v2845_v61 = vadd.f32 %v2701_v60, %v2636_v51  ;;  %v8189_v49 = vpop.f32.mrb[5].mxu1 }
 0x5fe   : > { %v2704_v1 = vpop.f32.mrb[6].mxu1 }
 0x5ff   : > { %v2853_v0 = vmul.f32 %v9090_v62, %v2845_v61  ;;  %v8190_v3 = vpop.f32.mrb[7].mxu1 }
 0x601   : > { %v2857_v8 = vcombine.high %v2853_v0, %v9811_v30  ;;  %v2864_v18 = vrot.slane %v2853_v0, %v10561_v44 }
 0x603   : > { %v2871_v20 = vrot.slane %v2857_v8, %v10561_v44 }
 0x604   : > { %v2747_v6 = vpop.f32.mrb[8].mxu1 }
 0x605   : > { %v2846_v11 = vadd.f32 %v2747_v6, %v2637_v58  ;;  %v8195_v5 = vpop.f32.mrb[9].mxu1  ;;  %v9098_v58 = vpop.eup %9097 }
 0x606   : > { %v2750_v14 = vpop.f32.mrb[10].mxu1 }
 0x607   : > { %v2854_v15 = vmul.f32 %v9094_v12, %v2846_v11  ;;  %v8196_v16 = vpop.f32.mrb[11].mxu1 }
 0x609   : > { %v2872_v39 = vcombine.high %v2854_v15, %v9811_v30  ;;  %v2879_v19 = vrot.slane %v2854_v15, %v10561_v44 }
 0x60b   : > { %v2886_v21 = vrot.slane %v2872_v39, %v10561_v44  ;;  %v2887_v22 = vcombine.low %v2864_v18, %v2879_v19  ;;  %v2888_v23 = vcombine.high %v2864_v18, %v2879_v19 }
 0x60c   : > { %v2793_v24 = vpop.f32.mrb[12].mxu1 }
 0x60d   : > { %v2895_v25 = vrot.slane %v2887_v22, %v10566_v53  ;;  %v2902_v26 = vrot.slane %v2888_v23, %v10566_v53  ;;  %v2903_v27 = vcombine.low %v2871_v20, %v2886_v21  ;;  %v2904_v28 = vcombine.high %v2871_v20, %v2886_v21  ;;  %v8201_v29 = vpop.f32.mrb[13].mxu1 }
 0x60e   : > { %v2847_v31 = vadd.f32 %v2793_v24, %v2638_v2  ;;  %v2796_v32 = vpop.f32.mrb[14].mxu1 }
 0x60f   : > { %v2911_v34 = vrot.slane %v2903_v27, %v10566_v53  ;;  %v2918_v35 = vrot.slane %v2904_v28, %v10566_v53  ;;  %v2989_v36 = vcombine.low %v2895_v25, %v2902_v26  ;;  %v7787_v37 = vcombine.high %v2895_v25, %v2902_v26  ;;  %v8202_v38 = vpop.f32.mrb[15].mxu1 }
 0x610   : > { %v2855_v42 = vmul.f32 %v9096_v33, %v2847_v31  ;;  %v9135_v31 = vld [vmem:[%s10489_s1] sm:$0xff] }
 0x611   : > { %v3005_v43 = vcombine.low %v2911_v34, %v2918_v35  ;;  %v7788_v46 = vcombine.high %v2911_v34, %v2918_v35  ;;  %v2996_v47 = vrot.slane %v2989_v36, %v10561_v44  ;;  %v3004_v48 = vrot.slane %v7787_v37, %v10561_v44  ;;  %v9136_v34 = vld [vmem:[%s10489_s1 + $0x8] sm:$0xff]  ;;  %s9681_s1 = sshll.u32 %s9816_s29, 4  ;;  %s9682_s1 = int_to_ptr.vmem [resolvable:$false] %s9681_s1 }
 0x612   : > { %v2923_v45 = vcombine.high %v2855_v42, %v9811_v30  ;;  %v2930_v63 = vrot.slane %v2855_v42, %v10561_v44  ;;  %v949_v32 = vunpack.c.l.bf16 %v9135_v31  ;;  %v950_v33 = vunpack.c.h.bf16 %v9135_v31  ;;  %v8741_v31 = vld [vmem:[#allocation17 + $0x164] ss:$16 sps:$4 sm:$0xff]   ;;  %s9683_s14 = scalar_lea.vmem %s9682_s1, 512  ;;  %p9684_p7 = scmp.lt.s32.totalorder %s11194_s8, %s9682_s1 }
 0x613   : > { %v3012_v50 = vrot.slane %v3005_v43, %v10561_v44  ;;  %v3020_v51 = vrot.slane %v7788_v46, %v10561_v44  ;;  %v3021_v52 = vcombine.low %v2996_v47, %v3004_v48  ;;  %v951_v35 = vunpack.c.l.bf16 %v9136_v34  ;;  %p9685_p9 = scmp.lt.s32.totalorder %s9683_s14, %s9677_s11 }
 0x614   : > { %v2839_v54 = vpop.f32.mrb[16].mxu1  ;;  %v2937_v56 = vrot.slane %v2923_v45, %v10561_v44  ;;  %v952_v37 = vunpack.c.h.bf16 %v9136_v34  ;;  %v8693_v45 = vld [vmem:[#allocation17 + $0x44] ss:$16 sps:$4 sm:$0xff]   ;;  %v8745_v34 = vld [vmem:[#allocation17 + $0x180] ss:$16 sps:$4 sm:$0xff]  }
 0x615   : > { %v2848_v55 = vadd.f32 %v2839_v54, %v2639_v13  ;;  %v8207_v57 = vpop.f32.mrb[17].mxu1  ;;  %v3029_v40 = vcombine.low %v3012_v50, %v3020_v51  ;;  %v3028_v49 = vrot.slane %v3021_v52, %v10566_v53  ;;  %v8685_v54 = vld [vmem:[#allocation17] ss:$16 sps:$4 sm:$0xff]   ;;  %p9686_p13 = por %p9685_p9, %p9684_p7 }
 0x616   : > { %v2842_v59 = vpop.f32.mrb[18].mxu1  ;;  %v8690_v57 = vld [vmem:[#allocation17 + $0x24] ss:$16 sps:$4 sm:$0xff]  }
 0x617   : > { %v2856_v60 = vmul.f32 %v9098_v58, %v2848_v55  ;;  %v8208_v61 = vpop.f32.mrb[19].mxu1  ;;  %v3036_v62 = vrot.slane %v3029_v40, %v10566_v53  ;;  %v8687_v55 = vld [vmem:[#allocation17 + $0x4] ss:$16 sps:$4 sm:$0xff]   ;;  %v8688_v40 = vld [vmem:[#allocation17 + $0x20] ss:$16 sps:$4 sm:$0xff]   ;;  %p9687_p1 = pnand %p9686_p13, %p9680_p11 }
 0x618   : > { %4012 = vmatprep.subr.bf16.mxu0 %v8687_v55  ;;  %v8700_v58 = vld [vmem:[#allocation16] ss:$8 sps:$4 sm:$0xff]   ;;  %v8702_v59 = vld [vmem:[#allocation16 + $0x4] ss:$8 sps:$4 sm:$0xff]   ;;  %v8706_v61 = vld [vmem:[#allocation16 + $0x10] ss:$8 sps:$4 sm:$0xff]  }
 0x619   : > { %v2938_v1 = vcombine.high %v2856_v60, %v9811_v30  ;;  %v2945_v2 = vrot.slane %v2856_v60, %v10561_v44  ;;  %v3038_v0 = vcombine.high %v3028_v49, %v3036_v62  ;;  %v3037_v3 = vcombine.low %v3028_v49, %v3036_v62  ;;  %3557 = vmatprep.subr.bf16.mxu1 %v8702_v59  ;;  %v8708_v60 = vld [vmem:[#allocation16 + $0x14] ss:$8 sps:$4 sm:$0xff]   ;;  %v8691_v49 = vld [vmem:[#allocation17 + $0x40] ss:$16 sps:$4 sm:$0xff]   ;;  %v8714_v62 = vld [vmem:[#allocation16 + $0x24] ss:$8 sps:$4 sm:$0xff]  }
 0x61a   : > { %3558 = vmatpush1.bf16.msra.mxu1 %v8700_v58 }
 0x61b   : > { %v2952_v4 = vrot.slane %v2938_v1, %v10561_v44  ;;  %v2953_v6 = vcombine.low %v2930_v63, %v2945_v2  ;;  %v2954_v10 = vcombine.high %v2930_v63, %v2945_v2  ;;  %3559 = vmatprep.subr.bf16.mxu1 %v8708_v60  ;;  %v8696_v63 = vld [vmem:[#allocation17 + $0x64] ss:$16 sps:$4 sm:$0xff]   ;;  %v8712_v1 = vld [vmem:[#allocation16 + $0x20] ss:$8 sps:$4 sm:$0xff]  }
 0x61c   : > { %v8694_v2 = vld [vmem:[#allocation17 + $0x60] ss:$16 sps:$4 sm:$0xff]  }
 0x61d   : > { %v2961_v11 = vrot.slane %v2953_v6, %v10566_v53  ;;  %v2968_v5 = vrot.slane %v2954_v10, %v10566_v53  ;;  %v2969_v12 = vcombine.low %v2937_v56, %v2952_v4  ;;  %v2970_v13 = vcombine.high %v2937_v56, %v2952_v4  ;;  %v8718_v56 = vld [vmem:[#allocation16 + $0x30] ss:$8 sps:$4 sm:$0xff]   ;;  %v8726_v6 = vld [vmem:[#allocation16 + $0x44] ss:$8 sps:$4 sm:$0xff]  }
 0x61e   : > { %3560 = vmatpush1.bf16.msra.mxu1 %v8706_v61  ;;  %v8697_v4 = vld [vmem:[#allocation17 + $0x80] ss:$16 sps:$4 sm:$0xff]   ;;  %v8705_v10 = vld [vmem:[#allocation17 + $0xa4] ss:$16 sps:$4 sm:$0xff]  }
 0x61f   : > { %v2977_v14 = vrot.slane %v2969_v12, %v10566_v53  ;;  %v2984_v8 = vrot.slane %v2970_v13, %v10566_v53  ;;  %v3039_v15 = vcombine.low %v2961_v11, %v2968_v5  ;;  %v7789_v16 = vcombine.high %v2961_v11, %v2968_v5  ;;  %3561 = vmatprep.subr.bf16.mxu1 %v8714_v62  ;;  %v8724_v11 = vld [vmem:[#allocation16 + $0x40] ss:$8 sps:$4 sm:$0xff]   ;;  %v8732_v12 = vld [vmem:[#allocation16 + $0x54] ss:$8 sps:$4 sm:$0xff]  }
 0x620   : > { %v8703_v5 = vld [vmem:[#allocation17 + $0xa0] ss:$16 sps:$4 sm:$0xff]   ;;  %v8711_v13 = vld [vmem:[#allocation17 + $0xc4] ss:$16 sps:$4 sm:$0xff]  }
 0x621   : > { %v3055_v17 = vcombine.low %v2977_v14, %v2984_v8  ;;  %v7790_v18 = vcombine.high %v2977_v14, %v2984_v8  ;;  %v3046_v39 = vrot.slane %v3039_v15, %v10561_v44  ;;  %v3054_v19 = vrot.slane %v7789_v16, %v10561_v44  ;;  %v8730_v14 = vld [vmem:[#allocation16 + $0x50] ss:$8 sps:$4 sm:$0xff]   ;;  %v8738_v15 = vld [vmem:[#allocation16 + $0x64] ss:$8 sps:$4 sm:$0xff]   ;;  %v8771_v61 = vld [vmem:[#allocation16 + $0xb4] ss:$8 sps:$4 sm:$0xff]  }
 0x622   : > { %3562 = vmatpush1.bf16.msra.mxu1 %v8712_v1  ;;  %v8709_v8 = vld [vmem:[#allocation17 + $0xc0] ss:$16 sps:$4 sm:$0xff]   ;;  %v8717_v16 = vld [vmem:[#allocation17 + $0xe4] ss:$16 sps:$4 sm:$0xff]  }
 0x623   : > { %v3062_v20 = vrot.slane %v3055_v17, %v10561_v44  ;;  %v3070_v21 = vrot.slane %v7790_v18, %v10561_v44  ;;  %v3071_v22 = vcombine.low %v3046_v39, %v3054_v19  ;;  %v8736_v17 = vld [vmem:[#allocation16 + $0x60] ss:$8 sps:$4 sm:$0xff]   ;;  %v8744_v39 = vld [vmem:[#allocation16 + $0x74] ss:$8 sps:$4 sm:$0xff]  }
 0x624   : > { %v8715_v18 = vld [vmem:[#allocation17 + $0xe0] ss:$16 sps:$4 sm:$0xff]   ;;  %v8723_v19 = vld [vmem:[#allocation17 + $0x104] ss:$16 sps:$4 sm:$0xff]  }
 0x625   : > { %v3079_v23 = vcombine.low %v3062_v20, %v3070_v21  ;;  %v3078_v24 = vrot.slane %v3071_v22, %v10566_v53  ;;  %v8742_v20 = vld [vmem:[#allocation16 + $0x70] ss:$8 sps:$4 sm:$0xff]   ;;  %v8750_v22 = vld [vmem:[#allocation16 + $0x84] ss:$8 sps:$4 sm:$0xff]  }
 0x626   : > { %v8721_v21 = vld [vmem:[#allocation17 + $0x100] ss:$16 sps:$4 sm:$0xff]   ;;  %v8765_v62 = vld [vmem:[#allocation17 + $0x1e4] ss:$16 sps:$4 sm:$0xff]  }
 0x627   : > { %v3086_v25 = vrot.slane %v3079_v23, %v10566_v53  ;;  %v8729_v23 = vld [vmem:[#allocation17 + $0x124] ss:$16 sps:$4 sm:$0xff]   ;;  %v8763_v1 = vld [vmem:[#allocation17 + $0x1e0] ss:$16 sps:$4 sm:$0xff]  }
 0x629   : > { %v3088_v26 = vcombine.high %v3078_v24, %v3086_v25  ;;  %v3087_v27 = vcombine.low %v3078_v24, %v3086_v25  ;;  %v8748_v24 = vld [vmem:[#allocation16 + $0x80] ss:$8 sps:$4 sm:$0xff]  }
 0x62a   : > { %v8727_v25 = vld [vmem:[#allocation17 + $0x120] ss:$16 sps:$4 sm:$0xff]  }
 0x62b   : > { %v3090_v28 = vpack.c.bf16 %v3088_v26, %v3038_v0  ;;  %v3089_v29 = vpack.c.bf16 %v3087_v27, %v3037_v3  ;;  %v8720_v0 = vld [vmem:[#allocation16 + $0x34] ss:$8 sps:$4 sm:$0xff]  }
 0x62c   : > { %v8699_v3 = vld [vmem:[#allocation17 + $0x84] ss:$16 sps:$4 sm:$0xff]   ;;  %3563 = vmatprep.subr.bf16.mxu1 %v8720_v0  ;;  %v8768_v0 = vld [vmem:[%s10497_s6 + $0x4] ss:$8 sps:$4 sm:$0xff]  }
 0x62d   : > { %3283 = vmatprep.mubr.bf16.mxu0 %v3090_v28  ;;  %3564 = vmatpush1.bf16.msra.mxu1 %v8718_v56  ;;  %v8756_v26 = vld [vmem:[#allocation16 + $0x94] ss:$8 sps:$4 sm:$0xff]   ;;  %v8754_v28 = vld [vmem:[#allocation16 + $0x90] ss:$8 sps:$4 sm:$0xff]  }
 0x62e   : > { %3284 = vmatmul.mubr.bf16.vlgmr.msra.gmra.mrb[24].mxu0 %v3089_v29  ;;  %3565 = vmatprep.subr.bf16.mxu1 %v8726_v6  ;;  %v8735_v27 = vld [vmem:[#allocation17 + $0x144] ss:$16 sps:$4 sm:$0xff]   ;;  %v8733_v29 = vld [vmem:[#allocation17 + $0x140] ss:$16 sps:$4 sm:$0xff]  }
 0x62f   : > { %4013 = vmatpush1.bf16.msra.mxu0 %v8685_v54  ;;  %v8777_v56 = vld [vmem:[#allocation16 + $0xd4] ss:$8 sps:$4 sm:$0xff]   ;;  %4044 = vmatprep.mubr.bf16.mxu0 %v8768_v0  ;;  %v8780_v6 = vld [vmem:[#allocation16 + $0xe4] ss:$8 sps:$4 sm:$0xff]  }
 0x630   : > { %4014 = vmatprep.subr.bf16.mxu0 %v8690_v57 }
 0x631   : > { %3566 = vmatpush1.bf16.msra.mxu1 %v8724_v11  ;;  %v8778_v11 = vld [vmem:[#allocation16 + $0xe0] ss:$8 sps:$4 sm:$0xff]  }
 0x632   : > { %3567 = vmatprep.subr.bf16.mxu1 %v8732_v12  ;;  %v10809_v12 = vld [vmem:[%s10497_s6 + $0x10] ss:$8 sps:$4 sm:$0xff]  }
 0x633   : > { %4015 = vmatpush1.bf16.msra.mxu0 %v8688_v40 }
 0x634   : > { %4016 = vmatprep.subr.bf16.mxu0 %v8693_v45 }
 0x635   : > { %3568 = vmatpush1.bf16.msra.mxu1 %v8730_v14  ;;  %v8789_v14 = vld [vmem:[#allocation17 + $0xc] ss:$16 sps:$4 sm:$0xff]  }
 0x636   : > { %3569 = vmatprep.subr.bf16.mxu1 %v8738_v15 }
 0x637   : > { %4017 = vmatpush1.bf16.msra.mxu0 %v8691_v49  ;;  %v8769_v49 = vld [vmem:[#allocation16 + $0xb0] ss:$8 sps:$4 sm:$0xff]  }
 0x638   : > { %4018 = vmatprep.subr.bf16.mxu0 %v8696_v63  ;;  %v8774_v63 = vld [vmem:[#allocation16 + $0xc4] ss:$8 sps:$4 sm:$0xff]  }
 0x639   : > { %3570 = vmatpush1.bf16.msra.mxu1 %v8736_v17 }
 0x63a   : > { %3571 = vmatprep.subr.bf16.mxu1 %v8744_v39 }
 0x63b   : > { %4019 = vmatpush1.bf16.msra.mxu0 %v8694_v2  ;;  %v8772_v2 = vld [vmem:[#allocation16 + $0xc0] ss:$8 sps:$4 sm:$0xff]  }
 0x63c   : > { %4020 = vmatprep.subr.bf16.mxu0 %v8699_v3  ;;  %v10800_v3 = vld [vmem:[%s10497_s6] ss:$8 sps:$4 sm:$0xff]  }
 0x63d   : > { %3572 = vmatpush1.bf16.msra.mxu1 %v8742_v20  ;;  %v3298_v20 = vld [vmem:[#allocation13] sm:$0x3] }
 0x63e   : > { %3573 = vmatprep.subr.bf16.mxu1 %v8750_v22  ;;  %v3337_v22 = vrot.slane %v3298_v20, %v10680_v7 }
 0x63f   : > { %4021 = vmatpush1.bf16.msra.mxu0 %v8697_v4  ;;  %v8775_v4 = vld [vmem:[#allocation16 + $0xd0] ss:$8 sps:$4 sm:$0xff]  }
 0x640   : > { %4022 = vmatprep.subr.bf16.mxu0 %v8705_v10  ;;  %v10805_v10 = vld [vmem:[%s10497_s6 + $0x14] ss:$8 sps:$4 sm:$0xff]  }
 0x641   : > { %3574 = vmatpush1.bf16.msra.mxu1 %v8748_v24 }
 0x642   : > { %3575 = vmatprep.subr.bf16.mxu1 %v8756_v26 }
 0x643   : > { %4023 = vmatpush1.bf16.msra.mxu0 %v8703_v5  ;;  %v8785_v5 = vld [vmem:[#allocation16 + $0xf4] ss:$8 sps:$4 sm:$0xff]  }
 0x644   : > { %4024 = vmatprep.subr.bf16.mxu0 %v8711_v13  ;;  %v8783_v13 = vld [vmem:[#allocation16 + $0xf0] ss:$8 sps:$4 sm:$0xff]  }
 0x645   : > { %3576 = vmatpush1.bf16.msra.mxu1 %v8754_v28 }
 0x647   : > { %4025 = vmatpush1.bf16.msra.mxu0 %v8709_v8 }
 0x648   : > { %4026 = vmatprep.subr.bf16.mxu0 %v8717_v16 }
 0x64b   : > { %4027 = vmatpush1.bf16.msra.mxu0 %v8715_v18 }
 0x64c   : > { %4028 = vmatprep.subr.bf16.mxu0 %v8723_v19  ;;  %v10815_v19 = vsub.s32 1, %v10558_v41 }
 0x64f   : > { %4029 = vmatpush1.bf16.msra.mxu0 %v8721_v21  ;;  %v3299_v21 = vld [vmem:[#allocation14] sm:$0x3] }
 0x650   : > { %4030 = vmatprep.subr.bf16.mxu0 %v8729_v23  ;;  %v3341_v23 = vrot.slane %v3298_v20, %v10815_v19  ;;  %v3352_v28 = vrot.slane %v3299_v21, %v10680_v7 }
 0x653   : > { %4031 = vmatpush1.bf16.msra.mxu0 %v8727_v25 }
 0x654   : > { %4032 = vmatprep.subr.bf16.mxu0 %v8735_v27 }
 0x657   : > { %4033 = vmatpush1.bf16.msra.mxu0 %v8733_v29  ;;  %v3356_v29 = vrot.slane %v3299_v21, %v10815_v19 }
 0x658   : > { %4034 = vmatprep.subr.bf16.mxu0 %v8741_v31 }
 0x701   : > { %v3285_v36 = vpop.f32.mrb[24].mxu0 }
 0x702   : > { %v10766_v38 = vadd.f32 %v3285_v36, %v949_v32  ;;  %v3287_v42 = vpop.f32.mrb[25].mxu0  ;;  %v8739_v32 = vld [vmem:[#allocation17 + $0x160] ss:$16 sps:$4 sm:$0xff]  }
 0x703   : > { %v10768_v43 = vadd.f32 %v3287_v42, %v950_v33  ;;  %v3289_v46 = vpop.f32.mrb[26].mxu0  ;;  %v8747_v33 = vld [vmem:[#allocation17 + $0x184] ss:$16 sps:$4 sm:$0xff]   ;;  %4035 = vmatpush1.bf16.msra.mxu0 %v8739_v32  ;;  %v8751_v36 = vld [vmem:[#allocation17 + $0x1a0] ss:$16 sps:$4 sm:$0xff]  }
 0x704   : > { %v10770_v47 = vadd.f32 %v3289_v46, %v951_v35  ;;  %v3291_v48 = vpop.f32.mrb[27].mxu0  ;;  %4036 = vmatprep.subr.bf16.mxu0 %v8747_v33  ;;  %v8753_v35 = vld [vmem:[#allocation17 + $0x1a4] ss:$16 sps:$4 sm:$0xff]   ;;  %v8757_v42 = vld [vmem:[#allocation17 + $0x1c0] ss:$16 sps:$4 sm:$0xff]  }
 0x705   : > { %v10772_v50 = vadd.f32 %v3291_v48, %v952_v37  ;;  %v3300_v51 = vadd.f32 %v10768_v43, %v10766_v38  ;;  %v8759_v37 = vld [vmem:[#allocation17 + $0x1c4] ss:$16 sps:$4 sm:$0xff]  }
 0x707   : > { %3301 = vadd.xlane.f32.xlu0 %v3300_v51  ;;  %v3303_v52 = vadd.f32 %v10772_v50, %v10770_v47  ;;  %4037 = vmatpush1.bf16.msra.mxu0 %v8745_v34 }
 0x708   : > { %4038 = vmatprep.subr.bf16.mxu0 %v8753_v35 }
 0x709   : > { %3304 = vadd.xlane.f32.xlu1 %v3303_v52 }
 0x70b   : > { %4039 = vmatpush1.bf16.msra.mxu0 %v8751_v36 }
 0x70c   : > { %4040 = vmatprep.subr.bf16.mxu0 %v8759_v37 }
 0x70f   : > { %4041 = vmatpush1.bf16.msra.mxu0 %v8757_v42 }
 0x710   : > { %4042 = vmatprep.subr.bf16.mxu0 %v8765_v62  ;;  %v8808_v62 = vld [vmem:[#allocation17 + $0xe8] ss:$16 sps:$4 sm:$0xff]  }
 0x713   : > { %4043 = vmatpush1.bf16.msra.mxu0 %v8763_v1  ;;  %v8811_v1 = vld [vmem:[#allocation17 + $0x108] ss:$16 sps:$4 sm:$0xff]  }
 0x714   : > { %8209 = vmatprep.subr.bf16.mxu0 %v9811_v30 }
 0x716   : > { %4045 = vmatmul.mubr.bf16.vlgmr.msra.gmra.mrb[28].mxu0 %v10800_v3 }
 0x717   : > { %4054 = vmatprep.mubr.bf16.mxu0 %v10805_v10 }
 0x71e   : > { %4055 = vmatmul.mubr.bf16.gmra.mrb[32].mxu0 %v10809_v12 }
 0x71f   : > { %8211 = vmatprep.mubr.msk.bf16.mxu0 %vm9812_vm0, %v9811_v30 }
 0x794   : > { %v3302_v46 = vpop.xlane.xlu0 %3301 }
 0x795   : > { %v3307_v48 = vmul.f32 0.00390625, %v3302_v46 }
 0x796   : > { %v3305_v51 = vpop.xlane.xlu1 %3304 }
 0x797   : > { %v10779_v52 = vsub.f32 %v10766_v38, %v3307_v48  ;;  %v10782_v54 = vsub.f32 %v10768_v43, %v3307_v48  ;;  %v3308_v55 = vmul.f32 0.00390625, %v3305_v51 }
 0x799   : > { %v10785_v57 = vsub.f32 %v10770_v47, %v3308_v55  ;;  %v10788_v40 = vsub.f32 %v10772_v50, %v3308_v55  ;;  %v3313_v58 = vmul.f32 %v10779_v52, %v10779_v52  ;;  %v3314_v59 = vmul.f32 %v10782_v54, %v10782_v54  ;;  %v8762_v47 = vld [vmem:[#allocation16 + $0xa4] ss:$8 sps:$4 sm:$0xff]   ;;  %v8760_v50 = vld [vmem:[#allocation16 + $0xa0] ss:$8 sps:$4 sm:$0xff]  }
 0x79a   : > { %3577 = vmatprep.subr.bf16.mxu1 %v8762_v47  ;;  %v8792_v55 = vld [vmem:[#allocation17 + $0x2c] ss:$16 sps:$4 sm:$0xff]   ;;  %v8802_v47 = vld [vmem:[#allocation17 + $0xa8] ss:$16 sps:$4 sm:$0xff]  }
 0x79b   : > { %v3317_v45 = vadd.f32 %v3314_v59, %v3313_v58  ;;  %v3315_v38 = vmul.f32 %v10785_v57, %v10785_v57  ;;  %v3316_v43 = vmul.f32 %v10788_v40, %v10788_v40  ;;  %3578 = vmatpush1.bf16.msra.mxu1 %v8760_v50  ;;  %v8793_v58 = vld [vmem:[#allocation17 + $0x48] ss:$16 sps:$4 sm:$0xff]   ;;  %v8798_v59 = vld [vmem:[#allocation17 + $0x6c] ss:$16 sps:$4 sm:$0xff]  }
 0x79c   : > { %3579 = vmatprep.subr.bf16.mxu1 %v8771_v61  ;;  %v8807_v50 = vld [vmem:[#allocation17 + $0xcc] ss:$16 sps:$4 sm:$0xff]   ;;  %v8805_v61 = vld [vmem:[#allocation17 + $0xc8] ss:$16 sps:$4 sm:$0xff]  }
 0x79d   : > { %3318 = vadd.xlane.f32.xlu0 %v3317_v45  ;;  %v3320_v60 = vadd.f32 %v3316_v43, %v3315_v38  ;;  %v8796_v45 = vld [vmem:[#allocation17 + $0x68] ss:$16 sps:$4 sm:$0xff]   ;;  %v8801_v38 = vld [vmem:[#allocation17 + $0x8c] ss:$16 sps:$4 sm:$0xff]  }
 0x79e   : > { %v8799_v43 = vld [vmem:[#allocation17 + $0x88] ss:$16 sps:$4 sm:$0xff]  }
 0x79f   : > { %3321 = vadd.xlane.f32.xlu1 %v3320_v60  ;;  %3580 = vmatpush1.bf16.msra.mxu1 %v8769_v49  ;;  %v8804_v60 = vld [vmem:[#allocation17 + $0xac] ss:$16 sps:$4 sm:$0xff]  }
 0x7a0   : > { %3581 = vmatprep.subr.bf16.mxu1 %v8774_v63  ;;  %v8810_v49 = vld [vmem:[#allocation17 + $0xec] ss:$16 sps:$4 sm:$0xff]  }
 0x7a1   : > { %v8813_v63 = vld [vmem:[#allocation17 + $0x10c] ss:$16 sps:$4 sm:$0xff]  }
 0x7a3   : > { %3582 = vmatpush1.bf16.msra.mxu1 %v8772_v2  ;;  %v8816_v2 = vld [vmem:[#allocation17 + $0x12c] ss:$16 sps:$4 sm:$0xff]  }
 0x7a4   : > { %3583 = vmatprep.subr.bf16.mxu1 %v8777_v56  ;;  %v8819_v56 = vld [vmem:[#allocation17 + $0x14c] ss:$16 sps:$4 sm:$0xff]  }
 0x7a7   : > { %3584 = vmatpush1.bf16.msra.mxu1 %v8775_v4  ;;  %v8817_v4 = vld [vmem:[#allocation17 + $0x148] ss:$16 sps:$4 sm:$0xff]  }
 0x7a8   : > { %3585 = vmatprep.subr.bf16.mxu1 %v8780_v6  ;;  %v8822_v6 = vld [vmem:[#allocation17 + $0x16c] ss:$16 sps:$4 sm:$0xff]  }
 0x7ab   : > { %3586 = vmatpush1.bf16.msra.mxu1 %v8778_v11  ;;  %v8820_v11 = vld [vmem:[#allocation17 + $0x168] ss:$16 sps:$4 sm:$0xff]  }
 0x7ac   : > { %3587 = vmatprep.subr.bf16.mxu1 %v8785_v5  ;;  %v8825_v5 = vld [vmem:[#allocation17 + $0x18c] ss:$16 sps:$4 sm:$0xff]  }
 0x7af   : > { %3588 = vmatpush1.bf16.msra.mxu1 %v8783_v13  ;;  %v8823_v13 = vld [vmem:[#allocation17 + $0x188] ss:$16 sps:$4 sm:$0xff]  }
 0x7b0   : > { %4065 = vmatprep.subr.bf16.mxu1 %v8789_v14  ;;  %v8828_v14 = vld [vmem:[#allocation17 + $0x1ac] ss:$16 sps:$4 sm:$0xff]  }
 0x82a   : > { %v3319_v8 = vpop.xlane.xlu0 %3318 }
 0x82b   : > { %v3323_v15 = vmul.f32 0.00390625, %v3319_v8  ;;  %v8826_v8 = vld [vmem:[#allocation17 + $0x1a8] ss:$16 sps:$4 sm:$0xff]  }
 0x82c   : > { %v3322_v16 = vpop.xlane.xlu1 %3321 }
 0x82d   : > { %v3325_v17 = vadd.f32 1e-05, %v3323_v15  ;;  %v3324_v18 = vmul.f32 0.00390625, %v3322_v16  ;;  %v8831_v15 = vld [vmem:[#allocation17 + $0x1cc] ss:$16 sps:$4 sm:$0xff]  }
 0x82e   : > { %v8829_v16 = vld [vmem:[#allocation17 + $0x1c8] ss:$16 sps:$4 sm:$0xff]  }
 0x82f   : > { %9099 = vrsqrt.f32 %v3325_v17  ;;  %v3326_v39 = vadd.f32 1e-05, %v3324_v18  ;;  %v8834_v17 = vld [vmem:[#allocation17 + $0x1ec] ss:$16 sps:$4 sm:$0xff]   ;;  %v8832_v18 = vld [vmem:[#allocation17 + $0x1e8] ss:$16 sps:$4 sm:$0xff]  }
 0x831   : > { %9101 = vrsqrt.f32 %v3326_v39  ;;  %v4046_v39 = vpop.f32.mrb[28].mxu0 }
 0x832   : > { %v4386_v20 = vcombine.high %v4046_v39, %v9811_v30  ;;  %v4393_v21 = vrot.slane %v4046_v39, %v10561_v44 }
 0x839   : > { %v9100_v24 = vpop.eup %9099 }
 0x83a   : > { %v3329_v25 = vmul.f32 %v9100_v24, %v10779_v52  ;;  %v3330_v26 = vmul.f32 %v9100_v24, %v10782_v54  ;;  %v8787_v54 = vld [vmem:[#allocation17 + $0x8] ss:$16 sps:$4 sm:$0xff]  }
 0x83b   : > { %v9102_v27 = vpop.eup %9101 }
 0x83c   : > { %v3331_v31 = vmul.f32 %v9102_v27, %v10785_v57  ;;  %v3332_v32 = vmul.f32 %v9102_v27, %v10788_v40  ;;  %v3345_v33 = vmul.f32 %v3341_v23, %v3330_v26  ;;  %v3344_v34 = vmul.f32 %v3337_v22, %v3329_v25  ;;  %v8790_v57 = vld [vmem:[#allocation17 + $0x28] ss:$16 sps:$4 sm:$0xff]   ;;  %v8795_v40 = vld [vmem:[#allocation17 + $0x4c] ss:$16 sps:$4 sm:$0xff]  }
 0x83e   : > { %v3347_v35 = vmul.f32 %v3341_v23, %v3332_v32  ;;  %v3346_v36 = vmul.f32 %v3337_v22, %v3331_v31  ;;  %v10825_v37 = vadd.f32 %v3356_v29, %v3345_v33  ;;  %v10829_v46 = vadd.f32 %v3352_v28, %v3344_v34  ;;  %v4048_v22 = vpop.f32.mrb[29].mxu0 }
 0x83f   : > { %v4401_v23 = vcombine.high %v4048_v22, %v9811_v30  ;;  %v4408_v24 = vrot.slane %v4048_v22, %v10561_v44  ;;  %v4050_v25 = vpop.f32.mrb[30].mxu0 }
 0x840   : > { %v10827_v42 = vadd.f32 %v3356_v29, %v3347_v35  ;;  %v10831_v48 = vadd.f32 %v3352_v28, %v3346_v36  ;;  %v4052_v26 = vpop.f32.mrb[31].mxu0 }
 0x841   : > { %v4415_v27 = vrot.slane %v4401_v23, %v10561_v44  ;;  %v4416_v28 = vcombine.low %v4393_v21, %v4408_v24  ;;  %v4417_v29 = vcombine.high %v4393_v21, %v4408_v24  ;;  %v4467_v31 = vcombine.high %v4052_v26, %v9811_v30 }
 0x842   : > { %v3364_v51 = vpack.c.bf16 %v10827_v42, %v10825_v37  ;;  %v3363_v52 = vpack.c.bf16 %v10831_v48, %v10829_v46  ;;  %v4474_v33 = vrot.slane %v4052_v26, %v10561_v44 }
 0x843   : > { %v4424_v34 = vrot.slane %v4416_v28, %v10566_v53  ;;  %v4431_v35 = vrot.slane %v4417_v29, %v10566_v53 }
 0x844   : > { %3589 = vmatprep.mubr.bf16.mxu1 %v3364_v51 }
 0x845   : > { %3590 = vmatmul.mubr.bf16.vlgmr.msra.gmra.mrb[20].mxu1 %v3363_v52  ;;  %v4481_v52 = vrot.slane %v4467_v31, %v10561_v44 }
 0x846   : > { %4066 = vmatpush1.bf16.msra.mxu1 %v8787_v54  ;;  %4097 = vmatprep.mubr.bf16.mxu1 %v8768_v0  ;;  %v8814_v0 = vld [vmem:[#allocation17 + $0x128] ss:$16 sps:$4 sm:$0xff]  }
 0x847   : > { %4067 = vmatprep.subr.bf16.mxu1 %v8792_v55 }
 0x84a   : > { %4068 = vmatpush1.bf16.msra.mxu1 %v8790_v57 }
 0x84b   : > { %4069 = vmatprep.subr.bf16.mxu1 %v8795_v40 }
 0x84e   : > { %4070 = vmatpush1.bf16.msra.mxu1 %v8793_v58  ;;  %v4650_v58 = vcombine.low %v4424_v34, %v4431_v35 }
 0x84f   : > { %4071 = vmatprep.subr.bf16.mxu1 %v8798_v59  ;;  %v7927_v59 = vcombine.high %v4424_v34, %v4431_v35 }
 0x852   : > { %4072 = vmatpush1.bf16.msra.mxu1 %v8796_v45  ;;  %v4056_v45 = vpop.f32.mrb[32].mxu0 }
 0x853   : > { %4073 = vmatprep.subr.bf16.mxu1 %v8801_v38 }
 0x856   : > { %4074 = vmatpush1.bf16.msra.mxu1 %v8799_v43 }
 0x857   : > { %4075 = vmatprep.subr.bf16.mxu1 %v8804_v60 }
 0x85a   : > { %4076 = vmatpush1.bf16.msra.mxu1 %v8802_v47 }
 0x85b   : > { %4077 = vmatprep.subr.bf16.mxu1 %v8807_v50  ;;  %v4058_v50 = vpop.f32.mrb[33].mxu0 }
 0x85c   : > { %v4540_v21 = vrot.slane %v4058_v50, %v10561_v44 }
 0x85e   : > { %4078 = vmatpush1.bf16.msra.mxu1 %v8805_v61  ;;  %v4657_v61 = vrot.slane %v4650_v58, %v10561_v44 }
 0x85f   : > { %4079 = vmatprep.subr.bf16.mxu1 %v8810_v49  ;;  %v4665_v49 = vrot.slane %v7927_v59, %v10561_v44 }
 0x862   : > { %4080 = vmatpush1.bf16.msra.mxu1 %v8808_v62 }
 0x863   : > { %4081 = vmatprep.subr.bf16.mxu1 %v8813_v63 }
 0x866   : > { %4082 = vmatpush1.bf16.msra.mxu1 %v8811_v1  ;;  %v4060_v1 = vpop.f32.mrb[34].mxu0 }
 0x867   : > { %4083 = vmatprep.subr.bf16.mxu1 %v8816_v2  ;;  %v4591_v26 = vrot.slane %v4060_v1, %v10561_v44 }
 0x86a   : > { %4084 = vmatpush1.bf16.msra.mxu1 %v8814_v0 }
 0x86b   : > { %4085 = vmatprep.subr.bf16.mxu1 %v8819_v56 }
 0x86e   : > { %4086 = vmatpush1.bf16.msra.mxu1 %v8817_v4 }
 0x86f   : > { %4087 = vmatprep.subr.bf16.mxu1 %v8822_v6  ;;  %v4062_v6 = vpop.f32.mrb[35].mxu0 }
 0x870   : > { %v4599_v28 = vcombine.high %v4062_v6, %v9811_v30  ;;  %v4606_v29 = vrot.slane %v4062_v6, %v10561_v44 }
 0x872   : > { %4088 = vmatpush1.bf16.msra.mxu1 %v8820_v11 }
 0x873   : > { %4089 = vmatprep.subr.bf16.mxu1 %v8825_v5 }
 0x876   : > { %4090 = vmatpush1.bf16.msra.mxu1 %v8823_v13  ;;  %v4682_v13 = vcombine.low %v4657_v61, %v4665_v49 }
 0x877   : > { %4091 = vmatprep.subr.bf16.mxu1 %v8828_v14  ;;  %v4518_v14 = vcombine.high %v4056_v45, %v9811_v30 }
 0x879   : > { %v4532_v39 = vrot.slane %v4518_v14, %v10561_v44 }
 0x87a   : > { %4092 = vmatpush1.bf16.msra.mxu1 %v8826_v8 }
 0x87b   : > { %4093 = vmatprep.subr.bf16.mxu1 %v8831_v15 }
 0x87e   : > { %4094 = vmatpush1.bf16.msra.mxu1 %v8829_v16 }
 0x87f   : > { %4095 = vmatprep.subr.bf16.mxu1 %v8834_v17 }
 0x882   : > { %4096 = vmatpush1.bf16.msra.mxu1 %v8832_v18  ;;  %v4525_v18 = vrot.slane %v4056_v45, %v10561_v44 }
 0x883   : > { %8215 = vmatprep.subr.bf16.mxu1 %v9811_v30 }
 0x885   : > { %4098 = vmatmul.mubr.bf16.vlgmr.msra.gmra.mrb[24].mxu1 %v10800_v3  ;;  %v4400_v3 = vrot.slane %v4386_v20, %v10561_v44  ;;  %v4533_v20 = vcombine.high %v4058_v50, %v9811_v30 }
 0x886   : > { %4107 = vmatprep.mubr.bf16.mxu1 %v10805_v10  ;;  %v4452_v10 = vcombine.high %v4050_v25, %v9811_v30 }
 0x887   : > { %v4432_v36 = vcombine.low %v4400_v3, %v4415_v27  ;;  %v4433_v51 = vcombine.high %v4400_v3, %v4415_v27  ;;  %v4547_v3 = vrot.slane %v4533_v20, %v10561_v44 }
 0x888   : > { %v4466_v32 = vrot.slane %v4452_v10, %v10561_v44  ;;  %v4548_v10 = vcombine.low %v4525_v18, %v4540_v21 }
 0x889   : > { %v4440_v57 = vrot.slane %v4432_v36, %v10566_v53  ;;  %v4447_v40 = vrot.slane %v4433_v51, %v10566_v53  ;;  %v4564_v34 = vcombine.low %v4532_v39, %v4547_v3  ;;  %v4565_v35 = vcombine.high %v4532_v39, %v4547_v3 }
 0x88a   : > { %v4498_v60 = vcombine.low %v4466_v32, %v4481_v52  ;;  %v4499_v47 = vcombine.high %v4466_v32, %v4481_v52  ;;  %v4556_v32 = vrot.slane %v4548_v10, %v10566_v53  ;;  %v4613_v36 = vrot.slane %v4599_v28, %v10561_v44 }
 0x88b   : > { %v4666_v62 = vcombine.low %v4440_v57, %v4447_v40  ;;  %v7928_v63 = vcombine.high %v4440_v57, %v4447_v40  ;;  %v4614_v51 = vcombine.low %v4591_v26, %v4606_v29  ;;  %v4615_v52 = vcombine.high %v4591_v26, %v4606_v29 }
 0x88c   : > { %v4506_v2 = vrot.slane %v4498_v60, %v10566_v53  ;;  %v4513_v0 = vrot.slane %v4499_v47, %v10566_v53  ;;  %v4579_v57 = vrot.slane %v4565_v35, %v10566_v53 }
 0x88d   : > { %4108 = vmatmul.mubr.bf16.gmra.mrb[28].mxu1 %v10809_v12  ;;  %v4459_v12 = vrot.slane %v4050_v25, %v10561_v44  ;;  %v4673_v11 = vrot.slane %v4666_v62, %v10561_v44  ;;  %v4681_v5 = vrot.slane %v7928_v63, %v10561_v44  ;;  %v4584_v25 = vcombine.high %v4060_v1, %v9811_v30 }
 0x88e   : > { %8217 = vmatprep.mubr.msk.bf16.mxu1 %vm9812_vm0, %v9811_v30  ;;  %v4716_v16 = vcombine.low %v4506_v2, %v4513_v0  ;;  %v7930_v17 = vcombine.high %v4506_v2, %v4513_v0  ;;  %v4622_v59 = vrot.slane %v4614_v51, %v10566_v53  ;;  %v4629_v45 = vrot.slane %v4615_v52, %v10566_v53 }
 0x88f   : > { %v4482_v54 = vcombine.low %v4459_v12, %v4474_v33  ;;  %v4483_v55 = vcombine.high %v4459_v12, %v4474_v33  ;;  %v4549_v12 = vcombine.high %v4525_v18, %v4540_v21  ;;  %v4598_v27 = vrot.slane %v4584_v25, %v10561_v44 }
 0x890   : > { %v4723_v22 = vrot.slane %v4716_v16, %v10561_v44  ;;  %v4731_v23 = vrot.slane %v7930_v17, %v10561_v44  ;;  %v4690_v31 = vcombine.low %v4673_v11, %v4681_v5  ;;  %v4800_v63 = vcombine.low %v4622_v59, %v4629_v45 }
 0x891   : > { %v4490_v38 = vrot.slane %v4482_v54, %v10566_v53  ;;  %v4497_v43 = vrot.slane %v4483_v55, %v10566_v53  ;;  %v4563_v33 = vrot.slane %v4549_v12, %v10566_v53  ;;  %v4689_v54 = vrot.slane %v4682_v13, %v10566_v53 }
 0x892   : > { %v4572_v55 = vrot.slane %v4564_v34, %v10566_v53  ;;  %v7933_v1 = vcombine.high %v4622_v59, %v4629_v45  ;;  %v4807_v6 = vrot.slane %v4800_v63, %v10561_v44 }
 0x893   : > { %v4700_v56 = vcombine.low %v4490_v38, %v4497_v43  ;;  %v7929_v4 = vcombine.high %v4490_v38, %v4497_v43  ;;  %v4750_v40 = vcombine.low %v4556_v32, %v4563_v33  ;;  %v7931_v58 = vcombine.high %v4556_v32, %v4563_v33 }
 0x894   : > { %v4630_v38 = vcombine.low %v4598_v27, %v4613_v36  ;;  %v4631_v43 = vcombine.high %v4598_v27, %v4613_v36  ;;  %v4766_v50 = vcombine.low %v4572_v55, %v4579_v57  ;;  %v7932_v61 = vcombine.high %v4572_v55, %v4579_v57 }
 0x895   : > { %v4707_v8 = vrot.slane %v4700_v56, %v10561_v44  ;;  %v4715_v15 = vrot.slane %v7929_v4, %v10561_v44  ;;  %v4757_v60 = vrot.slane %v4750_v40, %v10561_v44  ;;  %v4765_v47 = vrot.slane %v7931_v58, %v10561_v44 }
 0x896   : > { %v4638_v49 = vrot.slane %v4630_v38, %v10566_v53  ;;  %v4645_v62 = vrot.slane %v4631_v43, %v10566_v53  ;;  %v4773_v2 = vrot.slane %v4766_v50, %v10561_v44  ;;  %v4781_v0 = vrot.slane %v7932_v61, %v10561_v44 }
 0x897   : > { %v4732_v24 = vcombine.low %v4707_v8, %v4715_v15  ;;  %v4782_v56 = vcombine.low %v4757_v60, %v4765_v47  ;;  %v4697_v4 = vrot.slane %v4690_v31, %v10566_v53  ;;  %v4815_v11 = vrot.slane %v7933_v1, %v10561_v44 }
 0x898   : > { %v4816_v5 = vcombine.low %v4638_v49, %v4645_v62  ;;  %v7934_v13 = vcombine.high %v4638_v49, %v4645_v62  ;;  %v4740_v15 = vcombine.low %v4723_v22, %v4731_v23  ;;  %v4790_v25 = vcombine.low %v4773_v2, %v4781_v0 }
 0x899   : > { %v4698_v14 = vcombine.low %v4689_v54, %v4697_v4  ;;  %v4739_v8 = vrot.slane %v4732_v24, %v10566_v53  ;;  %v4699_v16 = vcombine.high %v4689_v54, %v4697_v4  ;;  %v4832_v39 = vcombine.low %v4807_v6, %v4815_v11 }
 0x89a   : > { %v4823_v17 = vrot.slane %v4816_v5, %v10561_v44  ;;  %v4831_v18 = vrot.slane %v7934_v13, %v10561_v44  ;;  %v4747_v20 = vrot.slane %v4740_v15, %v10566_v53  ;;  %v4789_v21 = vrot.slane %v4782_v56, %v10566_v53 }
 0x89b   : > { %v4839_v3 = vrot.slane %v4832_v39, %v10566_v53  ;;  %v4797_v27 = vrot.slane %v4790_v25, %v10566_v53 }
 0x89c   : > { %v4840_v10 = vcombine.low %v4823_v17, %v4831_v18  ;;  %v4748_v12 = vcombine.low %v4739_v8, %v4747_v20  ;;  %v4749_v26 = vcombine.high %v4739_v8, %v4747_v20 }
 0x89d   : > { %v4798_v28 = vcombine.low %v4789_v21, %v4797_v27  ;;  %v4799_v29 = vcombine.high %v4789_v21, %v4797_v27 }
 0x89e   : > { %v4847_v22 = vrot.slane %v4840_v10, %v10566_v53  ;;  %v4850_v23 = vpack.c.bf16 %v4748_v12, %v4698_v14  ;;  %v4851_v24 = vpack.c.bf16 %v4749_v26, %v4699_v16 }
 0x8a0   : > { %v4848_v31 = vcombine.low %v4839_v3, %v4847_v22  ;;  %v4849_v32 = vcombine.high %v4839_v3, %v4847_v22  ;;  %8210 = vmatpush3.bf16.xpose.msra.mxu0 %v4850_v23  ;;  %8216 = vmatpush3.bf16.xpose.msra.mxu1 %v4851_v24 }
 0x8a1   : > { %8221 = vmatprep.subr.bf16.mxu0 %v9811_v30  ;;  %8227 = vmatprep.subr.bf16.mxu1 %v9811_v30 }
 0x8a2   : > { %v10909_v33 = vpack.c.bf16 %v4848_v31, %v4798_v28  ;;  %v10911_v34 = vpack.c.bf16 %v4849_v32, %v4799_v29 }
 0x918   : > { %v3591_v35 = vpop.f32.mrb[20].mxu1 }
 0x919   : > { %v3600_v36 = vmul.f32 0.088388346, %v3591_v35  ;;  %v3593_v51 = vpop.f32.mrb[21].mxu1 }
 0x91a   : > { %v3601_v52 = vmul.f32 0.088388346, %v3593_v51  ;;  %v3595_v54 = vpop.f32.mrb[22].mxu1 }
 0x91b   : > { %v4150_v55 = vcombine.high %v3600_v36, %v9811_v30  ;;  %v4157_v57 = vrot.slane %v3600_v36, %v10561_v44  ;;  %v3602_v40 = vmul.f32 0.088388346, %v3595_v54  ;;  %v3597_v58 = vpop.f32.mrb[23].mxu1 }
 0x91c   : > { %v4165_v59 = vcombine.high %v3601_v52, %v9811_v30  ;;  %v4172_v45 = vrot.slane %v3601_v52, %v10561_v44  ;;  %v3603_v38 = vmul.f32 0.088388346, %v3597_v58 }
 0x91d   : > { %v4164_v43 = vrot.slane %v4150_v55, %v10561_v44  ;;  %v4216_v60 = vcombine.high %v3602_v40, %v9811_v30  ;;  %v4223_v47 = vrot.slane %v3602_v40, %v10561_v44 }
 0x91e   : > { %v4179_v50 = vrot.slane %v4165_v59, %v10561_v44  ;;  %v4180_v61 = vcombine.low %v4157_v57, %v4172_v45  ;;  %v4181_v49 = vcombine.high %v4157_v57, %v4172_v45  ;;  %v4231_v62 = vcombine.high %v3603_v38, %v9811_v30 }
 0x91f   : > { %v4230_v63 = vrot.slane %v4216_v60, %v10561_v44  ;;  %v4238_v1 = vrot.slane %v3603_v38, %v10561_v44 }
 0x920   : > { %v4188_v2 = vrot.slane %v4180_v61, %v10566_v53  ;;  %v4195_v0 = vrot.slane %v4181_v49, %v10566_v53  ;;  %v4196_v56 = vcombine.low %v4164_v43, %v4179_v50  ;;  %v4197_v4 = vcombine.high %v4164_v43, %v4179_v50 }
 0x921   : > { %v4245_v6 = vrot.slane %v4231_v62, %v10561_v44  ;;  %v4246_v11 = vcombine.low %v4223_v47, %v4238_v1  ;;  %v4247_v5 = vcombine.high %v4223_v47, %v4238_v1 }
 0x922   : > { %v4204_v13 = vrot.slane %v4196_v56, %v10566_v53  ;;  %v4211_v14 = vrot.slane %v4197_v4, %v10566_v53  ;;  %v4282_v8 = vcombine.low %v4188_v2, %v4195_v0  ;;  %v7923_v15 = vcombine.high %v4188_v2, %v4195_v0 }
 0x923   : > { %v4254_v16 = vrot.slane %v4246_v11, %v10566_v53  ;;  %v4261_v17 = vrot.slane %v4247_v5, %v10566_v53  ;;  %v4262_v18 = vcombine.low %v4230_v63, %v4245_v6  ;;  %v4263_v39 = vcombine.high %v4230_v63, %v4245_v6 }
 0x924   : > { %v4289_v20 = vrot.slane %v4282_v8, %v10561_v44  ;;  %v4297_v21 = vrot.slane %v7923_v15, %v10561_v44  ;;  %v4298_v25 = vcombine.low %v4204_v13, %v4211_v14  ;;  %v7924_v3 = vcombine.high %v4204_v13, %v4211_v14 }
 0x925   : > { %v4270_v10 = vrot.slane %v4262_v18, %v10566_v53  ;;  %v4277_v12 = vrot.slane %v4263_v39, %v10566_v53  ;;  %v4332_v26 = vcombine.low %v4254_v16, %v4261_v17  ;;  %v7925_v27 = vcombine.high %v4254_v16, %v4261_v17 }
 0x926   : > { %v4305_v22 = vrot.slane %v4298_v25, %v10561_v44  ;;  %v4313_v23 = vrot.slane %v7924_v3, %v10561_v44  ;;  %v4314_v24 = vcombine.low %v4289_v20, %v4297_v21 }
 0x927   : > { %v4339_v28 = vrot.slane %v4332_v26, %v10561_v44  ;;  %v4347_v29 = vrot.slane %v7925_v27, %v10561_v44  ;;  %v4348_v31 = vcombine.low %v4270_v10, %v4277_v12  ;;  %v7926_v32 = vcombine.high %v4270_v10, %v4277_v12 }
 0x928   : > { %v4322_v35 = vcombine.low %v4305_v22, %v4313_v23  ;;  %v4321_v54 = vrot.slane %v4314_v24, %v10566_v53 }
 0x929   : > { %v4355_v36 = vrot.slane %v4348_v31, %v10561_v44  ;;  %v4363_v51 = vrot.slane %v7926_v32, %v10561_v44  ;;  %v4364_v52 = vcombine.low %v4339_v28, %v4347_v29 }
 0x92a   : > { %v4329_v55 = vrot.slane %v4322_v35, %v10566_v53 }
 0x92b   : > { %v4372_v57 = vcombine.low %v4355_v36, %v4363_v51  ;;  %v4371_v59 = vrot.slane %v4364_v52, %v10566_v53 }
 0x92c   : > { %v4330_v40 = vcombine.low %v4321_v54, %v4329_v55  ;;  %v4331_v58 = vcombine.high %v4321_v54, %v4329_v55 }
 0x92d   : > { %v4379_v45 = vrot.slane %v4372_v57, %v10566_v53 }
 0x92e   : > { %v4382_v38 = vpack.c.bf16 %v4330_v40, %v4330_v40  ;;  %v4383_v43 = vpack.c.bf16 %v4331_v58, %v4331_v58 }
 0x92f   : > { %v4380_v60 = vcombine.low %v4371_v59, %v4379_v45  ;;  %v4381_v47 = vcombine.high %v4371_v59, %v4379_v45 }
 0x930   : > { %8212 = vmatmul.mubr.bf16.vlgmr.msra.gmra.mrb[36].mxu0 %v4382_v38  ;;  %8218 = vmatmul.mubr.bf16.vlgmr.msra.gmra.mrb[32].mxu1 %v4383_v43 }
 0x931   : > { %8222 = vmatpush3.bf16.xpose.msra.mxu0 %v10909_v33  ;;  %8228 = vmatpush3.bf16.xpose.msra.mxu1 %v10911_v34  ;;  %v4384_v50 = vpack.c.bf16 %v4380_v60, %v4380_v60  ;;  %v4385_v61 = vpack.c.bf16 %v4381_v47, %v4381_v47 }
 0x932   : > { %8223 = vmatprep.mubr.msk.bf16.mxu0 %vm9812_vm0, %v9811_v30  ;;  %8229 = vmatprep.mubr.msk.bf16.mxu1 %vm9812_vm0, %v9811_v30 }
 0x933   : > { %8233 = vmatprep.subr.bf16.mxu0 %v9811_v30  ;;  %8239 = vmatprep.subr.bf16.mxu1 %v9811_v30 }
 0x938   : > { %8224 = vmatmul.mubr.bf16.vlgmr.msra.gmra.mrb[40].mxu0 %v4384_v50  ;;  %8230 = vmatmul.mubr.bf16.vlgmr.msra.gmra.mrb[36].mxu1 %v4385_v61 }
 0x939   : > { %8241 = vmatprep.mubr.msk.bf16.mxu1 %vm9812_vm0, %v9811_v30  ;;  %8235 = vmatprep.mubr.msk.bf16.mxu0 %vm9812_vm0, %v9811_v30 }
 0x958   : > { %v4099_v33 = vpop.f32.mrb[24].mxu1 }
 0x959   : > { %v4854_v34 = vcombine.high %v4099_v33, %v9811_v30  ;;  %v4861_v49 = vrot.slane %v4099_v33, %v10561_v44  ;;  %v4101_v62 = vpop.f32.mrb[25].mxu1 }
 0x95a   : > { %v4869_v63 = vcombine.high %v4101_v62, %v9811_v30  ;;  %v4876_v1 = vrot.slane %v4101_v62, %v10561_v44  ;;  %v4103_v2 = vpop.f32.mrb[26].mxu1 }
 0x95b   : > { %v4868_v0 = vrot.slane %v4854_v34, %v10561_v44  ;;  %v4920_v56 = vcombine.high %v4103_v2, %v9811_v30  ;;  %v4927_v4 = vrot.slane %v4103_v2, %v10561_v44  ;;  %v4105_v6 = vpop.f32.mrb[27].mxu1 }
 0x95c   : > { %v4883_v11 = vrot.slane %v4869_v63, %v10561_v44  ;;  %v4884_v5 = vcombine.low %v4861_v49, %v4876_v1  ;;  %v4885_v13 = vcombine.high %v4861_v49, %v4876_v1  ;;  %v4935_v14 = vcombine.high %v4105_v6, %v9811_v30 }
 0x95d   : > { %v4934_v8 = vrot.slane %v4920_v56, %v10561_v44  ;;  %v4942_v15 = vrot.slane %v4105_v6, %v10561_v44 }
 0x95e   : > { %v4892_v16 = vrot.slane %v4884_v5, %v10566_v53  ;;  %v4899_v17 = vrot.slane %v4885_v13, %v10566_v53  ;;  %v4900_v18 = vcombine.low %v4868_v0, %v4883_v11  ;;  %v4901_v39 = vcombine.high %v4868_v0, %v4883_v11 }
 0x95f   : > { %v4949_v20 = vrot.slane %v4935_v14, %v10561_v44  ;;  %v4950_v21 = vcombine.low %v4927_v4, %v4942_v15  ;;  %v4951_v25 = vcombine.high %v4927_v4, %v4942_v15 }
 0x960   : > { %v10972_v3 = vrot.slane %v4900_v18, %v10566_v53  ;;  %v10975_v10 = vrot.slane %v4901_v39, %v10566_v53  ;;  %v5118_v12 = vcombine.low %v4892_v16, %v4899_v17  ;;  %v7935_v26 = vcombine.high %v4892_v16, %v4899_v17  ;;  %v4109_v27 = vpop.f32.mrb[28].mxu1 }
 0x961   : > { %v4958_v22 = vrot.slane %v4950_v21, %v10566_v53  ;;  %v4965_v23 = vrot.slane %v4951_v25, %v10566_v53  ;;  %v4966_v24 = vcombine.low %v4934_v8, %v4949_v20  ;;  %v4967_v28 = vcombine.high %v4934_v8, %v4949_v20  ;;  %v4111_v29 = vpop.f32.mrb[29].mxu1 }
 0x962   : > { %v10980_v31 = vrot.slane %v5118_v12, %v10561_v44  ;;  %v10983_v32 = vrot.slane %v7935_v26, %v10561_v44  ;;  %v5134_v35 = vcombine.low %v10972_v3, %v10975_v10  ;;  %v7936_v36 = vcombine.high %v10972_v3, %v10975_v10  ;;  %v4113_v51 = vpop.f32.mrb[30].mxu1 }
 0x963   : > { %v4974_v52 = vrot.slane %v4966_v24, %v10566_v53  ;;  %v4981_v54 = vrot.slane %v4967_v28, %v10566_v53  ;;  %v5168_v55 = vcombine.low %v4958_v22, %v4965_v23  ;;  %v7937_v57 = vcombine.high %v4958_v22, %v4965_v23  ;;  %v4115_v40 = vpop.f32.mrb[31].mxu1 }
 0x964   : > { %v5150_v58 = vcombine.low %v10980_v31, %v10983_v32  ;;  %v4986_v59 = vcombine.high %v4109_v27, %v9811_v30  ;;  %v4993_v47 = vrot.slane %v4109_v27, %v10561_v44  ;;  %v5001_v61 = vcombine.high %v4111_v29, %v9811_v30 }
 0x965   : > { %v5175_v45 = vrot.slane %v5168_v55, %v10561_v44  ;;  %v5183_v38 = vrot.slane %v7937_v57, %v10561_v44  ;;  %v5184_v43 = vcombine.low %v4974_v52, %v4981_v54  ;;  %v7938_v60 = vcombine.high %v4974_v52, %v4981_v54 }
 0x966   : > { %v5000_v50 = vrot.slane %v4986_v59, %v10561_v44  ;;  %v5008_v33 = vrot.slane %v4111_v29, %v10561_v44  ;;  %v5052_v49 = vcombine.high %v4113_v51, %v9811_v30  ;;  %v5015_v62 = vrot.slane %v5001_v61, %v10561_v44 }
 0x967   : > { %v5200_v34 = vcombine.low %v5175_v45, %v5183_v38  ;;  %v5059_v2 = vrot.slane %v4113_v51, %v10561_v44  ;;  %v5067_v56 = vcombine.high %v4115_v40, %v9811_v30  ;;  %v5074_v4 = vrot.slane %v4115_v40, %v10561_v44 }
 0x968   : > { %v5016_v63 = vcombine.low %v4993_v47, %v5008_v33  ;;  %v5017_v1 = vcombine.high %v4993_v47, %v5008_v33  ;;  %v5066_v0 = vrot.slane %v5052_v49, %v10561_v44  ;;  %v5032_v5 = vcombine.low %v5000_v50, %v5015_v62 }
 0x969   : > { %v5033_v13 = vcombine.high %v5000_v50, %v5015_v62  ;;  %v5081_v14 = vrot.slane %v5067_v56, %v10561_v44  ;;  %v5082_v8 = vcombine.low %v5059_v2, %v5074_v4  ;;  %v5083_v15 = vcombine.high %v5059_v2, %v5074_v4 }
 0x96a   : > { %v5024_v6 = vrot.slane %v5016_v63, %v10566_v53  ;;  %v5031_v11 = vrot.slane %v5017_v1, %v10566_v53  ;;  %v5040_v16 = vrot.slane %v5032_v5, %v10566_v53  ;;  %v5141_v55 = vrot.slane %v5134_v35, %v10561_v44 }
 0x96b   : > { %v5047_v17 = vrot.slane %v5033_v13, %v10566_v53  ;;  %v5090_v20 = vrot.slane %v5082_v8, %v10566_v53  ;;  %v5097_v21 = vrot.slane %v5083_v15, %v10566_v53  ;;  %v5098_v25 = vcombine.low %v5066_v0, %v5081_v14 }
 0x96c   : > { %v5218_v18 = vcombine.low %v5024_v6, %v5031_v11  ;;  %v7939_v39 = vcombine.high %v5024_v6, %v5031_v11  ;;  %v5099_v3 = vcombine.high %v5066_v0, %v5081_v14  ;;  %v5149_v57 = vrot.slane %v7936_v36, %v10561_v44 }
 0x96d   : > { %v5234_v26 = vcombine.low %v5040_v16, %v5047_v17  ;;  %v7940_v27 = vcombine.high %v5040_v16, %v5047_v17  ;;  %v5106_v22 = vrot.slane %v5098_v25, %v10566_v53  ;;  %v5268_v24 = vcombine.low %v5090_v20, %v5097_v21  ;;  %v955_v17 = vld [vmem:[%s10506_s22] sm:$0x1] }
 0x96e   : > { %v5225_v10 = vrot.slane %v5218_v18, %v10561_v44  ;;  %v5233_v12 = vrot.slane %v7939_v39, %v10561_v44  ;;  %v5113_v23 = vrot.slane %v5099_v3, %v10566_v53  ;;  %v7941_v28 = vcombine.high %v5090_v20, %v5097_v21  ;;  %v956_v39 = vld [vmem:[%s10506_s22 + $0x1] sm:$0x1] }
 0x96f   : > { %v5275_v31 = vrot.slane %v5268_v24, %v10561_v44  ;;  %v5191_v40 = vrot.slane %v5184_v43, %v10561_v44  ;;  %v5199_v59 = vrot.slane %v7938_v60, %v10561_v44  ;;  %v5158_v45 = vcombine.low %v5141_v55, %v5149_v57 }
 0x970   : > { %v5250_v29 = vcombine.low %v5225_v10, %v5233_v12  ;;  %v5283_v32 = vrot.slane %v7941_v28, %v10561_v44  ;;  %v5284_v51 = vcombine.low %v5106_v22, %v5113_v23  ;;  %v7942_v52 = vcombine.high %v5106_v22, %v5113_v23 }
 0x971   : > { %v5208_v38 = vcombine.low %v5191_v40, %v5199_v59  ;;  %v5157_v47 = vrot.slane %v5150_v58, %v10566_v53  ;;  %v5165_v50 = vrot.slane %v5158_v45, %v10566_v53  ;;  %v5207_v61 = vrot.slane %v5200_v34, %v10566_v53 }
 0x972   : > { %v5300_v54 = vcombine.low %v5275_v31, %v5283_v32  ;;  %v5241_v33 = vrot.slane %v5234_v26, %v10561_v44  ;;  %v5249_v49 = vrot.slane %v7940_v27, %v10561_v44  ;;  %v5291_v36 = vrot.slane %v5284_v51, %v10561_v44 }
 0x973   : > { %v5215_v35 = vrot.slane %v5208_v38, %v10566_v53  ;;  %v5299_v43 = vrot.slane %v7942_v52, %v10561_v44  ;;  %v5166_v62 = vcombine.low %v5157_v47, %v5165_v50  ;;  %v5167_v60 = vcombine.high %v5157_v47, %v5165_v50 }
 0x974   : > { %v5258_v0 = vcombine.low %v5241_v33, %v5249_v49  ;;  %v5257_v34 = vrot.slane %v5250_v29, %v10566_v53  ;;  %v5307_v6 = vrot.slane %v5300_v54, %v10566_v53  ;;  %vm5482_vm10 = vcmp.ne.s32.totalorder %v955_v17, 0 }
 0x975   : > { %v5216_v63 = vcombine.low %v5207_v61, %v5215_v35  ;;  %v5217_v1 = vcombine.high %v5207_v61, %v5215_v35  ;;  %v5308_v56 = vcombine.low %v5291_v36, %v5299_v43  ;;  %v5484_v18 = vsel %vm5482_vm10, 1, %v9815_v9 }
 0x976   : > { %v5265_v4 = vrot.slane %v5258_v0, %v10566_v53  ;;  %v5489_v20 = vrot.slane %v5484_v18, %v10680_v7  ;;  %vm5483_vm11 = vcmp.ne.s32.totalorder %v956_v39, 0  ;;  %v8837_v39 = vld [vmem:[#allocation19 + $0x4] ss:$8 sps:$4 sm:$0xff]  }
 0x977   : > { %v5318_v2 = vpack.c.bf16 %v5216_v63, %v5166_v62  ;;  %v5319_v58 = vpack.c.bf16 %v5217_v1, %v5167_v60  ;;  %v5315_v11 = vrot.slane %v5308_v56, %v10566_v53  ;;  %v5485_v21 = vsel %vm5483_vm11, 1, %v9815_v9 }
 0x978   : > { %v5266_v5 = vcombine.low %v5257_v34, %v5265_v4  ;;  %v5267_v13 = vcombine.high %v5257_v34, %v5265_v4  ;;  %vm5494_vm12 = vcmp.eq.s32.totalorder %v5489_v20, 1  ;;  %v5493_v29 = vrot.slane %v5485_v21, %v10680_v7  ;;  %v8838_v20 = vld [vmem:[#allocation19 + $0x10] ss:$8 sps:$4 sm:$0xff]   ;;  %v8843_v21 = vld [vmem:[#allocation19 + $0x24] ss:$8 sps:$4 sm:$0xff]  }
 0x979   : > { %8234 = vmatpush3.bf16.msra.mxu0 %v5318_v2  ;;  %8240 = vmatpush3.bf16.msra.mxu1 %v5319_v58  ;;  %v5316_v14 = vcombine.low %v5307_v6, %v5315_v11  ;;  %v5317_v8 = vcombine.high %v5307_v6, %v5315_v11 }
 0x97a   : > { %8251 = vmatprep.subr.bf16.mxu1 %v9811_v30  ;;  %8245 = vmatprep.subr.bf16.mxu0 %v9811_v30  ;;  %vm5495_vm14 = vcmp.eq.s32.totalorder %v5493_v29, 1  ;;  %v8856_v29 = vld [vmem:[#allocation19 + $0x70] ss:$8 sps:$4 sm:$0xff]  }
 0x97b   : > { %v11037_v15 = vpack.c.bf16 %v5316_v14, %v5266_v5  ;;  %v11039_v16 = vpack.c.bf16 %v5317_v8, %v5267_v13 }
 0xa03   : > { %v5356_v25 = vpop.f32.mrb[36].mxu0  ;;  %v5396_v3 = vpop.f32.mrb[32].mxu1 }
 0xa04   : > { %v5496_v10 = vsel %vm5494_vm12, -1e+30, %v5356_v25  ;;  %v5497_v12 = vsel %vm5494_vm12, -1e+30, %v5396_v3  ;;  %v8213_v26 = vpop.f32.mrb[37].mxu0  ;;  %v8219_v27 = vpop.f32.mrb[33].mxu1 }
 0xa05   : > { %v5359_v22 = vpop.f32.mrb[38].mxu0  ;;  %v5399_v23 = vpop.f32.mrb[34].mxu1  ;;  %v5501_v24 = vsel %vm5500_vm13, %v5496_v10, -inf  ;;  %v5504_v28 = vsel %vm5500_vm13, %v5497_v12, -inf  ;;  %v8841_v25 = vld [vmem:[#allocation19 + $0x20] ss:$8 sps:$4 sm:$0xff]  }
 0xa06   : > { %5502 = vmax.xlane.f32.xlu0 %v5501_v24  ;;  %v8214_v31 = vpop.f32.mrb[39].mxu0  ;;  %5505 = vmax.xlane.f32.xlu1 %v5504_v28  ;;  %v8220_v32 = vpop.f32.mrb[35].mxu1  ;;  %v8846_v3 = vld [vmem:[#allocation19 + $0x34] ss:$8 sps:$4 sm:$0xff]   ;;  %v8847_v26 = vld [vmem:[#allocation19 + $0x40] ss:$8 sps:$4 sm:$0xff]  }
 0xa07   : > { %v8852_v27 = vld [vmem:[#allocation19 + $0x54] ss:$8 sps:$4 sm:$0xff]   ;;  %v8850_v22 = vld [vmem:[#allocation19 + $0x50] ss:$8 sps:$4 sm:$0xff]   ;;  %v8855_v23 = vld [vmem:[#allocation19 + $0x64] ss:$8 sps:$4 sm:$0xff]  }
 0xa08   : > { %v8853_v24 = vld [vmem:[#allocation19 + $0x60] ss:$8 sps:$4 sm:$0xff]   ;;  %v8858_v28 = vld [vmem:[#allocation19 + $0x74] ss:$8 sps:$4 sm:$0xff]   ;;  %v8861_v31 = vld [vmem:[#allocation19 + $0x84] ss:$8 sps:$4 sm:$0xff]  }
 0xa09   : > { %v8859_v32 = vld [vmem:[#allocation19 + $0x80] ss:$8 sps:$4 sm:$0xff]  }
 0xa0b   : > { %v5436_v9 = vpop.f32.mrb[40].mxu0  ;;  %v5476_v51 = vpop.f32.mrb[36].mxu1 }
 0xa0c   : > { %v5498_v52 = vsel %vm5495_vm14, -1e+30, %v5436_v9  ;;  %v5499_v54 = vsel %vm5495_vm14, -1e+30, %v5476_v51  ;;  %v8225_v55 = vpop.f32.mrb[41].mxu0  ;;  %v8231_v57 = vpop.f32.mrb[37].mxu1 }
 0xa0d   : > { %v5439_v40 = vpop.f32.mrb[42].mxu0  ;;  %v5479_v59 = vpop.f32.mrb[38].mxu1  ;;  %v5510_v45 = vsel %vm5500_vm13, %v5499_v54, -inf  ;;  %v5507_v38 = vsel %vm5500_vm13, %v5498_v52, -inf  ;;  %v8864_v9 = vld [vmem:[#allocation19 + $0x94] ss:$8 sps:$4 sm:$0xff]  }
 0xa0e   : > { %5511 = vmax.xlane.f32.xlu1 %v5510_v45  ;;  %v8232_v47 = vpop.f32.mrb[39].mxu1  ;;  %5508 = vmax.xlane.f32.xlu0 %v5507_v38  ;;  %v8226_v50 = vpop.f32.mrb[43].mxu0  ;;  %v8862_v51 = vld [vmem:[#allocation19 + $0x90] ss:$8 sps:$4 sm:$0xff]   ;;  %v8870_v55 = vld [vmem:[#allocation19 + $0xb4] ss:$8 sps:$4 sm:$0xff]  }
 0xa0f   : > { %v8868_v57 = vld [vmem:[#allocation19 + $0xb0] ss:$8 sps:$4 sm:$0xff]   ;;  %v8873_v40 = vld [vmem:[#allocation19 + $0xc4] ss:$8 sps:$4 sm:$0xff]   ;;  %v8871_v59 = vld [vmem:[#allocation19 + $0xc0] ss:$8 sps:$4 sm:$0xff]  }
 0xa10   : > { %v8876_v45 = vld [vmem:[#allocation19 + $0xd4] ss:$8 sps:$4 sm:$0xff]   ;;  %v8874_v38 = vld [vmem:[#allocation19 + $0xd0] ss:$8 sps:$4 sm:$0xff]   ;;  %v8879_v47 = vld [vmem:[#allocation19 + $0xe4] ss:$8 sps:$4 sm:$0xff]  }
 0xa11   : > { %v8877_v50 = vld [vmem:[#allocation19 + $0xe0] ss:$8 sps:$4 sm:$0xff]  }
 0xa93   : > { %v11051_v61 = vpop.xlane.xlu0 %5502  ;;  %v11053_v33 = vpop.xlane.xlu1 %5505 }
 0xa94   : > { %v5525_v49 = vsub.f32 %v5496_v10, %v11051_v61  ;;  %v5526_v35 = vsub.f32 %v5497_v12, %v11053_v33  ;;  %v8844_v10 = vld [vmem:[#allocation19 + $0x30] ss:$8 sps:$4 sm:$0xff]   ;;  %v8849_v12 = vld [vmem:[#allocation19 + $0x44] ss:$8 sps:$4 sm:$0xff]  }
 0xa96   : > { %v5529_v36 = vmul.f32 1.442695, %v5525_v49  ;;  %v5531_v43 = vmul.f32 1.442695, %v5526_v35  ;;  %v8882_v49 = vld [vmem:[#allocation19 + $0xf4] ss:$8 sps:$4 sm:$0xff]  }
 0xa97   : > { %v8880_v35 = vld [vmem:[#allocation19 + $0xf0] ss:$8 sps:$4 sm:$0xff]  }
 0xa98   : > { %9103 = vpow2.f32 %v5529_v36  ;;  %v5513_v36 = vsub.f32 -inf, %v11051_v61 }
 0xa99   : > { %9105 = vpow2.f32 %v5531_v43  ;;  %v5514_v43 = vsub.f32 -inf, %v11053_v33 }
 0xa9b   : > { %v11057_v62 = vpop.xlane.xlu1 %5511  ;;  %v11059_v60 = vpop.xlane.xlu0 %5508 }
 0xa9c   : > { %v5528_v63 = vsub.f32 %v5499_v54, %v11057_v62  ;;  %v5527_v1 = vsub.f32 %v5498_v52, %v11059_v60  ;;  %v8867_v52 = vld [vmem:[#allocation19 + $0xa4] ss:$8 sps:$4 sm:$0xff]   ;;  %v8865_v54 = vld [vmem:[#allocation19 + $0xa0] ss:$8 sps:$4 sm:$0xff]  }
 0xa9e   : > { %v5535_v2 = vmul.f32 1.442695, %v5528_v63  ;;  %v5533_v58 = vmul.f32 1.442695, %v5527_v1  ;;  %v5517_v63 = vmul.f32 1.442695, %v5513_v36 }
 0xa9f   : > { %v5519_v1 = vmul.f32 1.442695, %v5514_v43 }
 0xaa0   : > { %9107 = vpow2.f32 %v5535_v2  ;;  %v5516_v2 = vsub.f32 -inf, %v11057_v62 }
 0xaa1   : > { %9109 = vpow2.f32 %v5533_v58  ;;  %v5515_v58 = vsub.f32 -inf, %v11059_v60 }
 0xaa2   : > { %v9104_v0 = vpop.eup %9103  ;;  %9111 = vpow2.f32 %v5517_v63 }
 0xaa3   : > { %v5541_v56 = vsel %vm5500_vm13, %v9104_v0, 0.0  ;;  %v5557_v34 = vpack.c.bf16 %v9104_v0, %v9104_v0  ;;  %v9106_v4 = vpop.eup %9105  ;;  %9113 = vpow2.f32 %v5519_v1  ;;  %v5523_v0 = vmul.f32 1.442695, %v5516_v2 }
 0xaa4   : > { %5542 = vadd.xlane.f32.xlu0 %v5541_v56  ;;  %v5544_v6 = vsel %vm5500_vm13, %v9106_v4, 0.0  ;;  %v5558_v11 = vpack.c.bf16 %v9106_v4, %v9106_v4  ;;  %v5521_v56 = vmul.f32 1.442695, %v5515_v58 }
 0xaa5   : > { %8236 = vmatmul.mubr.msk.bf16.vlgmr.msra.gmra.mrb[44].mxu0 %vm5500_vm13, %v5557_v34  ;;  %5545 = vadd.xlane.f32.xlu1 %v5544_v6  ;;  %9115 = vpow2.f32 %v5523_v0 }
 0xaa6   : > { %8246 = vmatpush3.bf16.msra.mxu0 %v11037_v15  ;;  %8242 = vmatmul.mubr.msk.bf16.vlgmr.msra.gmra.mrb[40].mxu1 %vm5500_vm13, %v5558_v11  ;;  %v8835_v15 = vld [vmem:[#allocation19] ss:$8 sps:$4 sm:$0xff]   ;;  %9117 = vpow2.f32 %v5521_v56 }
 0xaa7   : > { %8247 = vmatprep.mubr.msk.bf16.mxu0 %vm9812_vm0, %v9811_v30  ;;  %8252 = vmatpush3.bf16.msra.mxu1 %v11039_v16  ;;  %v8840_v16 = vld [vmem:[#allocation19 + $0x14] ss:$8 sps:$4 sm:$0xff]  }
 0xaa8   : > { %8253 = vmatprep.mubr.msk.bf16.mxu1 %vm9812_vm0, %v9811_v30  ;;  %6139 = vmatprep.subr.bf16.mxu0 %v8837_v39 }
 0xaaa   : > { %v9108_v5 = vpop.eup %9107 }
 0xaab   : > { %v5550_v13 = vsel %vm5500_vm13, %v9108_v5, 0.0  ;;  %v5560_v14 = vpack.c.bf16 %v9108_v5, %v9108_v5  ;;  %v9110_v8 = vpop.eup %9109 }
 0xaac   : > { %5551 = vadd.xlane.f32.xlu1 %v5550_v13  ;;  %v5547_v17 = vsel %vm5500_vm13, %v9110_v8, 0.0  ;;  %v5559_v18 = vpack.c.bf16 %v9110_v8, %v9110_v8  ;;  %v9112_v34 = vpop.eup %9111 }
 0xaad   : > { %5548 = vadd.xlane.f32.xlu0 %v5547_v17  ;;  %v9114_v4 = vpop.eup %9113  ;;  %v5537_v11 = vmul.f32 0.0, %v9112_v34 }
 0xaae   : > { %8248 = vmatmul.mubr.msk.bf16.vlgmr.msra.gmra.mrb[48].mxu0 %vm5500_vm13, %v5559_v18  ;;  %8254 = vmatmul.mubr.msk.bf16.vlgmr.msra.gmra.mrb[44].mxu1 %vm5500_vm13, %v5560_v14  ;;  %v5538_v61 = vmul.f32 0.0, %v9114_v4 }
 0xaaf   : > { %6140 = vmatpush1.bf16.msra.mxu0 %v8835_v15  ;;  %v9116_v14 = vpop.eup %9115 }
 0xab0   : > { %6141 = vmatprep.subr.bf16.mxu0 %v8840_v16  ;;  %v9118_v8 = vpop.eup %9117  ;;  %v5540_v62 = vmul.f32 0.0, %v9116_v14 }
 0xab1   : > { %v5539_v60 = vmul.f32 0.0, %v9118_v8 }
 0xab3   : > { %6142 = vmatpush1.bf16.msra.mxu0 %v8838_v20 }
 0xab4   : > { %6143 = vmatprep.subr.bf16.mxu0 %v8843_v21 }
 0xab7   : > { %6144 = vmatpush1.bf16.msra.mxu0 %v8841_v25 }
 0xab8   : > { %6145 = vmatprep.subr.bf16.mxu0 %v8846_v3 }
 0xabb   : > { %6146 = vmatpush1.bf16.msra.mxu0 %v8844_v10 }
 0xabc   : > { %6147 = vmatprep.subr.bf16.mxu0 %v8849_v12 }
 0xabf   : > { %6148 = vmatpush1.bf16.msra.mxu0 %v8847_v26 }
 0xac0   : > { %6149 = vmatprep.subr.bf16.mxu0 %v8852_v27 }
 0xac3   : > { %6150 = vmatpush1.bf16.msra.mxu0 %v8850_v22 }
 0xac4   : > { %6151 = vmatprep.subr.bf16.mxu0 %v8855_v23 }
 0xac7   : > { %6152 = vmatpush1.bf16.msra.mxu0 %v8853_v24 }
 0xac8   : > { %6153 = vmatprep.subr.bf16.mxu0 %v8858_v28 }
 0xacb   : > { %6154 = vmatpush1.bf16.msra.mxu0 %v8856_v29 }
 0xacc   : > { %6155 = vmatprep.subr.bf16.mxu0 %v8861_v31 }
 0xacf   : > { %6156 = vmatpush1.bf16.msra.mxu0 %v8859_v32 }
 0xad0   : > { %6157 = vmatprep.subr.bf16.mxu0 %v8864_v9 }
 0xad3   : > { %6158 = vmatpush1.bf16.msra.mxu0 %v8862_v51 }
 0xad4   : > { %6159 = vmatprep.subr.bf16.mxu0 %v8867_v52 }
 0xad7   : > { %6160 = vmatpush1.bf16.msra.mxu0 %v8865_v54 }
 0xad8   : > { %6161 = vmatprep.subr.bf16.mxu0 %v8870_v55 }
 0xadb   : > { %6162 = vmatpush1.bf16.msra.mxu0 %v8868_v57 }
 0xadc   : > { %6163 = vmatprep.subr.bf16.mxu0 %v8873_v40 }
 0xadf   : > { %6164 = vmatpush1.bf16.msra.mxu0 %v8871_v59 }
 0xae0   : > { %6165 = vmatprep.subr.bf16.mxu0 %v8876_v45 }
 0xae3   : > { %6166 = vmatpush1.bf16.msra.mxu0 %v8874_v38 }
 0xae4   : > { %6167 = vmatprep.subr.bf16.mxu0 %v8879_v47 }
 0xae7   : > { %6168 = vmatpush1.bf16.msra.mxu0 %v8877_v50 }
 0xae8   : > { %6169 = vmatprep.subr.bf16.mxu0 %v8882_v49 }
 0xaeb   : > { %6170 = vmatpush1.bf16.msra.mxu0 %v8880_v35 }
 0xb31   : > { %v5543_v6 = vpop.xlane.xlu0 %5542 }
 0xb32   : > { %v5546_v5 = vpop.xlane.xlu1 %5545  ;;  %v5553_v13 = vadd.f32 %v5543_v6, %v5537_v11 }
 0xb33   : > { %v5554_v33 = vadd.f32 %v5546_v5, %v5538_v61 }
 0xb34   : > { %9119 = vrcp.f32 %v5553_v13 }
 0xb35   : > { %9121 = vrcp.f32 %v5554_v33 }
 0xb39   : > { %v5552_v17 = vpop.xlane.xlu1 %5551 }
 0xb3a   : > { %v5549_v18 = vpop.xlane.xlu0 %5548  ;;  %v5556_v15 = vadd.f32 %v5552_v17, %v5540_v62 }
 0xb3b   : > { %v5555_v39 = vadd.f32 %v5549_v18, %v5539_v60 }
 0xb3c   : > { %9123 = vrcp.f32 %v5556_v15 }
 0xb3d   : > { %9125 = vrcp.f32 %v5555_v39 }
 0xb3e   : > { %v9120_v25 = vpop.eup %9119 }
 0xb3f   : > { %v9122_v23 = vpop.eup %9121 }
 0xb46   : > { %v9124_v36 = vpop.eup %9123 }
 0xb47   : > { %v9126_v58 = vpop.eup %9125 }
 0xb78   : > { %v5598_v16 = vpop.f32.mrb[44].mxu0 }
 0xb79   : > { %v5733_v20 = vadd.f32 %v5598_v16, %v5537_v11  ;;  %v8237_v21 = vpop.f32.mrb[45].mxu0  ;;  %v5641_v3 = vpop.f32.mrb[40].mxu1 }
 0xb7a   : > { %v5601_v10 = vpop.f32.mrb[46].mxu0  ;;  %v5734_v26 = vadd.f32 %v5641_v3, %v5538_v61  ;;  %v8243_v27 = vpop.f32.mrb[41].mxu1 }
 0xb7b   : > { %v5741_v12 = vmul.f32 %v9120_v25, %v5733_v20  ;;  %v8238_v22 = vpop.f32.mrb[47].mxu0  ;;  %v5644_v24 = vpop.f32.mrb[42].mxu1 }
 0xb7c   : > { %v5742_v31 = vmul.f32 %v9122_v23, %v5734_v26  ;;  %v8244_v32 = vpop.f32.mrb[43].mxu1 }
 0xb7d   : > { %v5745_v28 = vcombine.high %v5741_v12, %v9811_v30  ;;  %v5752_v29 = vrot.slane %v5741_v12, %v10561_v44 }
 0xb7e   : > { %v5760_v51 = vcombine.high %v5742_v31, %v9811_v30  ;;  %v5767_v52 = vrot.slane %v5742_v31, %v10561_v44 }
 0xb7f   : > { %v5759_v9 = vrot.slane %v5745_v28, %v10561_v44 }
 0xb80   : > { %v5774_v54 = vrot.slane %v5760_v51, %v10561_v44  ;;  %v5775_v55 = vcombine.low %v5752_v29, %v5767_v52  ;;  %v5776_v57 = vcombine.high %v5752_v29, %v5767_v52 }
 0xb81   : > { %v5684_v40 = vpop.f32.mrb[48].mxu0  ;;  %v5727_v59 = vpop.f32.mrb[44].mxu1 }
 0xb82   : > { %v5783_v45 = vrot.slane %v5775_v55, %v10566_v53  ;;  %v5790_v38 = vrot.slane %v5776_v57, %v10566_v53  ;;  %v5791_v47 = vcombine.low %v5759_v9, %v5774_v54  ;;  %v5792_v50 = vcombine.high %v5759_v9, %v5774_v54  ;;  %v8249_v49 = vpop.f32.mrb[49].mxu0  ;;  %v8255_v35 = vpop.f32.mrb[45].mxu1 }
 0xb83   : > { %v5735_v43 = vadd.f32 %v5684_v40, %v5539_v60  ;;  %v5736_v63 = vadd.f32 %v5727_v59, %v5540_v62  ;;  %v5687_v1 = vpop.f32.mrb[50].mxu0  ;;  %v5730_v2 = vpop.f32.mrb[46].mxu1 }
 0xb84   : > { %v5799_v0 = vrot.slane %v5791_v47, %v10566_v53  ;;  %v5806_v56 = vrot.slane %v5792_v50, %v10566_v53  ;;  %v5877_v34 = vcombine.low %v5783_v45, %v5790_v38  ;;  %v7947_v4 = vcombine.high %v5783_v45, %v5790_v38  ;;  %v8250_v6 = vpop.f32.mrb[51].mxu0  ;;  %v8256_v11 = vpop.f32.mrb[47].mxu1 }
 0xb85   : > { %v5743_v5 = vmul.f32 %v9126_v58, %v5735_v43  ;;  %v5744_v61 = vmul.f32 %v9124_v36, %v5736_v63  ;;  %v8888_v6 = vld [vmem:[#allocation23 + $0xc] ss:$16 sps:$4 sm:$0xff]   ;;  %v8891_v11 = vld [vmem:[#allocation23 + $0x24] ss:$16 sps:$4 sm:$0xff]  }
 0xb86   : > { %v5893_v13 = vcombine.low %v5799_v0, %v5806_v56  ;;  %v7948_v33 = vcombine.high %v5799_v0, %v5806_v56  ;;  %v5884_v14 = vrot.slane %v5877_v34, %v10561_v44  ;;  %v5892_v8 = vrot.slane %v7947_v4, %v10561_v44  ;;  %v8883_v34 = vld [vmem:[#allocation23] ss:$16 sps:$4 sm:$0xff]   ;;  %v8885_v4 = vld [vmem:[#allocation23 + $0x4] ss:$16 sps:$4 sm:$0xff]   ;;  %6701 = vmatprep.subr.bf16.mxu0 %v8888_v6 }
 0xb87   : > { %v5811_v17 = vcombine.high %v5743_v5, %v9811_v30  ;;  %v5818_v62 = vrot.slane %v5743_v5, %v10561_v44  ;;  %v5826_v18 = vcombine.high %v5744_v61, %v9811_v30  ;;  %v5833_v60 = vrot.slane %v5744_v61, %v10561_v44  ;;  %6658 = vmatprep.subr.bf16.mxu1 %v8885_v4  ;;  %v8889_v5 = vld [vmem:[#allocation23 + $0x20] ss:$16 sps:$4 sm:$0xff]   ;;  %v8897_v61 = vld [vmem:[#allocation23 + $0x44] ss:$16 sps:$4 sm:$0xff]  }
 0xb88   : > { %v5900_v15 = vrot.slane %v5893_v13, %v10561_v44  ;;  %v5908_v39 = vrot.slane %v7948_v33, %v10561_v44  ;;  %v5909_v16 = vcombine.low %v5884_v14, %v5892_v8  ;;  %6659 = vmatpush1.bf16.msra.mxu1 %v8883_v34  ;;  %v8900_v13 = vld [vmem:[#allocation23 + $0x4c] ss:$16 sps:$4 sm:$0xff]   ;;  %v8895_v33 = vld [vmem:[#allocation23 + $0x40] ss:$16 sps:$4 sm:$0xff]   ;;  %v8898_v14 = vld [vmem:[#allocation23 + $0x48] ss:$16 sps:$4 sm:$0xff]  }
 0xb89   : > { %v5825_v20 = vrot.slane %v5811_v17, %v10561_v44  ;;  %v5840_v21 = vrot.slane %v5826_v18, %v10561_v44  ;;  %v5841_v25 = vcombine.low %v5818_v62, %v5833_v60  ;;  %v5842_v3 = vcombine.high %v5818_v62, %v5833_v60  ;;  %6660 = vmatprep.subr.bf16.mxu1 %v8891_v11  ;;  %v8903_v8 = vld [vmem:[#allocation23 + $0x64] ss:$16 sps:$4 sm:$0xff]   ;;  %v8906_v17 = vld [vmem:[#allocation23 + $0x6c] ss:$16 sps:$4 sm:$0xff]   ;;  %v8901_v62 = vld [vmem:[#allocation23 + $0x60] ss:$16 sps:$4 sm:$0xff]  }
 0xb8a   : > { %v5917_v10 = vcombine.low %v5900_v15, %v5908_v39  ;;  %v5916_v22 = vrot.slane %v5909_v16, %v10566_v53  ;;  %v8904_v18 = vld [vmem:[#allocation23 + $0x68] ss:$16 sps:$4 sm:$0xff]   ;;  %v8909_v60 = vld [vmem:[#allocation23 + $0x84] ss:$16 sps:$4 sm:$0xff]   ;;  %v8912_v15 = vld [vmem:[#allocation23 + $0x8c] ss:$16 sps:$4 sm:$0xff]  }
 0xb8b   : > { %v5849_v12 = vrot.slane %v5841_v25, %v10566_v53  ;;  %v5856_v26 = vrot.slane %v5842_v3, %v10566_v53  ;;  %v5857_v27 = vcombine.low %v5825_v20, %v5840_v21  ;;  %v5858_v30 = vcombine.high %v5825_v20, %v5840_v21  ;;  %v8907_v39 = vld [vmem:[#allocation23 + $0x80] ss:$16 sps:$4 sm:$0xff]   ;;  %v8910_v16 = vld [vmem:[#allocation23 + $0x88] ss:$16 sps:$4 sm:$0xff]   ;;  %v8915_v20 = vld [vmem:[#allocation23 + $0xa4] ss:$16 sps:$4 sm:$0xff]  }
 0xb8c   : > { %v5924_v23 = vrot.slane %v5917_v10, %v10566_v53  ;;  %6661 = vmatpush1.bf16.msra.mxu1 %v8889_v5  ;;  %v8918_v21 = vld [vmem:[#allocation23 + $0xac] ss:$16 sps:$4 sm:$0xff]   ;;  %v8913_v25 = vld [vmem:[#allocation23 + $0xa0] ss:$16 sps:$4 sm:$0xff]   ;;  %v8916_v3 = vld [vmem:[#allocation23 + $0xa8] ss:$16 sps:$4 sm:$0xff]  }
 0xb8d   : > { %v5865_v24 = vrot.slane %v5857_v27, %v10566_v53  ;;  %v5872_v28 = vrot.slane %v5858_v30, %v10566_v53  ;;  %v5927_v29 = vcombine.low %v5849_v12, %v5856_v26  ;;  %v7949_v31 = vcombine.high %v5849_v12, %v5856_v26  ;;  %6662 = vmatprep.subr.bf16.mxu1 %v8897_v61  ;;  %v8921_v10 = vld [vmem:[#allocation23 + $0xc4] ss:$16 sps:$4 sm:$0xff]   ;;  %v8924_v12 = vld [vmem:[#allocation23 + $0xcc] ss:$16 sps:$4 sm:$0xff]   ;;  %v8919_v26 = vld [vmem:[#allocation23 + $0xc0] ss:$16 sps:$4 sm:$0xff]  }
 0xb8e   : > { %v5926_v32 = vcombine.high %v5916_v22, %v5924_v23  ;;  %v5925_v9 = vcombine.low %v5916_v22, %v5924_v23  ;;  %v8922_v27 = vld [vmem:[#allocation23 + $0xc8] ss:$16 sps:$4 sm:$0xff]   ;;  %v8927_v30 = vld [vmem:[#allocation23 + $0xe4] ss:$16 sps:$4 sm:$0xff]   ;;  %v8930_v22 = vld [vmem:[#allocation23 + $0xec] ss:$16 sps:$4 sm:$0xff]  }
 0xb8f   : > { %v5943_v51 = vcombine.low %v5865_v24, %v5872_v28  ;;  %v7950_v52 = vcombine.high %v5865_v24, %v5872_v28  ;;  %v5934_v54 = vrot.slane %v5927_v29, %v10561_v44  ;;  %v5942_v55 = vrot.slane %v7949_v31, %v10561_v44  ;;  %v8925_v23 = vld [vmem:[#allocation23 + $0xe0] ss:$16 sps:$4 sm:$0xff]   ;;  %v8928_v24 = vld [vmem:[#allocation23 + $0xe8] ss:$16 sps:$4 sm:$0xff]   ;;  %v8933_v28 = vld [vmem:[#allocation23 + $0x104] ss:$16 sps:$4 sm:$0xff]  }
 0xb90   : > { %6663 = vmatpush1.bf16.msra.mxu1 %v8895_v33  ;;  %v8936_v29 = vld [vmem:[#allocation23 + $0x10c] ss:$16 sps:$4 sm:$0xff]   ;;  %v8931_v31 = vld [vmem:[#allocation23 + $0x100] ss:$16 sps:$4 sm:$0xff]   ;;  %v8952_v34 = vld [vmem:[#allocation23 + $0x168] ss:$16 sps:$4 sm:$0xff]  }
 0xb91   : > { %v5950_v57 = vrot.slane %v5943_v51, %v10561_v44  ;;  %v5958_v40 = vrot.slane %v7950_v52, %v10561_v44  ;;  %v5959_v59 = vcombine.low %v5934_v54, %v5942_v55  ;;  %6664 = vmatprep.subr.bf16.mxu1 %v8903_v8  ;;  %v8942_v51 = vld [vmem:[#allocation23 + $0x12c] ss:$16 sps:$4 sm:$0xff]   ;;  %v8937_v52 = vld [vmem:[#allocation23 + $0x120] ss:$16 sps:$4 sm:$0xff]   ;;  %v8940_v54 = vld [vmem:[#allocation23 + $0x128] ss:$16 sps:$4 sm:$0xff]  }
 0xb92   : > { %v8957_v4 = vld [vmem:[#allocation23 + $0x184] ss:$16 sps:$4 sm:$0xff]   ;;  %v8955_v6 = vld [vmem:[#allocation23 + $0x180] ss:$16 sps:$4 sm:$0xff]   ;;  %v8958_v11 = vld [vmem:[#allocation23 + $0x188] ss:$16 sps:$4 sm:$0xff]  }
 0xb93   : > { %v5967_v45 = vcombine.low %v5950_v57, %v5958_v40  ;;  %v5966_v38 = vrot.slane %v5959_v59, %v10566_v53  ;;  %v8966_v5 = vld [vmem:[#allocation23 + $0x1ac] ss:$16 sps:$4 sm:$0xff]   ;;  %v8964_v61 = vld [vmem:[#allocation23 + $0x1a8] ss:$16 sps:$4 sm:$0xff]  }
 0xb94   : > { %6665 = vmatpush1.bf16.msra.mxu1 %v8901_v62  ;;  %v8972_v33 = vld [vmem:[#allocation23 + $0x1cc] ss:$16 sps:$4 sm:$0xff]   ;;  %v8970_v8 = vld [vmem:[#allocation23 + $0x1c8] ss:$16 sps:$4 sm:$0xff]  }
 0xb95   : > { %v5974_v47 = vrot.slane %v5967_v45, %v10566_v53  ;;  %6666 = vmatprep.subr.bf16.mxu1 %v8909_v60  ;;  %v8978_v62 = vld [vmem:[#allocation23 + $0x1ec] ss:$16 sps:$4 sm:$0xff]   ;;  %v8976_v60 = vld [vmem:[#allocation23 + $0x1e8] ss:$16 sps:$4 sm:$0xff]  }
 0xb97   : > { %v5976_v50 = vcombine.high %v5966_v38, %v5974_v47  ;;  %v5975_v49 = vcombine.low %v5966_v38, %v5974_v47 }
 0xb98   : > { %6667 = vmatpush1.bf16.msra.mxu1 %v8907_v39 }
 0xb99   : > { %v5978_v35 = vpack.c.bf16 %v5976_v50, %v5926_v32  ;;  %v5977_v36 = vpack.c.bf16 %v5975_v49, %v5925_v9  ;;  %6668 = vmatprep.subr.bf16.mxu1 %v8915_v20  ;;  %v8934_v32 = vld [vmem:[#allocation23 + $0x108] ss:$16 sps:$4 sm:$0xff]   ;;  %v8939_v9 = vld [vmem:[#allocation23 + $0x124] ss:$16 sps:$4 sm:$0xff]  }
 0xb9b   : > { %6171 = vmatprep.mubr.bf16.mxu0 %v5978_v35 }
 0xb9c   : > { %6172 = vmatmul.mubr.bf16.vlgmr.msra.gmra.mrb[52].mxu0 %v5977_v36  ;;  %6669 = vmatpush1.bf16.msra.mxu1 %v8913_v25 }
 0xb9d   : > { %6670 = vmatprep.subr.bf16.mxu1 %v8921_v10  ;;  %v6186_v10 = vld [vmem:[#allocation20] sm:$0x3] }
 0xba0   : > { %6671 = vmatpush1.bf16.msra.mxu1 %v8919_v26  ;;  %v6224_v26 = vrot.slane %v6186_v10, %v10680_v7 }
 0xba1   : > { %6672 = vmatprep.subr.bf16.mxu1 %v8927_v30 }
 0xba4   : > { %6673 = vmatpush1.bf16.msra.mxu1 %v8925_v23 }
 0xba5   : > { %6674 = vmatprep.subr.bf16.mxu1 %v8933_v28 }
 0xba8   : > { %6675 = vmatpush1.bf16.msra.mxu1 %v8931_v31 }
 0xba9   : > { %6676 = vmatprep.subr.bf16.mxu1 %v8939_v9 }
 0xbac   : > { %6677 = vmatpush1.bf16.msra.mxu1 %v8937_v52 }
 0xc6f   : > { %v6173_v43 = vpop.f32.mrb[52].mxu0 }
 0xc70   : > { %v11114_v63 = vadd.f32 %v6173_v43, %v10829_v46  ;;  %v6175_v1 = vpop.f32.mrb[53].mxu0 }
 0xc71   : > { %v11117_v2 = vadd.f32 %v6175_v1, %v10825_v37  ;;  %v6177_v44 = vpop.f32.mrb[54].mxu0  ;;  %v8886_v37 = vld [vmem:[#allocation23 + $0x8] ss:$16 sps:$4 sm:$0xff]  }
 0xc72   : > { %v11120_v58 = vadd.f32 %v6177_v44, %v10831_v48  ;;  %v6179_v0 = vpop.f32.mrb[55].mxu0  ;;  %v8894_v48 = vld [vmem:[#allocation23 + $0x2c] ss:$16 sps:$4 sm:$0xff]   ;;  %6702 = vmatpush1.bf16.msra.mxu0 %v8886_v37 }
 0xc73   : > { %v11123_v53 = vadd.f32 %v6179_v0, %v10827_v42  ;;  %v6188_v56 = vadd.f32 %v11117_v2, %v11114_v63  ;;  %v8892_v42 = vld [vmem:[#allocation23 + $0x28] ss:$16 sps:$4 sm:$0xff]   ;;  %6703 = vmatprep.subr.bf16.mxu0 %v8894_v48  ;;  %v8948_v44 = vld [vmem:[#allocation23 + $0x14c] ss:$16 sps:$4 sm:$0xff]   ;;  %v8963_v48 = vld [vmem:[#allocation23 + $0x1a4] ss:$16 sps:$4 sm:$0xff]  }
 0xc74   : > { %v8946_v0 = vld [vmem:[#allocation23 + $0x148] ss:$16 sps:$4 sm:$0xff]   ;;  %v8960_v37 = vld [vmem:[#allocation23 + $0x18c] ss:$16 sps:$4 sm:$0xff]  }
 0xc75   : > { %6189 = vadd.xlane.f32.xlu0 %v6188_v56  ;;  %v6191_v46 = vadd.f32 %v11123_v53, %v11120_v58  ;;  %v8954_v56 = vld [vmem:[#allocation23 + $0x16c] ss:$16 sps:$4 sm:$0xff]  }
 0xc76   : > { %6704 = vmatpush1.bf16.msra.mxu0 %v8892_v42  ;;  %v8961_v42 = vld [vmem:[#allocation23 + $0x1a0] ss:$16 sps:$4 sm:$0xff]  }
 0xc77   : > { %6192 = vadd.xlane.f32.xlu1 %v6191_v46  ;;  %6705 = vmatprep.subr.bf16.mxu0 %v8900_v13  ;;  %v8949_v46 = vld [vmem:[#allocation23 + $0x160] ss:$16 sps:$4 sm:$0xff]   ;;  %v8969_v13 = vld [vmem:[#allocation23 + $0x1c4] ss:$16 sps:$4 sm:$0xff]  }
 0xc7a   : > { %6706 = vmatpush1.bf16.msra.mxu0 %v8898_v14  ;;  %v8967_v14 = vld [vmem:[#allocation23 + $0x1c0] ss:$16 sps:$4 sm:$0xff]  }
 0xc7b   : > { %6707 = vmatprep.subr.bf16.mxu0 %v8906_v17  ;;  %v8975_v17 = vld [vmem:[#allocation23 + $0x1e4] ss:$16 sps:$4 sm:$0xff]  }
 0xc7e   : > { %6708 = vmatpush1.bf16.msra.mxu0 %v8904_v18  ;;  %v8973_v18 = vld [vmem:[#allocation23 + $0x1e0] ss:$16 sps:$4 sm:$0xff]  }
 0xc7f   : > { %6709 = vmatprep.subr.bf16.mxu0 %v8912_v15  ;;  %v8981_v15 = vld [vmem:[#allocation26 + $0x4] ss:$8 sps:$4 sm:$0xff]  }
 0xc82   : > { %6710 = vmatpush1.bf16.msra.mxu0 %v8910_v16 }
 0xc83   : > { %6711 = vmatprep.subr.bf16.mxu0 %v8918_v21 }
 0xc86   : > { %6712 = vmatpush1.bf16.msra.mxu0 %v8916_v3 }
 0xc87   : > { %6713 = vmatprep.subr.bf16.mxu0 %v8924_v12  ;;  %v6187_v12 = vld [vmem:[#allocation22] sm:$0x3] }
 0xc88   : > { %v6239_v28 = vrot.slane %v6187_v12, %v10680_v7 }
 0xc8a   : > { %6714 = vmatpush1.bf16.msra.mxu0 %v8922_v27  ;;  %v6228_v27 = vrot.slane %v6186_v10, %v10815_v19 }
 0xc8b   : > { %6715 = vmatprep.subr.bf16.mxu0 %v8930_v22 }
 0xc8e   : > { %6716 = vmatpush1.bf16.msra.mxu0 %v8928_v24 }
 0xc8f   : > { %6717 = vmatprep.subr.bf16.mxu0 %v8936_v29  ;;  %v6243_v29 = vrot.slane %v6187_v12, %v10815_v19 }
 0xc92   : > { %6718 = vmatpush1.bf16.msra.mxu0 %v8934_v32 }
 0xc93   : > { %6719 = vmatprep.subr.bf16.mxu0 %v8942_v51 }
 0xc96   : > { %6720 = vmatpush1.bf16.msra.mxu0 %v8940_v54 }
 0xc97   : > { %6721 = vmatprep.subr.bf16.mxu0 %v8948_v44  ;;  %v8996_v44 = vld [vmem:[#allocation26 + $0x54] ss:$8 sps:$4 sm:$0xff]  }
 0xc9a   : > { %6722 = vmatpush1.bf16.msra.mxu0 %v8946_v0  ;;  %v8999_v0 = vld [vmem:[#allocation26 + $0x64] ss:$8 sps:$4 sm:$0xff]  }
 0xc9b   : > { %6723 = vmatprep.subr.bf16.mxu0 %v8954_v56  ;;  %v9002_v56 = vld [vmem:[#allocation26 + $0x74] ss:$8 sps:$4 sm:$0xff]  }
 0xc9e   : > { %6724 = vmatpush1.bf16.msra.mxu0 %v8952_v34  ;;  %v9005_v34 = vld [vmem:[#allocation26 + $0x84] ss:$8 sps:$4 sm:$0xff]  }
 0xc9f   : > { %6725 = vmatprep.subr.bf16.mxu0 %v8960_v37  ;;  %v9008_v37 = vld [vmem:[#allocation26 + $0x94] ss:$8 sps:$4 sm:$0xff]  }
 0xca2   : > { %6726 = vmatpush1.bf16.msra.mxu0 %v8958_v11  ;;  %v9011_v11 = vld [vmem:[#allocation26 + $0xa4] ss:$8 sps:$4 sm:$0xff]  }
 0xca3   : > { %6727 = vmatprep.subr.bf16.mxu0 %v8966_v5  ;;  %v9014_v5 = vld [vmem:[#allocation26 + $0xb4] ss:$8 sps:$4 sm:$0xff]  }
 0xca6   : > { %6728 = vmatpush1.bf16.msra.mxu0 %v8964_v61  ;;  %v9017_v61 = vld [vmem:[#allocation26 + $0xc4] ss:$8 sps:$4 sm:$0xff]  }
 0xca7   : > { %6729 = vmatprep.subr.bf16.mxu0 %v8972_v33  ;;  %v9020_v33 = vld [vmem:[#allocation26 + $0xd4] ss:$8 sps:$4 sm:$0xff]  }
 0xcaa   : > { %6730 = vmatpush1.bf16.msra.mxu0 %v8970_v8  ;;  %v9023_v8 = vld [vmem:[#allocation26 + $0xe4] ss:$8 sps:$4 sm:$0xff]  }
 0xcab   : > { %6731 = vmatprep.subr.bf16.mxu0 %v8978_v62  ;;  %v9026_v62 = vld [vmem:[#allocation26 + $0xf4] ss:$8 sps:$4 sm:$0xff]  }
 0xcae   : > { %6732 = vmatpush1.bf16.msra.mxu0 %v8976_v60  ;;  %v9029_v60 = vld [vmem:[#allocation26 + $0x104] ss:$8 sps:$4 sm:$0xff]  }
 0xd02   : > { %v6190_v55 = vpop.xlane.xlu0 %6189 }
 0xd03   : > { %v6194_v57 = vmul.f32 0.00390625, %v6190_v55 }
 0xd04   : > { %v6193_v40 = vpop.xlane.xlu1 %6192 }
 0xd05   : > { %v11130_v59 = vsub.f32 %v11114_v63, %v6194_v57  ;;  %v11133_v45 = vsub.f32 %v11117_v2, %v6194_v57  ;;  %v6195_v38 = vmul.f32 0.00390625, %v6193_v40  ;;  %v8945_v2 = vld [vmem:[#allocation23 + $0x144] ss:$16 sps:$4 sm:$0xff]  }
 0xd06   : > { %6678 = vmatprep.subr.bf16.mxu1 %v8945_v2  ;;  %v8991_v2 = vld [vmem:[#allocation26 + $0x40] ss:$8 sps:$4 sm:$0xff]  }
 0xd07   : > { %v11136_v47 = vsub.f32 %v11120_v58, %v6195_v38  ;;  %v11139_v50 = vsub.f32 %v11123_v53, %v6195_v38  ;;  %v6200_v49 = vmul.f32 %v11130_v59, %v11130_v59  ;;  %v6201_v35 = vmul.f32 %v11133_v45, %v11133_v45  ;;  %v8943_v58 = vld [vmem:[#allocation23 + $0x140] ss:$16 sps:$4 sm:$0xff]   ;;  %v8951_v53 = vld [vmem:[#allocation23 + $0x164] ss:$16 sps:$4 sm:$0xff]  }
 0xd08   : > { %6679 = vmatpush1.bf16.msra.mxu1 %v8943_v58  ;;  %v8994_v58 = vld [vmem:[#allocation26 + $0x50] ss:$8 sps:$4 sm:$0xff]  }
 0xd09   : > { %v6204_v36 = vadd.f32 %v6201_v35, %v6200_v49  ;;  %v6202_v43 = vmul.f32 %v11136_v47, %v11136_v47  ;;  %v6203_v63 = vmul.f32 %v11139_v50, %v11139_v50  ;;  %6680 = vmatprep.subr.bf16.mxu1 %v8951_v53  ;;  %v8982_v49 = vld [vmem:[#allocation26 + $0x10] ss:$8 sps:$4 sm:$0xff]   ;;  %v8987_v35 = vld [vmem:[#allocation26 + $0x24] ss:$8 sps:$4 sm:$0xff]   ;;  %v8997_v53 = vld [vmem:[#allocation26 + $0x60] ss:$8 sps:$4 sm:$0xff]  }
 0xd0b   : > { %6205 = vadd.xlane.f32.xlu0 %v6204_v36  ;;  %v6207_v1 = vadd.f32 %v6203_v63, %v6202_v43  ;;  %v8985_v36 = vld [vmem:[#allocation26 + $0x20] ss:$8 sps:$4 sm:$0xff]   ;;  %v8990_v43 = vld [vmem:[#allocation26 + $0x34] ss:$8 sps:$4 sm:$0xff]   ;;  %v8988_v63 = vld [vmem:[#allocation26 + $0x30] ss:$8 sps:$4 sm:$0xff]  }
 0xd0c   : > { %6681 = vmatpush1.bf16.msra.mxu1 %v8949_v46  ;;  %v9000_v46 = vld [vmem:[#allocation26 + $0x70] ss:$8 sps:$4 sm:$0xff]  }
 0xd0d   : > { %6208 = vadd.xlane.f32.xlu1 %v6207_v1  ;;  %6682 = vmatprep.subr.bf16.mxu1 %v8957_v4  ;;  %v8993_v1 = vld [vmem:[#allocation26 + $0x44] ss:$8 sps:$4 sm:$0xff]   ;;  %v9003_v4 = vld [vmem:[#allocation26 + $0x80] ss:$8 sps:$4 sm:$0xff]  }
 0xd10   : > { %6683 = vmatpush1.bf16.msra.mxu1 %v8955_v6  ;;  %v9006_v6 = vld [vmem:[#allocation26 + $0x90] ss:$8 sps:$4 sm:$0xff]  }
 0xd11   : > { %6684 = vmatprep.subr.bf16.mxu1 %v8963_v48  ;;  %v9009_v48 = vld [vmem:[#allocation26 + $0xa0] ss:$8 sps:$4 sm:$0xff]  }
 0xd14   : > { %6685 = vmatpush1.bf16.msra.mxu1 %v8961_v42  ;;  %v9012_v42 = vld [vmem:[#allocation26 + $0xb0] ss:$8 sps:$4 sm:$0xff]  }
 0xd15   : > { %6686 = vmatprep.subr.bf16.mxu1 %v8969_v13  ;;  %v9015_v13 = vld [vmem:[#allocation26 + $0xc0] ss:$8 sps:$4 sm:$0xff]  }
 0xd18   : > { %6687 = vmatpush1.bf16.msra.mxu1 %v8967_v14  ;;  %v9018_v14 = vld [vmem:[#allocation26 + $0xd0] ss:$8 sps:$4 sm:$0xff]  }
 0xd19   : > { %6688 = vmatprep.subr.bf16.mxu1 %v8975_v17  ;;  %v9021_v17 = vld [vmem:[#allocation26 + $0xe0] ss:$8 sps:$4 sm:$0xff]  }
 0xd1c   : > { %6689 = vmatpush1.bf16.msra.mxu1 %v8973_v18  ;;  %v9024_v18 = vld [vmem:[#allocation26 + $0xf0] ss:$8 sps:$4 sm:$0xff]  }
 0xd1d   : > { %7152 = vmatprep.subr.bf16.mxu1 %v8981_v15  ;;  %v6328_v15 = vsub.s32 2, %v10558_v41 }
 0xd98   : > { %v6206_v39 = vpop.xlane.xlu0 %6205 }
 0xd99   : > { %v6210_v16 = vmul.f32 0.00390625, %v6206_v39  ;;  %v6316_v39 = vld [vmem:[#allocation25] sm:$0xf] }
 0xd9a   : > { %v6209_v20 = vpop.xlane.xlu1 %6208 }
 0xd9b   : > { %v6212_v21 = vadd.f32 1e-05, %v6210_v16  ;;  %v6211_v25 = vmul.f32 0.00390625, %v6209_v20  ;;  %v6332_v16 = vsub.s32 3, %v10558_v41  ;;  %v6321_v20 = vrot.slane %v6316_v39, %v10680_v7 }
 0xd9d   : > { %9127 = vrsqrt.f32 %v6212_v21  ;;  %v6213_v3 = vadd.f32 1e-05, %v6211_v25  ;;  %v6329_v21 = vrot.slane %v6316_v39, %v6328_v15  ;;  %v6325_v25 = vrot.slane %v6316_v39, %v10815_v19  ;;  %v9065_v15 = vld [vmem:[#allocation26 + $0x1c4] ss:$8 sps:$4 sm:$0xff]  }
 0xd9f   : > { %9129 = vrsqrt.f32 %v6213_v3  ;;  %v6333_v3 = vrot.slane %v6316_v39, %v6332_v16  ;;  %v9063_v39 = vld [vmem:[#allocation26 + $0x1c0] ss:$8 sps:$4 sm:$0xff]   ;;  %v9068_v16 = vld [vmem:[#allocation26 + $0x1d4] ss:$8 sps:$4 sm:$0xff]  }
 0xda7   : > { %v9128_v30 = vpop.eup %9127 }
 0xda8   : > { %v6216_v22 = vmul.f32 %v9128_v30, %v11130_v59  ;;  %v6217_v23 = vmul.f32 %v9128_v30, %v11133_v45 }
 0xda9   : > { %v9130_v24 = vpop.eup %9129 }
 0xdaa   : > { %v6218_v31 = vmul.f32 %v9130_v24, %v11136_v47  ;;  %v6219_v32 = vmul.f32 %v9130_v24, %v11139_v50  ;;  %v6232_v9 = vmul.f32 %v6228_v27, %v6217_v23  ;;  %v6231_v51 = vmul.f32 %v6224_v26, %v6216_v22  ;;  %v8979_v47 = vld [vmem:[#allocation26] ss:$8 sps:$4 sm:$0xff]   ;;  %v8984_v50 = vld [vmem:[#allocation26 + $0x14] ss:$8 sps:$4 sm:$0xff]  }
 0xdac   : > { %v6234_v52 = vmul.f32 %v6228_v27, %v6219_v32  ;;  %v6233_v54 = vmul.f32 %v6224_v26, %v6218_v31  ;;  %v11157_v55 = vadd.f32 %v6243_v29, %v6232_v9  ;;  %v11161_v40 = vadd.f32 %v6239_v28, %v6231_v51 }
 0xdae   : > { %v11159_v57 = vadd.f32 %v6243_v29, %v6234_v52  ;;  %v11163_v59 = vadd.f32 %v6239_v28, %v6233_v54 }
 0xdb0   : > { %v6251_v45 = vpack.c.bf16 %v11159_v57, %v11157_v55  ;;  %v6250_v38 = vpack.c.bf16 %v11163_v59, %v11161_v40 }
 0xdb2   : > { %6690 = vmatprep.mubr.bf16.mxu1 %v6251_v45  ;;  %6733 = vmatprep.mubr.bf16.mxu0 %v6251_v45 }
 0xdb3   : > { %6691 = vmatmul.mubr.bf16.vlgmr.msra.gmra.mrb[48].mxu1 %v6250_v38  ;;  %6734 = vmatmul.mubr.bf16.vlgmr.msra.gmra.mrb[56].mxu0 %v6250_v38 }
 0xdb4   : > { %7153 = vmatpush1.bf16.msra.mxu1 %v8979_v47 }
 0xdb5   : > { %7154 = vmatprep.subr.bf16.mxu1 %v8984_v50 }
 0xdb8   : > { %7155 = vmatpush1.bf16.msra.mxu1 %v8982_v49 }
 0xdb9   : > { %7156 = vmatprep.subr.bf16.mxu1 %v8987_v35 }
 0xdbc   : > { %7157 = vmatpush1.bf16.msra.mxu1 %v8985_v36 }
 0xdbd   : > { %7158 = vmatprep.subr.bf16.mxu1 %v8990_v43 }
 0xdc0   : > { %7159 = vmatpush1.bf16.msra.mxu1 %v8988_v63 }
 0xdc1   : > { %7160 = vmatprep.subr.bf16.mxu1 %v8993_v1 }
 0xdc4   : > { %7161 = vmatpush1.bf16.msra.mxu1 %v8991_v2 }
 0xdc5   : > { %7162 = vmatprep.subr.bf16.mxu1 %v8996_v44  ;;  %v9027_v44 = vld [vmem:[#allocation26 + $0x100] ss:$8 sps:$4 sm:$0xff]  }
 0xdc8   : > { %7163 = vmatpush1.bf16.msra.mxu1 %v8994_v58  ;;  %v9032_v58 = vld [vmem:[#allocation26 + $0x114] ss:$8 sps:$4 sm:$0xff]  }
 0xdc9   : > { %7164 = vmatprep.subr.bf16.mxu1 %v8999_v0  ;;  %v9030_v0 = vld [vmem:[#allocation26 + $0x110] ss:$8 sps:$4 sm:$0xff]  }
 0xdcc   : > { %7165 = vmatpush1.bf16.msra.mxu1 %v8997_v53  ;;  %v9035_v53 = vld [vmem:[#allocation26 + $0x124] ss:$8 sps:$4 sm:$0xff]  }
 0xdcd   : > { %7166 = vmatprep.subr.bf16.mxu1 %v9002_v56  ;;  %v9033_v56 = vld [vmem:[#allocation26 + $0x120] ss:$8 sps:$4 sm:$0xff]  }
 0xdd0   : > { %7167 = vmatpush1.bf16.msra.mxu1 %v9000_v46  ;;  %v9038_v46 = vld [vmem:[#allocation26 + $0x134] ss:$8 sps:$4 sm:$0xff]  }
 0xdd1   : > { %7168 = vmatprep.subr.bf16.mxu1 %v9005_v34  ;;  %v9036_v34 = vld [vmem:[#allocation26 + $0x130] ss:$8 sps:$4 sm:$0xff]  }
 0xdd4   : > { %7169 = vmatpush1.bf16.msra.mxu1 %v9003_v4  ;;  %v9041_v4 = vld [vmem:[#allocation26 + $0x144] ss:$8 sps:$4 sm:$0xff]  }
 0xdd5   : > { %7170 = vmatprep.subr.bf16.mxu1 %v9008_v37  ;;  %v9039_v37 = vld [vmem:[#allocation26 + $0x140] ss:$8 sps:$4 sm:$0xff]  }
 0xdd8   : > { %7171 = vmatpush1.bf16.msra.mxu1 %v9006_v6  ;;  %v9044_v6 = vld [vmem:[#allocation26 + $0x154] ss:$8 sps:$4 sm:$0xff]  }
 0xdd9   : > { %7172 = vmatprep.subr.bf16.mxu1 %v9011_v11  ;;  %v9042_v11 = vld [vmem:[#allocation26 + $0x150] ss:$8 sps:$4 sm:$0xff]  }
 0xddc   : > { %7173 = vmatpush1.bf16.msra.mxu1 %v9009_v48  ;;  %v9047_v48 = vld [vmem:[#allocation26 + $0x164] ss:$8 sps:$4 sm:$0xff]  }
 0xddd   : > { %7174 = vmatprep.subr.bf16.mxu1 %v9014_v5  ;;  %v9045_v5 = vld [vmem:[#allocation26 + $0x160] ss:$8 sps:$4 sm:$0xff]  }
 0xde0   : > { %7175 = vmatpush1.bf16.msra.mxu1 %v9012_v42  ;;  %v9050_v42 = vld [vmem:[#allocation26 + $0x174] ss:$8 sps:$4 sm:$0xff]  }
 0xde1   : > { %7176 = vmatprep.subr.bf16.mxu1 %v9017_v61  ;;  %v9048_v61 = vld [vmem:[#allocation26 + $0x170] ss:$8 sps:$4 sm:$0xff]  }
 0xde4   : > { %7177 = vmatpush1.bf16.msra.mxu1 %v9015_v13  ;;  %v9053_v13 = vld [vmem:[#allocation26 + $0x184] ss:$8 sps:$4 sm:$0xff]  }
 0xde5   : > { %7178 = vmatprep.subr.bf16.mxu1 %v9020_v33  ;;  %v9051_v33 = vld [vmem:[#allocation26 + $0x180] ss:$8 sps:$4 sm:$0xff]  }
 0xde8   : > { %7179 = vmatpush1.bf16.msra.mxu1 %v9018_v14  ;;  %v9056_v14 = vld [vmem:[#allocation26 + $0x194] ss:$8 sps:$4 sm:$0xff]  }
 0xde9   : > { %7180 = vmatprep.subr.bf16.mxu1 %v9023_v8  ;;  %v9054_v8 = vld [vmem:[#allocation26 + $0x190] ss:$8 sps:$4 sm:$0xff]  }
 0xdec   : > { %7181 = vmatpush1.bf16.msra.mxu1 %v9021_v17  ;;  %v9059_v17 = vld [vmem:[#allocation26 + $0x1a4] ss:$8 sps:$4 sm:$0xff]  }
 0xded   : > { %7182 = vmatprep.subr.bf16.mxu1 %v9026_v62  ;;  %v9057_v62 = vld [vmem:[#allocation26 + $0x1a0] ss:$8 sps:$4 sm:$0xff]  }
 0xdf0   : > { %7183 = vmatpush1.bf16.msra.mxu1 %v9024_v18  ;;  %v9062_v18 = vld [vmem:[#allocation26 + $0x1b4] ss:$8 sps:$4 sm:$0xff]  }
 0xdf1   : > { %7195 = vmatprep.subr.bf16.mxu1 %v9029_v60  ;;  %v9060_v60 = vld [vmem:[#allocation26 + $0x1b0] ss:$8 sps:$4 sm:$0xff]  }
 0xe86   : > { %v6692_v10 = vpop.f32.mrb[48].mxu1  ;;  %v6735_v12 = vpop.f32.mrb[56].mxu0 }
 0xe87   : > { %v6693_v26 = vadd.f32 %v6692_v10, %v6321_v20  ;;  %v6736_v27 = vadd.f32 %v6735_v12, %v6329_v21  ;;  %v6694_v30 = vpop.f32.mrb[49].mxu1  ;;  %v6737_v22 = vpop.f32.mrb[57].mxu0  ;;  %v9072_v10 = vld [vmem:[#allocation26 + $0x1f0] ss:$8 sps:$4 sm:$0xff]   ;;  %v6820_v12 = vld [vmem:[#allocation28] sm:$0x3] }
 0xe88   : > { %v6695_v23 = vadd.f32 %v6694_v30, %v6325_v25  ;;  %v6738_v24 = vadd.f32 %v6737_v22, %v6333_v3  ;;  %v6696_v28 = vpop.f32.mrb[50].mxu1  ;;  %v6739_v29 = vpop.f32.mrb[58].mxu0 }
 0xe89   : > { %v6697_v31 = vadd.f32 %v6696_v28, %v6321_v20  ;;  %v6740_v32 = vadd.f32 %v6739_v29, %v6329_v21  ;;  %v6698_v9 = vpop.f32.mrb[51].mxu1  ;;  %v6741_v41 = vpop.f32.mrb[59].mxu0  ;;  %v6744_v54 = vmax.f32 %v6693_v26, 0.0  ;;  %v6746_v45 = vmax.f32 %v6736_v27, 0.0  ;;  %v9066_v20 = vld [vmem:[#allocation26 + $0x1d0] ss:$8 sps:$4 sm:$0xff]  }
 0xe8a   : > { %v6699_v51 = vadd.f32 %v6698_v9, %v6325_v25  ;;  %v6742_v52 = vadd.f32 %v6741_v41, %v6333_v3  ;;  %v6745_v50 = vmax.f32 %v6695_v23, 0.0  ;;  %v6747_v49 = vmax.f32 %v6738_v24, 0.0  ;;  %v9071_v21 = vld [vmem:[#allocation26 + $0x1e4] ss:$8 sps:$4 sm:$0xff]   ;;  %v9069_v25 = vld [vmem:[#allocation26 + $0x1e0] ss:$8 sps:$4 sm:$0xff]  }
 0xe8b   : > { %v6748_v38 = vmax.f32 %v6697_v31, 0.0  ;;  %v6750_v47 = vmax.f32 %v6740_v32, 0.0  ;;  %v9074_v3 = vld [vmem:[#allocation26 + $0x1f4] ss:$8 sps:$4 sm:$0xff]   ;;  %v6825_v26 = vrot.slane %v6820_v12, %v10680_v7  ;;  %v6829_v27 = vrot.slane %v6820_v12, %v10815_v19 }
 0xe8c   : > { %v6749_v35 = vmax.f32 %v6699_v51, 0.0  ;;  %v6751_v36 = vmax.f32 %v6742_v52, 0.0 }
 0xe8d   : > { %v6752_v43 = vpack.c.bf16 %v6748_v38, %v6744_v54  ;;  %v11173_v63 = vpack.c.bf16 %v6750_v47, %v6746_v45 }
 0xe8e   : > { %v6753_v1 = vpack.c.bf16 %v6749_v35, %v6745_v50  ;;  %v6755_v2 = vpack.c.bf16 %v6751_v36, %v6747_v49 }
 0xe90   : > { %7184 = vmatprep.mubr.bf16.mxu1 %v6753_v1 }
 0xe91   : > { %7185 = vmatmul.mubr.bf16.vlgmr.msra.gmra.mrb[52].mxu1 %v6752_v43 }
 0xe92   : > { %7196 = vmatpush1.bf16.msra.mxu1 %v9027_v44  ;;  %7227 = vmatprep.mubr.bf16.mxu1 %v6755_v2 }
 0xe93   : > { %7197 = vmatprep.subr.bf16.mxu1 %v9032_v58 }
 0xe96   : > { %7198 = vmatpush1.bf16.msra.mxu1 %v9030_v0 }
 0xe97   : > { %7199 = vmatprep.subr.bf16.mxu1 %v9035_v53 }
 0xe9a   : > { %7200 = vmatpush1.bf16.msra.mxu1 %v9033_v56 }
 0xe9b   : > { %7201 = vmatprep.subr.bf16.mxu1 %v9038_v46 }
 0xe9e   : > { %7202 = vmatpush1.bf16.msra.mxu1 %v9036_v34  ;;  %v7242_v34 = vld [vmem:[#allocation29] sm:$0x3] }
 0xe9f   : > { %7203 = vmatprep.subr.bf16.mxu1 %v9041_v4  ;;  %v7243_v4 = vld [vmem:[#allocation31] sm:$0x3] }
 0xea2   : > { %7204 = vmatpush1.bf16.msra.mxu1 %v9039_v37  ;;  %v7280_v37 = vrot.slane %v7242_v34, %v10680_v7 }
 0xea3   : > { %7205 = vmatprep.subr.bf16.mxu1 %v9044_v6  ;;  %v7284_v6 = vrot.slane %v7242_v34, %v10815_v19 }
 0xea6   : > { %7206 = vmatpush1.bf16.msra.mxu1 %v9042_v11 }
 0xea7   : > { %7207 = vmatprep.subr.bf16.mxu1 %v9047_v48  ;;  %v7295_v48 = vrot.slane %v7243_v4, %v10680_v7 }
 0xeaa   : > { %7208 = vmatpush1.bf16.msra.mxu1 %v9045_v5  ;;  %v7299_v5 = vrot.slane %v7243_v4, %v10815_v19 }
 0xeab   : > { %7209 = vmatprep.subr.bf16.mxu1 %v9050_v42 }
 0xeae   : > { %7210 = vmatpush1.bf16.msra.mxu1 %v9048_v61 }
 0xeaf   : > { %7211 = vmatprep.subr.bf16.mxu1 %v9053_v13 }
 0xeb2   : > { %7212 = vmatpush1.bf16.msra.mxu1 %v9051_v33 }
 0xeb3   : > { %7213 = vmatprep.subr.bf16.mxu1 %v9056_v14 }
 0xeb6   : > { %7214 = vmatpush1.bf16.msra.mxu1 %v9054_v8 }
 0xeb7   : > { %7215 = vmatprep.subr.bf16.mxu1 %v9059_v17 }
 0xeba   : > { %7216 = vmatpush1.bf16.msra.mxu1 %v9057_v62 }
 0xebb   : > { %7217 = vmatprep.subr.bf16.mxu1 %v9062_v18 }
 0xebe   : > { %7218 = vmatpush1.bf16.msra.mxu1 %v9060_v60 }
 0xebf   : > { %7219 = vmatprep.subr.bf16.mxu1 %v9065_v15 }
 0xec2   : > { %7220 = vmatpush1.bf16.msra.mxu1 %v9063_v39 }
 0xec3   : > { %7221 = vmatprep.subr.bf16.mxu1 %v9068_v16 }
 0xec6   : > { %7222 = vmatpush1.bf16.msra.mxu1 %v9066_v20 }
 0xec7   : > { %7223 = vmatprep.subr.bf16.mxu1 %v9071_v21 }
 0xeca   : > { %7224 = vmatpush1.bf16.msra.mxu1 %v9069_v25 }
 0xecb   : > { %7225 = vmatprep.subr.bf16.mxu1 %v9074_v3 }
 0xece   : > { %7226 = vmatpush1.bf16.msra.mxu1 %v9072_v10 }
 0xed1   : > { %7228 = vmatmul.mubr.bf16.vlgmr.msra.gmra.mrb[52].mxu1 %v11173_v63 }
 0xfa4   : > { %v7229_v30 = vpop.f32.mrb[52].mxu1 }
 0xfa5   : > { %v8257_v22 = vadd.f32 %v7229_v30, %v6825_v26  ;;  %v7231_v23 = vpop.f32.mrb[53].mxu1 }
 0xfa6   : > { %v8258_v24 = vadd.f32 %v7231_v23, %v6829_v27  ;;  %v7233_v28 = vpop.f32.mrb[54].mxu1 }
 0xfa7   : > { %v7238_v29 = vadd.f32 %v8257_v22, %v11161_v40  ;;  %v8259_v31 = vadd.f32 %v7233_v28, %v6825_v26  ;;  %v7235_v32 = vpop.f32.mrb[55].mxu1 }
 0xfa8   : > { %v7239_v9 = vadd.f32 %v8258_v24, %v11157_v55  ;;  %v8260_v41 = vadd.f32 %v7235_v32, %v6829_v27 }
 0xfa9   : > { %v7240_v51 = vadd.f32 %v8259_v31, %v11163_v59 }
 0xfaa   : > { %v7241_v52 = vadd.f32 %v8260_v41, %v11159_v57  ;;  %v7244_v54 = vadd.f32 %v7239_v9, %v7238_v29 }
 0xfac   : > { %7245 = vadd.xlane.f32.xlu0 %v7244_v54  ;;  %v7247_v45 = vadd.f32 %v7241_v52, %v7240_v51 }
 0xfae   : > { %7248 = vadd.xlane.f32.xlu1 %v7247_v45 }
0x1039   : > { %v7246_v38 = vpop.xlane.xlu0 %7245 }
0x103a   : > { %v7250_v47 = vmul.f32 0.00390625, %v7246_v38 }
0x103b   : > { %v7249_v50 = vpop.xlane.xlu1 %7248 }
0x103c   : > { %v7252_v49 = vsub.f32 %v7238_v29, %v7250_v47  ;;  %v7253_v35 = vsub.f32 %v7239_v9, %v7250_v47  ;;  %v7251_v36 = vmul.f32 0.00390625, %v7249_v50 }
0x103e   : > { %v7254_v40 = vsub.f32 %v7240_v51, %v7251_v36  ;;  %v7255_v43 = vsub.f32 %v7241_v52, %v7251_v36  ;;  %v7256_v63 = vmul.f32 %v7252_v49, %v7252_v49  ;;  %v7257_v1 = vmul.f32 %v7253_v35, %v7253_v35 }
0x1040   : > { %v7260_v55 = vadd.f32 %v7257_v1, %v7256_v63  ;;  %v7258_v2 = vmul.f32 %v7254_v40, %v7254_v40  ;;  %v7259_v44 = vmul.f32 %v7255_v43, %v7255_v43 }
0x1042   : > { %7261 = vadd.xlane.f32.xlu0 %v7260_v55  ;;  %v7263_v59 = vadd.f32 %v7259_v44, %v7258_v2 }
0x1044   : > { %7264 = vadd.xlane.f32.xlu1 %v7263_v59 }
0x10cf   : > { %v7262_v57 = vpop.xlane.xlu0 %7261 }
0x10d0   : > { %v7266_v58 = vmul.f32 0.00390625, %v7262_v57 }
0x10d1   : > { %v7265_v0 = vpop.xlane.xlu1 %7264 }
0x10d2   : > { %v7268_v53 = vadd.f32 1e-05, %v7266_v58  ;;  %v7267_v56 = vmul.f32 0.00390625, %v7265_v0 }
0x10d4   : > { %9131 = vrsqrt.f32 %v7268_v53  ;;  %v7269_v46 = vadd.f32 1e-05, %v7267_v56 }
0x10d6   : > { %9133 = vrsqrt.f32 %v7269_v46 }
0x10de   : > { %v9132_v11 = vpop.eup %9131 }
0x10df   : > { %v7272_v42 = vmul.f32 %v9132_v11, %v7252_v49  ;;  %v7273_v61 = vmul.f32 %v9132_v11, %v7253_v35 }
0x10e0   : > { %v9134_v13 = vpop.eup %9133 }
0x10e1   : > { %v7287_v33 = vmul.f32 %v7280_v37, %v7272_v42  ;;  %v7288_v14 = vmul.f32 %v7284_v6, %v7273_v61  ;;  %v7274_v8 = vmul.f32 %v9134_v13, %v7254_v40  ;;  %v7275_v17 = vmul.f32 %v9134_v13, %v7255_v43 }
0x10e3   : > { %v7302_v62 = vadd.f32 %v7295_v48, %v7287_v33  ;;  %v7303_v18 = vadd.f32 %v7299_v5, %v7288_v14  ;;  %v7289_v60 = vmul.f32 %v7280_v37, %v7274_v8  ;;  %v7290_v15 = vmul.f32 %v7284_v6, %v7275_v17 }
0x10e5   : > { %v8125_v7 = vpack.c.bf16 %v7303_v18, %v7302_v62  ;;  %v7304_v39 = vadd.f32 %v7295_v48, %v7289_v60  ;;  %v7305_v19 = vadd.f32 %v7299_v5, %v7290_v15 }
0x10e7   : > { %v8126_v16 = vpack.c.bf16 %v7305_v19, %v7304_v39  ;;  %7322 = vst [vmem:[%s940_s24] sm:$0xff] %v8125_v7 }
0x10e9   : > { %7323 = vst [vmem:[%s940_s24 + $0x8] sm:$0xff] %v8126_v16 }
0x10ea   : > { %9690 = shalt.err (!%p9687_p1)
}
0x10eb   : > { %s9691_s12 = scalar_lea.hbm %s11192_s23, 256  ;;  %s9695_s20 = scalar_lea.hbm %s11372_s9, 512 }
0x10ec   : > { %p9692_p0 = scmp.ne.s32.totalorder %s11192_s23, %s9691_s12  ;;  %p9696_p12 = scmp.lt.u32.totalorder %s11192_s23, %s11372_s9 }
0x10ed   : > { %p9697_p2 = scmp.lt.u32.totalorder %s9695_s20, %s9691_s12  ;;  %p9699_p6 = scmp.lt.u32.totalorder %s9691_s12, %s11192_s23 }
0x10ee   : > { %p9693_p5 = pnand %p9692_p0, %p11373_p4 }
0x10ef   : > { %p9698_p8 = por %p9697_p2, %p9696_p12 }
0x10f0   : > { %p9694_p3 = pneg %p9693_p5 }
0x10f1   : > { %p9700_p10 = por %p9699_p6, %p9698_p8 }
0x10f3   : > { %p9701_p11 = pnand %p9700_p10, %p9694_p3 }
0x10f5   : > { %9704 = shalt.err (!%p9701_p11)
}
0x10f6   : > { %s9817_s22 = smov 128   ;;  %s9818_s25 = smov 8  }
0x10f7   : > { %8333 = dma.vmem_to_hbm [thread:$0]  (%p11373_p4), %s11194_s8, 256, %s11192_s23, %s7325_s2, %s9817_s22, %s9817_s22, %s9818_s25  }
0x10f8 PF: > { %s7354_s24 = sand.u32 1, %s9771_s0   ;;  %p11374_p7 = scmp.ne.s32.totalorder %s11332_s28, 0 }
0x10f9   : > { %p11375_p9 = scmp.ge.s32.totalorder %s9783_s21, 2  ;;  %s7355_s10 = scalar_lea.sflag [#allocation4], %s7354_s24 }
0x10fb   : > { %p8395_p13 = pnand %p11375_p9, %p11374_p7 }
0x10fd   : > { %9766 = dma.done.wait (!%p8395_p13), %s7355_s10, 256  }
0x10fe   : > { %9768 = vsyncadd (!%p8395_p13), %s7355_s10, 4294967040  ;;  %s11376_s17 = sld [smem:[#allocation45_spill]]  ;;  %s11377_s20 = sld [smem:[#allocation47_spill]] }
0x10ff   : > { %p45_p1 = scmp.ge.s32.totalorder %s10153_s16, 4   ;;  %s11378_s0 = smov %s9775_s30 }
0x1100   : > { %s11380_s21 = smov %s10153_s16 }
0x1101   :  { %47 = sbr.rel (!%p45_p1) target bundleno = 37 (0x25), region = 238 }
0x1104   : > { %s11379_s30 = smov %s11376_s17 }
0x1108   :  { %7360 = vsyncpa [#allocation3], 1 }
0x1109   :  { %7362 = vsyncpa [#allocation3 + $0x1], 1 }
0x110a   :  { %7363 = vsyncpa [#allocation6], 1 }
0x110b   :  { %7365 = vsyncpa [#allocation6 + $0x1], 1 }
0x110c   :  { %7366 = vsyncpa [#allocation9], 1 }
0x110d   :  { %7368 = vsyncpa [#allocation9 + $0x1], 1 }
0x110e   :  { %7369 = vsyncpa [#allocation12], 1 }
0x110f   :  { %7370 = vsyncpa [#allocation15], 1 }
0x1110   :  { %7371 = vsyncpa [#allocation18], 1 }
0x1111   :  { %7372 = vsyncpa [#allocation21], 1 }
0x1112   :  { %7373 = vsyncpa [#allocation24], 1 }
0x1113   :  { %7374 = vsyncpa [#allocation27], 1 }
0x1114   :  { %7375 = vsyncpa [#allocation30], 1 }
0x1115   :  { %7376 = vsyncpa [#allocation4], 1 }
0x1116   :  { %7378 = vsyncpa [#allocation4 + $0x1], 1 }

</bundles_post_ra>
